<compile_context>
chip_gen: v7x
topology: tpu7x:2x2x1
jax: 0.10.0
libtpu: 0.0.40
codegen_flags: <defaults>
</compile_context>

<pallas_src>
import functools

import jax
import jax.numpy as jnp
from jax.experimental import pallas as pl
from jax.experimental.pallas import tpu as pltpu

IGNORE_INDEX = 255

# Unused in forward (criterion built with weight=None), kept for __init__ parity.
CLASS_WEIGHT = jnp.asarray(
    [0.80777327, 1.00125961, 0.90997236, 1.10867908, 1.17541499, 0.86041422,
     1.01116758, 0.89290045, 1.12410812, 0.91105395, 1.07604013, 1.1247061,
     1.09895196, 0.90172057, 0.93529453, 0.93054733, 1.04919178, 1.04937547,
     1.06267568, 1.06365688], dtype=jnp.float32)


def _bilinear_matrix(out_size: int, in_size: int) -> jnp.ndarray:
    """(out_size, in_size) interpolation matrix, align_corners=True."""
    if in_size == 1:
        return jnp.ones((out_size, 1), jnp.float32)
    idx = jnp.arange(out_size, dtype=jnp.float32)
    src = idx * (in_size - 1) / max(out_size - 1, 1)
    i0 = jnp.floor(src).astype(jnp.int32)
    i1 = jnp.minimum(i0 + 1, in_size - 1)
    frac = src - i0.astype(jnp.float32)
    oh0 = jax.nn.one_hot(i0, in_size, dtype=jnp.float32)
    oh1 = jax.nn.one_hot(i1, in_size, dtype=jnp.float32)
    return (1.0 - frac)[:, None] * oh0 + frac[:, None] * oh1


def _head_ce(x_ref, a_ref, bt_ref, tmp_ref, logit_ref, t, *, n_classes, h_tile):
    """Per-pixel CE (h_tile, W) for one head, using shared scratch.

    x_ref:     (1, C, h, w)  bf16 low-res logits for the current batch element
    a_ref:     (h_tile, h)   bf16 H-interp rows for this output row tile
    bt_ref:    (w, W)        bf16 transposed W-interp matrix
    tmp_ref:   (C*h_tile, w) f32 scratch for the per-class H-interp results
    logit_ref: (C*h_tile, W) f32 scratch (shared / reused by both heads)
    t:         (h_tile, W)   int32 target tile
    """
    a = a_ref[...]                                             # (h_tile, h) bf16

    # (1) H-interpolation: C small matmuls (M=h_tile, K=h, N=w), staged in VMEM.
    for c in range(n_classes):
        r = jnp.dot(a, x_ref[0, c], preferred_element_type=jnp.float32)
        tmp_ref[pl.ds(c * h_tile, h_tile), :] = r

    # (2) W-interpolation: ONE merged bf16 matmul for all classes.
    logits = jnp.dot(tmp_ref[...].astype(jnp.bfloat16), bt_ref[...],
                     preferred_element_type=jnp.float32)       # (C*h_tile, W) f32
    logit_ref[...] = logits

    # (3) Class max fused with the producer (no extra read-back pass).
    m = logits[0:h_tile, :]
    for c in range(1, n_classes):
        m = jnp.maximum(m, logits[c * h_tile:(c + 1) * h_tile, :])

    # (4) exp-sum + target-logit gather, reading class planes back from VMEM.
    se = jnp.zeros_like(m)
    picked = jnp.zeros_like(m)
    for c in range(n_classes):
        lc = logit_ref[pl.ds(c * h_tile, h_tile), :]
        se = se + jnp.exp(lc - m)
        picked = jnp.where(t == c, lc, picked)

    return (m + jnp.log(se)) - picked                          # (h_tile, W) f32


def _fused_kernel(x0_ref, a0_ref, bt0_ref, x1_ref, a1_ref, bt1_ref, t_ref,
                  sum_ref, cnt_ref,
                  tmp0_ref, tmp1_ref, logit_ref, loss_acc, cnt_acc,
                  *, n_classes, h_tile, ignore_index, dsn_weight):
    i = pl.program_id(1)

    # Per-batch accumulators: init at the first row tile of each batch element.
    @pl.when(i == 0)
    def _():
        loss_acc[...] = jnp.zeros_like(loss_acc)
        cnt_acc[...] = jnp.zeros_like(cnt_acc)

    t = t_ref[0]                                               # (h_tile, W) int32
    valid = (t != ignore_index).astype(jnp.float32)

    ce0 = _head_ce(x0_ref, a0_ref, bt0_ref, tmp0_ref, logit_ref, t,
                   n_classes=n_classes, h_tile=h_tile)
    loss_acc[...] += ce0 * valid

    ce1 = _head_ce(x1_ref, a1_ref, bt1_ref, tmp1_ref, logit_ref, t,
                   n_classes=n_classes, h_tile=h_tile)
    loss_acc[...] += (dsn_weight * valid) * ce1
    cnt_acc[...] += valid

    # Finalize per-batch partials at the last row tile (block index depends on n
    # only, so the output stays VMEM-resident across the i axis).
    @pl.when(i == pl.num_programs(1) - 1)
    def _():
        sum_ref[...] = jnp.broadcast_to(jnp.sum(loss_acc[...]), sum_ref.shape)
        cnt_ref[...] = jnp.broadcast_to(jnp.sum(cnt_acc[...]), cnt_ref.shape)


def _vmem_capacity_bytes():
    try:
        info = pltpu.get_tpu_info()
        for name in ("vmem_capacity_bytes", "vmem_size_bytes", "vmem_bytes"):
            v = getattr(info, name, None)
            if v:
                return int(v)
    except Exception:
        pass
    return 64 * 1024 * 1024          # conservative fallback (v7x per-core VMEM)


def _pick_h_tile(n_classes, heads_hw, W, H, vmem_limit_bytes):
    """Largest multiple-of-8 output row tile whose scratch + double-buffered input
    blocks fit ~70% of the vmem limit (headroom for live softmax planes/spills)."""
    budget = int(vmem_limit_bytes * 0.7)

    fixed = 0
    per_row = n_classes * W * 4          # shared logit scratch (f32)
    per_row += 2 * W * 4                 # loss/cnt vector accumulators (f32)
    per_row += 2 * W * 4                 # target block, int32, double-buffered
    per_row += 6 * W * 4                 # headroom: live m/se/picked/ce planes
    for (hh, ww) in heads_hw:
        fixed += 2 * n_classes * hh * ww * 2     # x block, bf16, double-buffered
        fixed += 2 * ww * W * 2                  # B^T block, bf16, double-buffered
        per_row += n_classes * ww * 4            # tmp scratch (f32)
        per_row += 2 * hh * 2                    # A block, bf16, double-buffered

    avail = max(budget - fixed, per_row * 8)
    t = max(8, (avail // per_row) // 8 * 8)
    h_pad8 = ((H + 7) // 8) * 8
    return int(min(t, h_pad8))


def segmentation_multi_loss(preds, target, *, ignore_index=IGNORE_INDEX,
                            dsn_weight=0.4, h_tile=None):
    """CE(up(preds[0]), target) + 0.4 * CE(up(preds[1]), target), fully fused."""
    x0, x1 = preds[0], preds[1]
    N, C, h0, w0 = x0.shape
    N1, C1, h1, w1 = x1.shape
    assert N1 == N and C1 == C
    Nt, H, W = target.shape
    assert Nt == N

    cap = _vmem_capacity_bytes()
    vmem_limit = int(min(cap // 2, 64 * 1024 * 1024))   # 64 MiB on v5e/v6e, 32 on v7x

    if h_tile is None:
        h_tile = _pick_h_tile(C, [(h0, w0), (h1, w1)], W, H, vmem_limit)
    h_pad8 = ((H + 7) // 8) * 8
    h_tile = int(min(max(8, (h_tile // 8) * 8), h_pad8))

    n_h = pl.cdiv(H, h_tile)
    H_pad = n_h * h_tile

    def prep_head(x, hin, win):
        A = _bilinear_matrix(H, hin)
        if H_pad != H:
            # Zero A rows -> all-zero logits for pad rows; pad targets = ignore.
            A = jnp.pad(A, ((0, H_pad - H), (0, 0)))
        Bt = _bilinear_matrix(W, win).T
        return (x.astype(jnp.bfloat16), A.astype(jnp.bfloat16),
                Bt.astype(jnp.bfloat16))

    x0b, A0, Bt0 = prep_head(x0, h0, w0)
    x1b, A1, Bt1 = prep_head(x1, h1, w1)

    tgt = target.astype(jnp.int32)
    if H_pad != H:
        tgt = jnp.pad(tgt, ((0, 0), (0, H_pad - H), (0, 0)),
                      constant_values=ignore_index)

    kernel = functools.partial(_fused_kernel, n_classes=C, h_tile=h_tile,
                               ignore_index=ignore_index, dsn_weight=dsn_weight)

    sums, cnts = pl.pallas_call(
        kernel,
        out_shape=(jax.ShapeDtypeStruct((N, 1, 128), jnp.float32),
                   jax.ShapeDtypeStruct((N, 1, 128), jnp.float32)),
        grid=(N, n_h),
        in_specs=[
            pl.BlockSpec((1, C, h0, w0), lambda n, i: (n, 0, 0, 0)),
            pl.BlockSpec((h_tile, h0), lambda n, i: (i, 0)),
            pl.BlockSpec((w0, W), lambda n, i: (0, 0)),
            pl.BlockSpec((1, C, h1, w1), lambda n, i: (n, 0, 0, 0)),
            pl.BlockSpec((h_tile, h1), lambda n, i: (i, 0)),
            pl.BlockSpec((w1, W), lambda n, i: (0, 0)),
            pl.BlockSpec((1, h_tile, W), lambda n, i: (n, i, 0)),
        ],
        out_specs=(pl.BlockSpec((1, 1, 128), lambda n, i: (n, 0, 0)),
                   pl.BlockSpec((1, 1, 128), lambda n, i: (n, 0, 0))),
        scratch_shapes=[
            pltpu.VMEM((C * h_tile, w0), jnp.float32),   # head-0 H-interp staging
            pltpu.VMEM((C * h_tile, w1), jnp.float32),   # head-1 H-interp staging
            pltpu.VMEM((C * h_tile, W), jnp.float32),    # shared upsampled logits
            pltpu.VMEM((h_tile, W), jnp.float32),        # vector loss accumulator
            pltpu.VMEM((h_tile, W), jnp.float32),        # vector count accumulator
        ],
        # Batch axis parallel (v7x dual-TC), row-tile axis is the accumulation axis.
        compiler_params=pltpu.CompilerParams(
            dimension_semantics=("parallel", "arbitrary"),
            vmem_limit_bytes=vmem_limit,
        ),
    )(x0b, A0, Bt0, x1b, A1, Bt1, tgt)

    return jnp.sum(sums[:, 0, 0]) / jnp.sum(cnts[:, 0, 0])


# ------------------------- pure-JAX reference ------------------------------
def _ref_upsample(x, H, W):
    N, C, h, w = x.shape
    A = _bilinear_matrix(H, h)
    B = _bilinear_matrix(W, w)
    return jnp.einsum('Hh,nchw,Ww->ncHW', A, x.astype(jnp.float32), B)


def _ref_ce(logits, target, ignore_index):
    N, C, H, W = logits.shape
    x = jnp.transpose(logits, (0, 2, 3, 1)).reshape(-1, C)
    t = target.reshape(-1)
    lse = jax.scipy.special.logsumexp(x, axis=-1)
    safe_t = jnp.where(t == ignore_index, 0, t)
    picked = jnp.take_along_axis(x, safe_t[:, None], axis=-1)[:, 0]
    valid = (t != ignore_index).astype(jnp.float32)
    return jnp.sum((lse - picked) * valid) / jnp.sum(valid)


def _ref_loss(preds, target, ignore_index=IGNORE_INDEX):
    H, W = target.shape[1], target.shape[2]
    l0 = _ref_ce(_ref_upsample(preds[0], H, W), target, ignore_index)
    l1 = _ref_ce(_ref_upsample(preds[1], H, W), target, ignore_index)
    return l0 + 0.4 * l1


if __name__ == "__main__":
    key = jax.random.PRNGKey(0)
    k1, k2, k3, k4 = jax.random.split(key, 4)

    N, C, H, W = 2, 20, 16, 16          # target spatial size
    pred0 = jax.random.normal(k1, (N, C, 8, 8), jnp.float32)   # main head, 1/2 res
    pred1 = jax.random.normal(k2, (N, C, 4, 4), jnp.float32)   # dsn head, 1/4 res
    target = jax.random.randint(k3, (N, H, W), 0, C).astype(jnp.int32)
    ignore_mask = jax.random.uniform(k4, (N, H, W)) < 0.1
    target = jnp.where(ignore_mask, IGNORE_INDEX, target)

    # h_tile=8 exercises multi-row-tile accumulation even at this toy resolution.
    loss = segmentation_multi_loss((pred0, pred1), target, h_tile=8)
    loss = jax.block_until_ready(loss)

    ref = _ref_loss((pred0, pred1), target)
    # bf16 MXU operands relax exact f32 parity; 1e-2 is ample for the scalar loss.
    assert jnp.allclose(loss, ref, rtol=1e-2, atol=1e-2), (loss, ref)
    print("KERNEL_OK")
</pallas_src>

<mosaic_0001>
module attributes {stable_mosaic.version = 11 : i64} {
  func.func @_fused_kernel(%arg0: i32, %arg1: i32, %arg2: memref<1x20x8x8xbf16, #tpu.memory_space<vmem>>, %arg3: memref<8x8xbf16, #tpu.memory_space<vmem>>, %arg4: memref<8x16xbf16, #tpu.memory_space<vmem>>, %arg5: memref<1x20x4x4xbf16, #tpu.memory_space<vmem>>, %arg6: memref<8x4xbf16, #tpu.memory_space<vmem>>, %arg7: memref<4x16xbf16, #tpu.memory_space<vmem>>, %arg8: memref<1x8x16xi32, #tpu.memory_space<vmem>>, %arg9: memref<1x1x128xf32, #tpu.memory_space<vmem>>, %arg10: memref<1x1x128xf32, #tpu.memory_space<vmem>>, %arg11: memref<160x8xf32, #tpu.memory_space<vmem>>, %arg12: memref<160x4xf32, #tpu.memory_space<vmem>>, %arg13: memref<160x16xf32, #tpu.memory_space<vmem>>, %arg14: memref<8x16xf32, #tpu.memory_space<vmem>>, %arg15: memref<8x16xf32, #tpu.memory_space<vmem>>) attributes {dimension_semantics = [#tpu.dimension_semantics<parallel>, #tpu.dimension_semantics<arbitrary>], iteration_bounds = array<i64: 2, 2>, scalar_prefetch = 0 : i64, scratch_operands = 5 : i64, tpu.core_type = #tpu.core_type<tc>, window_params = [{transform_indices = @transform_0, window_bounds = array<i64: 1, 20, 8, 8>}, {transform_indices = @transform_1, window_bounds = array<i64: 8, 8>}, {pipeline_mode = #tpu.pipeline_mode<synchronous>, transform_indices = @transform_2, window_bounds = array<i64: 8, 16>}, {transform_indices = @transform_3, window_bounds = array<i64: 1, 20, 4, 4>}, {transform_indices = @transform_4, window_bounds = array<i64: 8, 4>}, {pipeline_mode = #tpu.pipeline_mode<synchronous>, transform_indices = @transform_5, window_bounds = array<i64: 4, 16>}, {transform_indices = @transform_6, window_bounds = array<i64: 1, 8, 16>}, {transform_indices = @transform_7, window_bounds = array<i64: 1, 1, 128>}, {transform_indices = @transform_8, window_bounds = array<i64: 1, 1, 128>}]} {
    %c0_i32 = arith.constant 0 : i32
    %0 = arith.cmpi eq, %arg1, %c0_i32 : i32
    %1 = arith.extui %0 : i1 to i32
    %c0_i32_0 = arith.constant 0 : i32
    %2 = arith.cmpi ne, %1, %c0_i32_0 : i32
    scf.if %2 {
      %cst_384 = arith.constant 0.000000e+00 : f32
      %565 = vector.broadcast %cst_384 : f32 to vector<8x16xf32>
      %c0_385 = arith.constant 0 : index
      %c0_386 = arith.constant 0 : index
      %566 = vector.load %arg14[%c0_385, %c0_386] : memref<8x16xf32, #tpu.memory_space<vmem>>, vector<8x16xf32>
      tpu.vector_store %arg14[%c0_385, %c0_386], %565 {strides = array<i32>} : memref<8x16xf32, #tpu.memory_space<vmem>>, vector<8x16xf32>,
      %cst_387 = arith.constant 0.000000e+00 : f32
      %567 = vector.broadcast %cst_387 : f32 to vector<8x16xf32>
      %c0_388 = arith.constant 0 : index
      %c0_389 = arith.constant 0 : index
      %568 = vector.load %arg15[%c0_388, %c0_389] : memref<8x16xf32, #tpu.memory_space<vmem>>, vector<8x16xf32>
      tpu.vector_store %arg15[%c0_388, %c0_389], %567 {strides = array<i32>} : memref<8x16xf32, #tpu.memory_space<vmem>>, vector<8x16xf32>,
    } else {
    }
    %c0 = arith.constant 0 : index
    %c0_1 = arith.constant 0 : index
    %c0_2 = arith.constant 0 : index
    %3 = vector.load %arg8[%c0, %c0_1, %c0_2] : memref<1x8x16xi32, #tpu.memory_space<vmem>>, vector<1x8x16xi32>
    %4 = vector.shape_cast %3 : vector<1x8x16xi32> to vector<8x16xi32>
    %c255_i32 = arith.constant 255 : i32
    %5 = vector.broadcast %c255_i32 : i32 to vector<8x16xi32>
    %6 = arith.cmpi ne, %4, %5 : vector<8x16xi32>
    %7 = arith.extui %6 : vector<8x16xi1> to vector<8x16xi32>
    %8 = arith.sitofp %7 : vector<8x16xi32> to vector<8x16xf32>
    %c0_3 = arith.constant 0 : index
    %c0_4 = arith.constant 0 : index
    %9 = vector.load %arg3[%c0_3, %c0_4] : memref<8x8xbf16, #tpu.memory_space<vmem>>, vector<8x8xbf16>
    %c0_5 = arith.constant 0 : index
    %c0_6 = arith.constant 0 : index
    %c0_7 = arith.constant 0 : index
    %c0_8 = arith.constant 0 : index
    %10 = vector.load %arg2[%c0_5, %c0_6, %c0_7, %c0_8] : memref<1x20x8x8xbf16, #tpu.memory_space<vmem>>, vector<1x1x8x8xbf16>
    %11 = vector.shape_cast %10 : vector<1x1x8x8xbf16> to vector<8x8xbf16>
    %cst = arith.constant dense<0.000000e+00> : vector<8x8xf32>
    %12 = tpu.matmul %9, %11, %cst {dimension_numbers = #tpu.dot_dimension_numbers<[1], [0], [0], [1], [0, 0, 1, 1], [], []>} : vector<8x8xbf16>, vector<8x8xbf16>, vector<8x8xf32> -> vector<8x8xf32>
    %c0_9 = arith.constant 0 : index
    %c0_10 = arith.constant 0 : index
    %13 = vector.load %arg11[%c0_9, %c0_10] : memref<160x8xf32, #tpu.memory_space<vmem>>, vector<8x8xf32>
    tpu.vector_store %arg11[%c0_9, %c0_10], %12 {strides = array<i32>} : memref<160x8xf32, #tpu.memory_space<vmem>>, vector<8x8xf32>,
    %c0_11 = arith.constant 0 : index
    %c1 = arith.constant 1 : index
    %c0_12 = arith.constant 0 : index
    %c0_13 = arith.constant 0 : index
    %14 = vector.load %arg2[%c0_11, %c1, %c0_12, %c0_13] : memref<1x20x8x8xbf16, #tpu.memory_space<vmem>>, vector<1x1x8x8xbf16>
    %15 = vector.shape_cast %14 : vector<1x1x8x8xbf16> to vector<8x8xbf16>
    %cst_14 = arith.constant dense<0.000000e+00> : vector<8x8xf32>
    %16 = tpu.matmul %9, %15, %cst_14 {dimension_numbers = #tpu.dot_dimension_numbers<[1], [0], [0], [1], [0, 0, 1, 1], [], []>} : vector<8x8xbf16>, vector<8x8xbf16>, vector<8x8xf32> -> vector<8x8xf32>
    %c8 = arith.constant 8 : index
    %c0_15 = arith.constant 0 : index
    %17 = vector.load %arg11[%c8, %c0_15] : memref<160x8xf32, #tpu.memory_space<vmem>>, vector<8x8xf32>
    tpu.vector_store %arg11[%c8, %c0_15], %16 {strides = array<i32>} : memref<160x8xf32, #tpu.memory_space<vmem>>, vector<8x8xf32>,
    %c0_16 = arith.constant 0 : index
    %c2 = arith.constant 2 : index
    %c0_17 = arith.constant 0 : index
    %c0_18 = arith.constant 0 : index
    %18 = vector.load %arg2[%c0_16, %c2, %c0_17, %c0_18] : memref<1x20x8x8xbf16, #tpu.memory_space<vmem>>, vector<1x1x8x8xbf16>
    %19 = vector.shape_cast %18 : vector<1x1x8x8xbf16> to vector<8x8xbf16>
    %cst_19 = arith.constant dense<0.000000e+00> : vector<8x8xf32>
    %20 = tpu.matmul %9, %19, %cst_19 {dimension_numbers = #tpu.dot_dimension_numbers<[1], [0], [0], [1], [0, 0, 1, 1], [], []>} : vector<8x8xbf16>, vector<8x8xbf16>, vector<8x8xf32> -> vector<8x8xf32>
    %c16 = arith.constant 16 : index
    %c0_20 = arith.constant 0 : index
    %21 = vector.load %arg11[%c16, %c0_20] : memref<160x8xf32, #tpu.memory_space<vmem>>, vector<8x8xf32>
    tpu.vector_store %arg11[%c16, %c0_20], %20 {strides = array<i32>} : memref<160x8xf32, #tpu.memory_space<vmem>>, vector<8x8xf32>,
    %c0_21 = arith.constant 0 : index
    %c3 = arith.constant 3 : index
    %c0_22 = arith.constant 0 : index
    %c0_23 = arith.constant 0 : index
    %22 = vector.load %arg2[%c0_21, %c3, %c0_22, %c0_23] : memref<1x20x8x8xbf16, #tpu.memory_space<vmem>>, vector<1x1x8x8xbf16>
    %23 = vector.shape_cast %22 : vector<1x1x8x8xbf16> to vector<8x8xbf16>
    %cst_24 = arith.constant dense<0.000000e+00> : vector<8x8xf32>
    %24 = tpu.matmul %9, %23, %cst_24 {dimension_numbers = #tpu.dot_dimension_numbers<[1], [0], [0], [1], [0, 0, 1, 1], [], []>} : vector<8x8xbf16>, vector<8x8xbf16>, vector<8x8xf32> -> vector<8x8xf32>
    %c24 = arith.constant 24 : index
    %c0_25 = arith.constant 0 : index
    %25 = vector.load %arg11[%c24, %c0_25] : memref<160x8xf32, #tpu.memory_space<vmem>>, vector<8x8xf32>
    tpu.vector_store %arg11[%c24, %c0_25], %24 {strides = array<i32>} : memref<160x8xf32, #tpu.memory_space<vmem>>, vector<8x8xf32>,
    %c0_26 = arith.constant 0 : index
    %c4 = arith.constant 4 : index
    %c0_27 = arith.constant 0 : index
    %c0_28 = arith.constant 0 : index
    %26 = vector.load %arg2[%c0_26, %c4, %c0_27, %c0_28] : memref<1x20x8x8xbf16, #tpu.memory_space<vmem>>, vector<1x1x8x8xbf16>
    %27 = vector.shape_cast %26 : vector<1x1x8x8xbf16> to vector<8x8xbf16>
    %cst_29 = arith.constant dense<0.000000e+00> : vector<8x8xf32>
    %28 = tpu.matmul %9, %27, %cst_29 {dimension_numbers = #tpu.dot_dimension_numbers<[1], [0], [0], [1], [0, 0, 1, 1], [], []>} : vector<8x8xbf16>, vector<8x8xbf16>, vector<8x8xf32> -> vector<8x8xf32>
    %c32 = arith.constant 32 : index
    %c0_30 = arith.constant 0 : index
    %29 = vector.load %arg11[%c32, %c0_30] : memref<160x8xf32, #tpu.memory_space<vmem>>, vector<8x8xf32>
    tpu.vector_store %arg11[%c32, %c0_30], %28 {strides = array<i32>} : memref<160x8xf32, #tpu.memory_space<vmem>>, vector<8x8xf32>,
    %c0_31 = arith.constant 0 : index
    %c5 = arith.constant 5 : index
    %c0_32 = arith.constant 0 : index
    %c0_33 = arith.constant 0 : index
    %30 = vector.load %arg2[%c0_31, %c5, %c0_32, %c0_33] : memref<1x20x8x8xbf16, #tpu.memory_space<vmem>>, vector<1x1x8x8xbf16>
    %31 = vector.shape_cast %30 : vector<1x1x8x8xbf16> to vector<8x8xbf16>
    %cst_34 = arith.constant dense<0.000000e+00> : vector<8x8xf32>
    %32 = tpu.matmul %9, %31, %cst_34 {dimension_numbers = #tpu.dot_dimension_numbers<[1], [0], [0], [1], [0, 0, 1, 1], [], []>} : vector<8x8xbf16>, vector<8x8xbf16>, vector<8x8xf32> -> vector<8x8xf32>
    %c40 = arith.constant 40 : index
    %c0_35 = arith.constant 0 : index
    %33 = vector.load %arg11[%c40, %c0_35] : memref<160x8xf32, #tpu.memory_space<vmem>>, vector<8x8xf32>
    tpu.vector_store %arg11[%c40, %c0_35], %32 {strides = array<i32>} : memref<160x8xf32, #tpu.memory_space<vmem>>, vector<8x8xf32>,
    %c0_36 = arith.constant 0 : index
    %c6 = arith.constant 6 : index
    %c0_37 = arith.constant 0 : index
    %c0_38 = arith.constant 0 : index
    %34 = vector.load %arg2[%c0_36, %c6, %c0_37, %c0_38] : memref<1x20x8x8xbf16, #tpu.memory_space<vmem>>, vector<1x1x8x8xbf16>
    %35 = vector.shape_cast %34 : vector<1x1x8x8xbf16> to vector<8x8xbf16>
    %cst_39 = arith.constant dense<0.000000e+00> : vector<8x8xf32>
    %36 = tpu.matmul %9, %35, %cst_39 {dimension_numbers = #tpu.dot_dimension_numbers<[1], [0], [0], [1], [0, 0, 1, 1], [], []>} : vector<8x8xbf16>, vector<8x8xbf16>, vector<8x8xf32> -> vector<8x8xf32>
    %c48 = arith.constant 48 : index
    %c0_40 = arith.constant 0 : index
    %37 = vector.load %arg11[%c48, %c0_40] : memref<160x8xf32, #tpu.memory_space<vmem>>, vector<8x8xf32>
    tpu.vector_store %arg11[%c48, %c0_40], %36 {strides = array<i32>} : memref<160x8xf32, #tpu.memory_space<vmem>>, vector<8x8xf32>,
    %c0_41 = arith.constant 0 : index
    %c7 = arith.constant 7 : index
    %c0_42 = arith.constant 0 : index
    %c0_43 = arith.constant 0 : index
    %38 = vector.load %arg2[%c0_41, %c7, %c0_42, %c0_43] : memref<1x20x8x8xbf16, #tpu.memory_space<vmem>>, vector<1x1x8x8xbf16>
    %39 = vector.shape_cast %38 : vector<1x1x8x8xbf16> to vector<8x8xbf16>
    %cst_44 = arith.constant dense<0.000000e+00> : vector<8x8xf32>
    %40 = tpu.matmul %9, %39, %cst_44 {dimension_numbers = #tpu.dot_dimension_numbers<[1], [0], [0], [1], [0, 0, 1, 1], [], []>} : vector<8x8xbf16>, vector<8x8xbf16>, vector<8x8xf32> -> vector<8x8xf32>
    %c56 = arith.constant 56 : index
    %c0_45 = arith.constant 0 : index
    %41 = vector.load %arg11[%c56, %c0_45] : memref<160x8xf32, #tpu.memory_space<vmem>>, vector<8x8xf32>
    tpu.vector_store %arg11[%c56, %c0_45], %40 {strides = array<i32>} : memref<160x8xf32, #tpu.memory_space<vmem>>, vector<8x8xf32>,
    %c0_46 = arith.constant 0 : index
    %c8_47 = arith.constant 8 : index
    %c0_48 = arith.constant 0 : index
    %c0_49 = arith.constant 0 : index
    %42 = vector.load %arg2[%c0_46, %c8_47, %c0_48, %c0_49] : memref<1x20x8x8xbf16, #tpu.memory_space<vmem>>, vector<1x1x8x8xbf16>
    %43 = vector.shape_cast %42 : vector<1x1x8x8xbf16> to vector<8x8xbf16>
    %cst_50 = arith.constant dense<0.000000e+00> : vector<8x8xf32>
    %44 = tpu.matmul %9, %43, %cst_50 {dimension_numbers = #tpu.dot_dimension_numbers<[1], [0], [0], [1], [0, 0, 1, 1], [], []>} : vector<8x8xbf16>, vector<8x8xbf16>, vector<8x8xf32> -> vector<8x8xf32>
    %c64 = arith.constant 64 : index
    %c0_51 = arith.constant 0 : index
    %45 = vector.load %arg11[%c64, %c0_51] : memref<160x8xf32, #tpu.memory_space<vmem>>, vector<8x8xf32>
    tpu.vector_store %arg11[%c64, %c0_51], %44 {strides = array<i32>} : memref<160x8xf32, #tpu.memory_space<vmem>>, vector<8x8xf32>,
    %c0_52 = arith.constant 0 : index
    %c9 = arith.constant 9 : index
    %c0_53 = arith.constant 0 : index
    %c0_54 = arith.constant 0 : index
    %46 = vector.load %arg2[%c0_52, %c9, %c0_53, %c0_54] : memref<1x20x8x8xbf16, #tpu.memory_space<vmem>>, vector<1x1x8x8xbf16>
    %47 = vector.shape_cast %46 : vector<1x1x8x8xbf16> to vector<8x8xbf16>
    %cst_55 = arith.constant dense<0.000000e+00> : vector<8x8xf32>
    %48 = tpu.matmul %9, %47, %cst_55 {dimension_numbers = #tpu.dot_dimension_numbers<[1], [0], [0], [1], [0, 0, 1, 1], [], []>} : vector<8x8xbf16>, vector<8x8xbf16>, vector<8x8xf32> -> vector<8x8xf32>
    %c72 = arith.constant 72 : index
    %c0_56 = arith.constant 0 : index
    %49 = vector.load %arg11[%c72, %c0_56] : memref<160x8xf32, #tpu.memory_space<vmem>>, vector<8x8xf32>
    tpu.vector_store %arg11[%c72, %c0_56], %48 {strides = array<i32>} : memref<160x8xf32, #tpu.memory_space<vmem>>, vector<8x8xf32>,
    %c0_57 = arith.constant 0 : index
    %c10 = arith.constant 10 : index
    %c0_58 = arith.constant 0 : index
    %c0_59 = arith.constant 0 : index
    %50 = vector.load %arg2[%c0_57, %c10, %c0_58, %c0_59] : memref<1x20x8x8xbf16, #tpu.memory_space<vmem>>, vector<1x1x8x8xbf16>
    %51 = vector.shape_cast %50 : vector<1x1x8x8xbf16> to vector<8x8xbf16>
    %cst_60 = arith.constant dense<0.000000e+00> : vector<8x8xf32>
    %52 = tpu.matmul %9, %51, %cst_60 {dimension_numbers = #tpu.dot_dimension_numbers<[1], [0], [0], [1], [0, 0, 1, 1], [], []>} : vector<8x8xbf16>, vector<8x8xbf16>, vector<8x8xf32> -> vector<8x8xf32>
    %c80 = arith.constant 80 : index
    %c0_61 = arith.constant 0 : index
    %53 = vector.load %arg11[%c80, %c0_61] : memref<160x8xf32, #tpu.memory_space<vmem>>, vector<8x8xf32>
    tpu.vector_store %arg11[%c80, %c0_61], %52 {strides = array<i32>} : memref<160x8xf32, #tpu.memory_space<vmem>>, vector<8x8xf32>,
    %c0_62 = arith.constant 0 : index
    %c11 = arith.constant 11 : index
    %c0_63 = arith.constant 0 : index
    %c0_64 = arith.constant 0 : index
    %54 = vector.load %arg2[%c0_62, %c11, %c0_63, %c0_64] : memref<1x20x8x8xbf16, #tpu.memory_space<vmem>>, vector<1x1x8x8xbf16>
    %55 = vector.shape_cast %54 : vector<1x1x8x8xbf16> to vector<8x8xbf16>
    %cst_65 = arith.constant dense<0.000000e+00> : vector<8x8xf32>
    %56 = tpu.matmul %9, %55, %cst_65 {dimension_numbers = #tpu.dot_dimension_numbers<[1], [0], [0], [1], [0, 0, 1, 1], [], []>} : vector<8x8xbf16>, vector<8x8xbf16>, vector<8x8xf32> -> vector<8x8xf32>
    %c88 = arith.constant 88 : index
    %c0_66 = arith.constant 0 : index
    %57 = vector.load %arg11[%c88, %c0_66] : memref<160x8xf32, #tpu.memory_space<vmem>>, vector<8x8xf32>
    tpu.vector_store %arg11[%c88, %c0_66], %56 {strides = array<i32>} : memref<160x8xf32, #tpu.memory_space<vmem>>, vector<8x8xf32>,
    %c0_67 = arith.constant 0 : index
    %c12 = arith.constant 12 : index
    %c0_68 = arith.constant 0 : index
    %c0_69 = arith.constant 0 : index
    %58 = vector.load %arg2[%c0_67, %c12, %c0_68, %c0_69] : memref<1x20x8x8xbf16, #tpu.memory_space<vmem>>, vector<1x1x8x8xbf16>
    %59 = vector.shape_cast %58 : vector<1x1x8x8xbf16> to vector<8x8xbf16>
    %cst_70 = arith.constant dense<0.000000e+00> : vector<8x8xf32>
    %60 = tpu.matmul %9, %59, %cst_70 {dimension_numbers = #tpu.dot_dimension_numbers<[1], [0], [0], [1], [0, 0, 1, 1], [], []>} : vector<8x8xbf16>, vector<8x8xbf16>, vector<8x8xf32> -> vector<8x8xf32>
    %c96 = arith.constant 96 : index
    %c0_71 = arith.constant 0 : index
    %61 = vector.load %arg11[%c96, %c0_71] : memref<160x8xf32, #tpu.memory_space<vmem>>, vector<8x8xf32>
    tpu.vector_store %arg11[%c96, %c0_71], %60 {strides = array<i32>} : memref<160x8xf32, #tpu.memory_space<vmem>>, vector<8x8xf32>,
    %c0_72 = arith.constant 0 : index
    %c13 = arith.constant 13 : index
    %c0_73 = arith.constant 0 : index
    %c0_74 = arith.constant 0 : index
    %62 = vector.load %arg2[%c0_72, %c13, %c0_73, %c0_74] : memref<1x20x8x8xbf16, #tpu.memory_space<vmem>>, vector<1x1x8x8xbf16>
    %63 = vector.shape_cast %62 : vector<1x1x8x8xbf16> to vector<8x8xbf16>
    %cst_75 = arith.constant dense<0.000000e+00> : vector<8x8xf32>
    %64 = tpu.matmul %9, %63, %cst_75 {dimension_numbers = #tpu.dot_dimension_numbers<[1], [0], [0], [1], [0, 0, 1, 1], [], []>} : vector<8x8xbf16>, vector<8x8xbf16>, vector<8x8xf32> -> vector<8x8xf32>
    %c104 = arith.constant 104 : index
    %c0_76 = arith.constant 0 : index
    %65 = vector.load %arg11[%c104, %c0_76] : memref<160x8xf32, #tpu.memory_space<vmem>>, vector<8x8xf32>
    tpu.vector_store %arg11[%c104, %c0_76], %64 {strides = array<i32>} : memref<160x8xf32, #tpu.memory_space<vmem>>, vector<8x8xf32>,
    %c0_77 = arith.constant 0 : index
    %c14 = arith.constant 14 : index
    %c0_78 = arith.constant 0 : index
    %c0_79 = arith.constant 0 : index
    %66 = vector.load %arg2[%c0_77, %c14, %c0_78, %c0_79] : memref<1x20x8x8xbf16, #tpu.memory_space<vmem>>, vector<1x1x8x8xbf16>
    %67 = vector.shape_cast %66 : vector<1x1x8x8xbf16> to vector<8x8xbf16>
    %cst_80 = arith.constant dense<0.000000e+00> : vector<8x8xf32>
    %68 = tpu.matmul %9, %67, %cst_80 {dimension_numbers = #tpu.dot_dimension_numbers<[1], [0], [0], [1], [0, 0, 1, 1], [], []>} : vector<8x8xbf16>, vector<8x8xbf16>, vector<8x8xf32> -> vector<8x8xf32>
    %c112 = arith.constant 112 : index
    %c0_81 = arith.constant 0 : index
    %69 = vector.load %arg11[%c112, %c0_81] : memref<160x8xf32, #tpu.memory_space<vmem>>, vector<8x8xf32>
    tpu.vector_store %arg11[%c112, %c0_81], %68 {strides = array<i32>} : memref<160x8xf32, #tpu.memory_space<vmem>>, vector<8x8xf32>,
    %c0_82 = arith.constant 0 : index
    %c15 = arith.constant 15 : index
    %c0_83 = arith.constant 0 : index
    %c0_84 = arith.constant 0 : index
    %70 = vector.load %arg2[%c0_82, %c15, %c0_83, %c0_84] : memref<1x20x8x8xbf16, #tpu.memory_space<vmem>>, vector<1x1x8x8xbf16>
    %71 = vector.shape_cast %70 : vector<1x1x8x8xbf16> to vector<8x8xbf16>
    %cst_85 = arith.constant dense<0.000000e+00> : vector<8x8xf32>
    %72 = tpu.matmul %9, %71, %cst_85 {dimension_numbers = #tpu.dot_dimension_numbers<[1], [0], [0], [1], [0, 0, 1, 1], [], []>} : vector<8x8xbf16>, vector<8x8xbf16>, vector<8x8xf32> -> vector<8x8xf32>
    %c120 = arith.constant 120 : index
    %c0_86 = arith.constant 0 : index
    %73 = vector.load %arg11[%c120, %c0_86] : memref<160x8xf32, #tpu.memory_space<vmem>>, vector<8x8xf32>
    tpu.vector_store %arg11[%c120, %c0_86], %72 {strides = array<i32>} : memref<160x8xf32, #tpu.memory_space<vmem>>, vector<8x8xf32>,
    %c0_87 = arith.constant 0 : index
    %c16_88 = arith.constant 16 : index
    %c0_89 = arith.constant 0 : index
    %c0_90 = arith.constant 0 : index
    %74 = vector.load %arg2[%c0_87, %c16_88, %c0_89, %c0_90] : memref<1x20x8x8xbf16, #tpu.memory_space<vmem>>, vector<1x1x8x8xbf16>
    %75 = vector.shape_cast %74 : vector<1x1x8x8xbf16> to vector<8x8xbf16>
    %cst_91 = arith.constant dense<0.000000e+00> : vector<8x8xf32>
    %76 = tpu.matmul %9, %75, %cst_91 {dimension_numbers = #tpu.dot_dimension_numbers<[1], [0], [0], [1], [0, 0, 1, 1], [], []>} : vector<8x8xbf16>, vector<8x8xbf16>, vector<8x8xf32> -> vector<8x8xf32>
    %c128 = arith.constant 128 : index
    %c0_92 = arith.constant 0 : index
    %77 = vector.load %arg11[%c128, %c0_92] : memref<160x8xf32, #tpu.memory_space<vmem>>, vector<8x8xf32>
    tpu.vector_store %arg11[%c128, %c0_92], %76 {strides = array<i32>} : memref<160x8xf32, #tpu.memory_space<vmem>>, vector<8x8xf32>,
    %c0_93 = arith.constant 0 : index
    %c17 = arith.constant 17 : index
    %c0_94 = arith.constant 0 : index
    %c0_95 = arith.constant 0 : index
    %78 = vector.load %arg2[%c0_93, %c17, %c0_94, %c0_95] : memref<1x20x8x8xbf16, #tpu.memory_space<vmem>>, vector<1x1x8x8xbf16>
    %79 = vector.shape_cast %78 : vector<1x1x8x8xbf16> to vector<8x8xbf16>
    %cst_96 = arith.constant dense<0.000000e+00> : vector<8x8xf32>
    %80 = tpu.matmul %9, %79, %cst_96 {dimension_numbers = #tpu.dot_dimension_numbers<[1], [0], [0], [1], [0, 0, 1, 1], [], []>} : vector<8x8xbf16>, vector<8x8xbf16>, vector<8x8xf32> -> vector<8x8xf32>
    %c136 = arith.constant 136 : index
    %c0_97 = arith.constant 0 : index
    %81 = vector.load %arg11[%c136, %c0_97] : memref<160x8xf32, #tpu.memory_space<vmem>>, vector<8x8xf32>
    tpu.vector_store %arg11[%c136, %c0_97], %80 {strides = array<i32>} : memref<160x8xf32, #tpu.memory_space<vmem>>, vector<8x8xf32>,
    %c0_98 = arith.constant 0 : index
    %c18 = arith.constant 18 : index
    %c0_99 = arith.constant 0 : index
    %c0_100 = arith.constant 0 : index
    %82 = vector.load %arg2[%c0_98, %c18, %c0_99, %c0_100] : memref<1x20x8x8xbf16, #tpu.memory_space<vmem>>, vector<1x1x8x8xbf16>
    %83 = vector.shape_cast %82 : vector<1x1x8x8xbf16> to vector<8x8xbf16>
    %cst_101 = arith.constant dense<0.000000e+00> : vector<8x8xf32>
    %84 = tpu.matmul %9, %83, %cst_101 {dimension_numbers = #tpu.dot_dimension_numbers<[1], [0], [0], [1], [0, 0, 1, 1], [], []>} : vector<8x8xbf16>, vector<8x8xbf16>, vector<8x8xf32> -> vector<8x8xf32>
    %c144 = arith.constant 144 : index
    %c0_102 = arith.constant 0 : index
    %85 = vector.load %arg11[%c144, %c0_102] : memref<160x8xf32, #tpu.memory_space<vmem>>, vector<8x8xf32>
    tpu.vector_store %arg11[%c144, %c0_102], %84 {strides = array<i32>} : memref<160x8xf32, #tpu.memory_space<vmem>>, vector<8x8xf32>,
    %c0_103 = arith.constant 0 : index
    %c19 = arith.constant 19 : index
    %c0_104 = arith.constant 0 : index
    %c0_105 = arith.constant 0 : index
    %86 = vector.load %arg2[%c0_103, %c19, %c0_104, %c0_105] : memref<1x20x8x8xbf16, #tpu.memory_space<vmem>>, vector<1x1x8x8xbf16>
    %87 = vector.shape_cast %86 : vector<1x1x8x8xbf16> to vector<8x8xbf16>
    %cst_106 = arith.constant dense<0.000000e+00> : vector<8x8xf32>
    %88 = tpu.matmul %9, %87, %cst_106 {dimension_numbers = #tpu.dot_dimension_numbers<[1], [0], [0], [1], [0, 0, 1, 1], [], []>} : vector<8x8xbf16>, vector<8x8xbf16>, vector<8x8xf32> -> vector<8x8xf32>
    %c152 = arith.constant 152 : index
    %c0_107 = arith.constant 0 : index
    %89 = vector.load %arg11[%c152, %c0_107] : memref<160x8xf32, #tpu.memory_space<vmem>>, vector<8x8xf32>
    tpu.vector_store %arg11[%c152, %c0_107], %88 {strides = array<i32>} : memref<160x8xf32, #tpu.memory_space<vmem>>, vector<8x8xf32>,
    %c0_108 = arith.constant 0 : index
    %c0_109 = arith.constant 0 : index
    %90 = vector.load %arg11[%c0_108, %c0_109] : memref<160x8xf32, #tpu.memory_space<vmem>>, vector<160x8xf32>
    %91 = arith.truncf %90 : vector<160x8xf32> to vector<160x8xbf16>
    %c0_110 = arith.constant 0 : index
    %c0_111 = arith.constant 0 : index
    %92 = vector.load %arg4[%c0_110, %c0_111] : memref<8x16xbf16, #tpu.memory_space<vmem>>, vector<8x16xbf16>
    %cst_112 = arith.constant dense<0.000000e+00> : vector<160x16xf32>
    %93 = tpu.matmul %91, %92, %cst_112 {dimension_numbers = #tpu.dot_dimension_numbers<[1], [0], [0], [1], [0, 0, 1, 1], [], []>} : vector<160x8xbf16>, vector<8x16xbf16>, vector<160x16xf32> -> vector<160x16xf32>
    %c0_113 = arith.constant 0 : index
    %c0_114 = arith.constant 0 : index
    %94 = vector.load %arg13[%c0_113, %c0_114] : memref<160x16xf32, #tpu.memory_space<vmem>>, vector<160x16xf32>
    tpu.vector_store %arg13[%c0_113, %c0_114], %93 {strides = array<i32>} : memref<160x16xf32, #tpu.memory_space<vmem>>, vector<160x16xf32>,
    %95 = vector.extract_strided_slice %93 {offsets = [0, 0], sizes = [8, 16], strides = [1, 1]} : vector<160x16xf32> to vector<8x16xf32>
    %96 = vector.extract_strided_slice %93 {offsets = [8, 0], sizes = [8, 16], strides = [1, 1]} : vector<160x16xf32> to vector<8x16xf32>
    %97 = arith.maximumf %95, %96 : vector<8x16xf32>
    %98 = vector.extract_strided_slice %93 {offsets = [16, 0], sizes = [8, 16], strides = [1, 1]} : vector<160x16xf32> to vector<8x16xf32>
    %99 = arith.maximumf %97, %98 : vector<8x16xf32>
    %100 = vector.extract_strided_slice %93 {offsets = [24, 0], sizes = [8, 16], strides = [1, 1]} : vector<160x16xf32> to vector<8x16xf32>
    %101 = arith.maximumf %99, %100 : vector<8x16xf32>
    %102 = vector.extract_strided_slice %93 {offsets = [32, 0], sizes = [8, 16], strides = [1, 1]} : vector<160x16xf32> to vector<8x16xf32>
    %103 = arith.maximumf %101, %102 : vector<8x16xf32>
    %104 = vector.extract_strided_slice %93 {offsets = [40, 0], sizes = [8, 16], strides = [1, 1]} : vector<160x16xf32> to vector<8x16xf32>
    %105 = arith.maximumf %103, %104 : vector<8x16xf32>
    %106 = vector.extract_strided_slice %93 {offsets = [48, 0], sizes = [8, 16], strides = [1, 1]} : vector<160x16xf32> to vector<8x16xf32>
    %107 = arith.maximumf %105, %106 : vector<8x16xf32>
    %108 = vector.extract_strided_slice %93 {offsets = [56, 0], sizes = [8, 16], strides = [1, 1]} : vector<160x16xf32> to vector<8x16xf32>
    %109 = arith.maximumf %107, %108 : vector<8x16xf32>
    %110 = vector.extract_strided_slice %93 {offsets = [64, 0], sizes = [8, 16], strides = [1, 1]} : vector<160x16xf32> to vector<8x16xf32>
    %111 = arith.maximumf %109, %110 : vector<8x16xf32>
    %112 = vector.extract_strided_slice %93 {offsets = [72, 0], sizes = [8, 16], strides = [1, 1]} : vector<160x16xf32> to vector<8x16xf32>
    %113 = arith.maximumf %111, %112 : vector<8x16xf32>
    %114 = vector.extract_strided_slice %93 {offsets = [80, 0], sizes = [8, 16], strides = [1, 1]} : vector<160x16xf32> to vector<8x16xf32>
    %115 = arith.maximumf %113, %114 : vector<8x16xf32>
    %116 = vector.extract_strided_slice %93 {offsets = [88, 0], sizes = [8, 16], strides = [1, 1]} : vector<160x16xf32> to vector<8x16xf32>
    %117 = arith.maximumf %115, %116 : vector<8x16xf32>
    %118 = vector.extract_strided_slice %93 {offsets = [96, 0], sizes = [8, 16], strides = [1, 1]} : vector<160x16xf32> to vector<8x16xf32>
    %119 = arith.maximumf %117, %118 : vector<8x16xf32>
    %120 = vector.extract_strided_slice %93 {offsets = [104, 0], sizes = [8, 16], strides = [1, 1]} : vector<160x16xf32> to vector<8x16xf32>
    %121 = arith.maximumf %119, %120 : vector<8x16xf32>
    %122 = vector.extract_strided_slice %93 {offsets = [112, 0], sizes = [8, 16], strides = [1, 1]} : vector<160x16xf32> to vector<8x16xf32>
    %123 = arith.maximumf %121, %122 : vector<8x16xf32>
    %124 = vector.extract_strided_slice %93 {offsets = [120, 0], sizes = [8, 16], strides = [1, 1]} : vector<160x16xf32> to vector<8x16xf32>
    %125 = arith.maximumf %123, %124 : vector<8x16xf32>
    %126 = vector.extract_strided_slice %93 {offsets = [128, 0], sizes = [8, 16], strides = [1, 1]} : vector<160x16xf32> to vector<8x16xf32>
    %127 = arith.maximumf %125, %126 : vector<8x16xf32>
    %128 = vector.extract_strided_slice %93 {offsets = [136, 0], sizes = [8, 16], strides = [1, 1]} : vector<160x16xf32> to vector<8x16xf32>
    %129 = arith.maximumf %127, %128 : vector<8x16xf32>
    %130 = vector.extract_strided_slice %93 {offsets = [144, 0], sizes = [8, 16], strides = [1, 1]} : vector<160x16xf32> to vector<8x16xf32>
    %131 = arith.maximumf %129, %130 : vector<8x16xf32>
    %132 = vector.extract_strided_slice %93 {offsets = [152, 0], sizes = [8, 16], strides = [1, 1]} : vector<160x16xf32> to vector<8x16xf32>
    %133 = arith.maximumf %131, %132 : vector<8x16xf32>
    %cst_115 = arith.constant 0.000000e+00 : f32
    %134 = vector.broadcast %cst_115 : f32 to vector<8x16xf32>
    %cst_116 = arith.constant 0.000000e+00 : f32
    %135 = vector.broadcast %cst_116 : f32 to vector<8x16xf32>
    %c0_117 = arith.constant 0 : index
    %c0_118 = arith.constant 0 : index
    %136 = vector.load %arg13[%c0_117, %c0_118] : memref<160x16xf32, #tpu.memory_space<vmem>>, vector<8x16xf32>
    %137 = arith.subf %136, %133 : vector<8x16xf32>
    %138 = math.exp %137 : vector<8x16xf32>
    %139 = arith.addf %134, %138 : vector<8x16xf32>
    %c0_i32_119 = arith.constant 0 : i32
    %140 = vector.broadcast %c0_i32_119 : i32 to vector<8x16xi32>
    %141 = arith.cmpi eq, %4, %140 : vector<8x16xi32>
    %142 = arith.select %141, %136, %135 : vector<8x16xi1>, vector<8x16xf32>
    %c8_120 = arith.constant 8 : index
    %c0_121 = arith.constant 0 : index
    %143 = vector.load %arg13[%c8_120, %c0_121] : memref<160x16xf32, #tpu.memory_space<vmem>>, vector<8x16xf32>
    %144 = arith.subf %143, %133 : vector<8x16xf32>
    %145 = math.exp %144 : vector<8x16xf32>
    %146 = arith.addf %139, %145 : vector<8x16xf32>
    %c1_i32 = arith.constant 1 : i32
    %147 = vector.broadcast %c1_i32 : i32 to vector<8x16xi32>
    %148 = arith.cmpi eq, %4, %147 : vector<8x16xi32>
    %149 = arith.select %148, %143, %142 : vector<8x16xi1>, vector<8x16xf32>
    %c16_122 = arith.constant 16 : index
    %c0_123 = arith.constant 0 : index
    %150 = vector.load %arg13[%c16_122, %c0_123] : memref<160x16xf32, #tpu.memory_space<vmem>>, vector<8x16xf32>
    %151 = arith.subf %150, %133 : vector<8x16xf32>
    %152 = math.exp %151 : vector<8x16xf32>
    %153 = arith.addf %146, %152 : vector<8x16xf32>
    %c2_i32 = arith.constant 2 : i32
    %154 = vector.broadcast %c2_i32 : i32 to vector<8x16xi32>
    %155 = arith.cmpi eq, %4, %154 : vector<8x16xi32>
    %156 = arith.select %155, %150, %149 : vector<8x16xi1>, vector<8x16xf32>
    %c24_124 = arith.constant 24 : index
    %c0_125 = arith.constant 0 : index
    %157 = vector.load %arg13[%c24_124, %c0_125] : memref<160x16xf32, #tpu.memory_space<vmem>>, vector<8x16xf32>
    %158 = arith.subf %157, %133 : vector<8x16xf32>
    %159 = math.exp %158 : vector<8x16xf32>
    %160 = arith.addf %153, %159 : vector<8x16xf32>
    %c3_i32 = arith.constant 3 : i32
    %161 = vector.broadcast %c3_i32 : i32 to vector<8x16xi32>
    %162 = arith.cmpi eq, %4, %161 : vector<8x16xi32>
    %163 = arith.select %162, %157, %156 : vector<8x16xi1>, vector<8x16xf32>
    %c32_126 = arith.constant 32 : index
    %c0_127 = arith.constant 0 : index
    %164 = vector.load %arg13[%c32_126, %c0_127] : memref<160x16xf32, #tpu.memory_space<vmem>>, vector<8x16xf32>
    %165 = arith.subf %164, %133 : vector<8x16xf32>
    %166 = math.exp %165 : vector<8x16xf32>
    %167 = arith.addf %160, %166 : vector<8x16xf32>
    %c4_i32 = arith.constant 4 : i32
    %168 = vector.broadcast %c4_i32 : i32 to vector<8x16xi32>
    %169 = arith.cmpi eq, %4, %168 : vector<8x16xi32>
    %170 = arith.select %169, %164, %163 : vector<8x16xi1>, vector<8x16xf32>
    %c40_128 = arith.constant 40 : index
    %c0_129 = arith.constant 0 : index
    %171 = vector.load %arg13[%c40_128, %c0_129] : memref<160x16xf32, #tpu.memory_space<vmem>>, vector<8x16xf32>
    %172 = arith.subf %171, %133 : vector<8x16xf32>
    %173 = math.exp %172 : vector<8x16xf32>
    %174 = arith.addf %167, %173 : vector<8x16xf32>
    %c5_i32 = arith.constant 5 : i32
    %175 = vector.broadcast %c5_i32 : i32 to vector<8x16xi32>
    %176 = arith.cmpi eq, %4, %175 : vector<8x16xi32>
    %177 = arith.select %176, %171, %170 : vector<8x16xi1>, vector<8x16xf32>
    %c48_130 = arith.constant 48 : index
    %c0_131 = arith.constant 0 : index
    %178 = vector.load %arg13[%c48_130, %c0_131] : memref<160x16xf32, #tpu.memory_space<vmem>>, vector<8x16xf32>
    %179 = arith.subf %178, %133 : vector<8x16xf32>
    %180 = math.exp %179 : vector<8x16xf32>
    %181 = arith.addf %174, %180 : vector<8x16xf32>
    %c6_i32 = arith.constant 6 : i32
    %182 = vector.broadcast %c6_i32 : i32 to vector<8x16xi32>
    %183 = arith.cmpi eq, %4, %182 : vector<8x16xi32>
    %184 = arith.select %183, %178, %177 : vector<8x16xi1>, vector<8x16xf32>
    %c56_132 = arith.constant 56 : index
    %c0_133 = arith.constant 0 : index
    %185 = vector.load %arg13[%c56_132, %c0_133] : memref<160x16xf32, #tpu.memory_space<vmem>>, vector<8x16xf32>
    %186 = arith.subf %185, %133 : vector<8x16xf32>
    %187 = math.exp %186 : vector<8x16xf32>
    %188 = arith.addf %181, %187 : vector<8x16xf32>
    %c7_i32 = arith.constant 7 : i32
    %189 = vector.broadcast %c7_i32 : i32 to vector<8x16xi32>
    %190 = arith.cmpi eq, %4, %189 : vector<8x16xi32>
    %191 = arith.select %190, %185, %184 : vector<8x16xi1>, vector<8x16xf32>
    %c64_134 = arith.constant 64 : index
    %c0_135 = arith.constant 0 : index
    %192 = vector.load %arg13[%c64_134, %c0_135] : memref<160x16xf32, #tpu.memory_space<vmem>>, vector<8x16xf32>
    %193 = arith.subf %192, %133 : vector<8x16xf32>
    %194 = math.exp %193 : vector<8x16xf32>
    %195 = arith.addf %188, %194 : vector<8x16xf32>
    %c8_i32 = arith.constant 8 : i32
    %196 = vector.broadcast %c8_i32 : i32 to vector<8x16xi32>
    %197 = arith.cmpi eq, %4, %196 : vector<8x16xi32>
    %198 = arith.select %197, %192, %191 : vector<8x16xi1>, vector<8x16xf32>
    %c72_136 = arith.constant 72 : index
    %c0_137 = arith.constant 0 : index
    %199 = vector.load %arg13[%c72_136, %c0_137] : memref<160x16xf32, #tpu.memory_space<vmem>>, vector<8x16xf32>
    %200 = arith.subf %199, %133 : vector<8x16xf32>
    %201 = math.exp %200 : vector<8x16xf32>
    %202 = arith.addf %195, %201 : vector<8x16xf32>
    %c9_i32 = arith.constant 9 : i32
    %203 = vector.broadcast %c9_i32 : i32 to vector<8x16xi32>
    %204 = arith.cmpi eq, %4, %203 : vector<8x16xi32>
    %205 = arith.select %204, %199, %198 : vector<8x16xi1>, vector<8x16xf32>
    %c80_138 = arith.constant 80 : index
    %c0_139 = arith.constant 0 : index
    %206 = vector.load %arg13[%c80_138, %c0_139] : memref<160x16xf32, #tpu.memory_space<vmem>>, vector<8x16xf32>
    %207 = arith.subf %206, %133 : vector<8x16xf32>
    %208 = math.exp %207 : vector<8x16xf32>
    %209 = arith.addf %202, %208 : vector<8x16xf32>
    %c10_i32 = arith.constant 10 : i32
    %210 = vector.broadcast %c10_i32 : i32 to vector<8x16xi32>
    %211 = arith.cmpi eq, %4, %210 : vector<8x16xi32>
    %212 = arith.select %211, %206, %205 : vector<8x16xi1>, vector<8x16xf32>
    %c88_140 = arith.constant 88 : index
    %c0_141 = arith.constant 0 : index
    %213 = vector.load %arg13[%c88_140, %c0_141] : memref<160x16xf32, #tpu.memory_space<vmem>>, vector<8x16xf32>
    %214 = arith.subf %213, %133 : vector<8x16xf32>
    %215 = math.exp %214 : vector<8x16xf32>
    %216 = arith.addf %209, %215 : vector<8x16xf32>
    %c11_i32 = arith.constant 11 : i32
    %217 = vector.broadcast %c11_i32 : i32 to vector<8x16xi32>
    %218 = arith.cmpi eq, %4, %217 : vector<8x16xi32>
    %219 = arith.select %218, %213, %212 : vector<8x16xi1>, vector<8x16xf32>
    %c96_142 = arith.constant 96 : index
    %c0_143 = arith.constant 0 : index
    %220 = vector.load %arg13[%c96_142, %c0_143] : memref<160x16xf32, #tpu.memory_space<vmem>>, vector<8x16xf32>
    %221 = arith.subf %220, %133 : vector<8x16xf32>
    %222 = math.exp %221 : vector<8x16xf32>
    %223 = arith.addf %216, %222 : vector<8x16xf32>
    %c12_i32 = arith.constant 12 : i32
    %224 = vector.broadcast %c12_i32 : i32 to vector<8x16xi32>
    %225 = arith.cmpi eq, %4, %224 : vector<8x16xi32>
    %226 = arith.select %225, %220, %219 : vector<8x16xi1>, vector<8x16xf32>
    %c104_144 = arith.constant 104 : index
    %c0_145 = arith.constant 0 : index
    %227 = vector.load %arg13[%c104_144, %c0_145] : memref<160x16xf32, #tpu.memory_space<vmem>>, vector<8x16xf32>
    %228 = arith.subf %227, %133 : vector<8x16xf32>
    %229 = math.exp %228 : vector<8x16xf32>
    %230 = arith.addf %223, %229 : vector<8x16xf32>
    %c13_i32 = arith.constant 13 : i32
    %231 = vector.broadcast %c13_i32 : i32 to vector<8x16xi32>
    %232 = arith.cmpi eq, %4, %231 : vector<8x16xi32>
    %233 = arith.select %232, %227, %226 : vector<8x16xi1>, vector<8x16xf32>
    %c112_146 = arith.constant 112 : index
    %c0_147 = arith.constant 0 : index
    %234 = vector.load %arg13[%c112_146, %c0_147] : memref<160x16xf32, #tpu.memory_space<vmem>>, vector<8x16xf32>
    %235 = arith.subf %234, %133 : vector<8x16xf32>
    %236 = math.exp %235 : vector<8x16xf32>
    %237 = arith.addf %230, %236 : vector<8x16xf32>
    %c14_i32 = arith.constant 14 : i32
    %238 = vector.broadcast %c14_i32 : i32 to vector<8x16xi32>
    %239 = arith.cmpi eq, %4, %238 : vector<8x16xi32>
    %240 = arith.select %239, %234, %233 : vector<8x16xi1>, vector<8x16xf32>
    %c120_148 = arith.constant 120 : index
    %c0_149 = arith.constant 0 : index
    %241 = vector.load %arg13[%c120_148, %c0_149] : memref<160x16xf32, #tpu.memory_space<vmem>>, vector<8x16xf32>
    %242 = arith.subf %241, %133 : vector<8x16xf32>
    %243 = math.exp %242 : vector<8x16xf32>
    %244 = arith.addf %237, %243 : vector<8x16xf32>
    %c15_i32 = arith.constant 15 : i32
    %245 = vector.broadcast %c15_i32 : i32 to vector<8x16xi32>
    %246 = arith.cmpi eq, %4, %245 : vector<8x16xi32>
    %247 = arith.select %246, %241, %240 : vector<8x16xi1>, vector<8x16xf32>
    %c128_150 = arith.constant 128 : index
    %c0_151 = arith.constant 0 : index
    %248 = vector.load %arg13[%c128_150, %c0_151] : memref<160x16xf32, #tpu.memory_space<vmem>>, vector<8x16xf32>
    %249 = arith.subf %248, %133 : vector<8x16xf32>
    %250 = math.exp %249 : vector<8x16xf32>
    %251 = arith.addf %244, %250 : vector<8x16xf32>
    %c16_i32 = arith.constant 16 : i32
    %252 = vector.broadcast %c16_i32 : i32 to vector<8x16xi32>
    %253 = arith.cmpi eq, %4, %252 : vector<8x16xi32>
    %254 = arith.select %253, %248, %247 : vector<8x16xi1>, vector<8x16xf32>
    %c136_152 = arith.constant 136 : index
    %c0_153 = arith.constant 0 : index
    %255 = vector.load %arg13[%c136_152, %c0_153] : memref<160x16xf32, #tpu.memory_space<vmem>>, vector<8x16xf32>
    %256 = arith.subf %255, %133 : vector<8x16xf32>
    %257 = math.exp %256 : vector<8x16xf32>
    %258 = arith.addf %251, %257 : vector<8x16xf32>
    %c17_i32 = arith.constant 17 : i32
    %259 = vector.broadcast %c17_i32 : i32 to vector<8x16xi32>
    %260 = arith.cmpi eq, %4, %259 : vector<8x16xi32>
    %261 = arith.select %260, %255, %254 : vector<8x16xi1>, vector<8x16xf32>
    %c144_154 = arith.constant 144 : index
    %c0_155 = arith.constant 0 : index
    %262 = vector.load %arg13[%c144_154, %c0_155] : memref<160x16xf32, #tpu.memory_space<vmem>>, vector<8x16xf32>
    %263 = arith.subf %262, %133 : vector<8x16xf32>
    %264 = math.exp %263 : vector<8x16xf32>
    %265 = arith.addf %258, %264 : vector<8x16xf32>
    %c18_i32 = arith.constant 18 : i32
    %266 = vector.broadcast %c18_i32 : i32 to vector<8x16xi32>
    %267 = arith.cmpi eq, %4, %266 : vector<8x16xi32>
    %268 = arith.select %267, %262, %261 : vector<8x16xi1>, vector<8x16xf32>
    %c152_156 = arith.constant 152 : index
    %c0_157 = arith.constant 0 : index
    %269 = vector.load %arg13[%c152_156, %c0_157] : memref<160x16xf32, #tpu.memory_space<vmem>>, vector<8x16xf32>
    %270 = arith.subf %269, %133 : vector<8x16xf32>
    %271 = math.exp %270 : vector<8x16xf32>
    %272 = arith.addf %265, %271 : vector<8x16xf32>
    %c19_i32 = arith.constant 19 : i32
    %273 = vector.broadcast %c19_i32 : i32 to vector<8x16xi32>
    %274 = arith.cmpi eq, %4, %273 : vector<8x16xi32>
    %275 = arith.select %274, %269, %268 : vector<8x16xi1>, vector<8x16xf32>
    %276 = math.log %272 : vector<8x16xf32>
    %277 = arith.addf %133, %276 : vector<8x16xf32>
    %278 = arith.subf %277, %275 : vector<8x16xf32>
    %c0_158 = arith.constant 0 : index
    %c0_159 = arith.constant 0 : index
    %279 = vector.load %arg14[%c0_158, %c0_159] : memref<8x16xf32, #tpu.memory_space<vmem>>, vector<8x16xf32>
    %280 = arith.mulf %278, %8 : vector<8x16xf32>
    %281 = arith.addf %279, %280 : vector<8x16xf32>
    %c0_160 = arith.constant 0 : index
    %c0_161 = arith.constant 0 : index
    %282 = vector.load %arg14[%c0_160, %c0_161] : memref<8x16xf32, #tpu.memory_space<vmem>>, vector<8x16xf32>
    tpu.vector_store %arg14[%c0_160, %c0_161], %281 {strides = array<i32>} : memref<8x16xf32, #tpu.memory_space<vmem>>, vector<8x16xf32>,
    %c0_162 = arith.constant 0 : index
    %c0_163 = arith.constant 0 : index
    %283 = vector.load %arg6[%c0_162, %c0_163] : memref<8x4xbf16, #tpu.memory_space<vmem>>, vector<8x4xbf16>
    %c0_164 = arith.constant 0 : index
    %c0_165 = arith.constant 0 : index
    %c0_166 = arith.constant 0 : index
    %c0_167 = arith.constant 0 : index
    %284 = vector.load %arg5[%c0_164, %c0_165, %c0_166, %c0_167] : memref<1x20x4x4xbf16, #tpu.memory_space<vmem>>, vector<1x1x4x4xbf16>
    %285 = vector.shape_cast %284 : vector<1x1x4x4xbf16> to vector<4x4xbf16>
    %cst_168 = arith.constant dense<0.000000e+00> : vector<8x4xf32>
    %286 = tpu.matmul %283, %285, %cst_168 {dimension_numbers = #tpu.dot_dimension_numbers<[1], [0], [0], [1], [0, 0, 1, 1], [], []>} : vector<8x4xbf16>, vector<4x4xbf16>, vector<8x4xf32> -> vector<8x4xf32>
    %c0_169 = arith.constant 0 : index
    %c0_170 = arith.constant 0 : index
    %287 = vector.load %arg12[%c0_169, %c0_170] : memref<160x4xf32, #tpu.memory_space<vmem>>, vector<8x4xf32>
    tpu.vector_store %arg12[%c0_169, %c0_170], %286 {strides = array<i32>} : memref<160x4xf32, #tpu.memory_space<vmem>>, vector<8x4xf32>,
    %c0_171 = arith.constant 0 : index
    %c1_172 = arith.constant 1 : index
    %c0_173 = arith.constant 0 : index
    %c0_174 = arith.constant 0 : index
    %288 = vector.load %arg5[%c0_171, %c1_172, %c0_173, %c0_174] : memref<1x20x4x4xbf16, #tpu.memory_space<vmem>>, vector<1x1x4x4xbf16>
    %289 = vector.shape_cast %288 : vector<1x1x4x4xbf16> to vector<4x4xbf16>
    %cst_175 = arith.constant dense<0.000000e+00> : vector<8x4xf32>
    %290 = tpu.matmul %283, %289, %cst_175 {dimension_numbers = #tpu.dot_dimension_numbers<[1], [0], [0], [1], [0, 0, 1, 1], [], []>} : vector<8x4xbf16>, vector<4x4xbf16>, vector<8x4xf32> -> vector<8x4xf32>
    %c8_176 = arith.constant 8 : index
    %c0_177 = arith.constant 0 : index
    %291 = vector.load %arg12[%c8_176, %c0_177] : memref<160x4xf32, #tpu.memory_space<vmem>>, vector<8x4xf32>
    tpu.vector_store %arg12[%c8_176, %c0_177], %290 {strides = array<i32>} : memref<160x4xf32, #tpu.memory_space<vmem>>, vector<8x4xf32>,
    %c0_178 = arith.constant 0 : index
    %c2_179 = arith.constant 2 : index
    %c0_180 = arith.constant 0 : index
    %c0_181 = arith.constant 0 : index
    %292 = vector.load %arg5[%c0_178, %c2_179, %c0_180, %c0_181] : memref<1x20x4x4xbf16, #tpu.memory_space<vmem>>, vector<1x1x4x4xbf16>
    %293 = vector.shape_cast %292 : vector<1x1x4x4xbf16> to vector<4x4xbf16>
    %cst_182 = arith.constant dense<0.000000e+00> : vector<8x4xf32>
    %294 = tpu.matmul %283, %293, %cst_182 {dimension_numbers = #tpu.dot_dimension_numbers<[1], [0], [0], [1], [0, 0, 1, 1], [], []>} : vector<8x4xbf16>, vector<4x4xbf16>, vector<8x4xf32> -> vector<8x4xf32>
    %c16_183 = arith.constant 16 : index
    %c0_184 = arith.constant 0 : index
    %295 = vector.load %arg12[%c16_183, %c0_184] : memref<160x4xf32, #tpu.memory_space<vmem>>, vector<8x4xf32>
    tpu.vector_store %arg12[%c16_183, %c0_184], %294 {strides = array<i32>} : memref<160x4xf32, #tpu.memory_space<vmem>>, vector<8x4xf32>,
    %c0_185 = arith.constant 0 : index
    %c3_186 = arith.constant 3 : index
    %c0_187 = arith.constant 0 : index
    %c0_188 = arith.constant 0 : index
    %296 = vector.load %arg5[%c0_185, %c3_186, %c0_187, %c0_188] : memref<1x20x4x4xbf16, #tpu.memory_space<vmem>>, vector<1x1x4x4xbf16>
    %297 = vector.shape_cast %296 : vector<1x1x4x4xbf16> to vector<4x4xbf16>
    %cst_189 = arith.constant dense<0.000000e+00> : vector<8x4xf32>
    %298 = tpu.matmul %283, %297, %cst_189 {dimension_numbers = #tpu.dot_dimension_numbers<[1], [0], [0], [1], [0, 0, 1, 1], [], []>} : vector<8x4xbf16>, vector<4x4xbf16>, vector<8x4xf32> -> vector<8x4xf32>
    %c24_190 = arith.constant 24 : index
    %c0_191 = arith.constant 0 : index
    %299 = vector.load %arg12[%c24_190, %c0_191] : memref<160x4xf32, #tpu.memory_space<vmem>>, vector<8x4xf32>
    tpu.vector_store %arg12[%c24_190, %c0_191], %298 {strides = array<i32>} : memref<160x4xf32, #tpu.memory_space<vmem>>, vector<8x4xf32>,
    %c0_192 = arith.constant 0 : index
    %c4_193 = arith.constant 4 : index
    %c0_194 = arith.constant 0 : index
    %c0_195 = arith.constant 0 : index
    %300 = vector.load %arg5[%c0_192, %c4_193, %c0_194, %c0_195] : memref<1x20x4x4xbf16, #tpu.memory_space<vmem>>, vector<1x1x4x4xbf16>
    %301 = vector.shape_cast %300 : vector<1x1x4x4xbf16> to vector<4x4xbf16>
    %cst_196 = arith.constant dense<0.000000e+00> : vector<8x4xf32>
    %302 = tpu.matmul %283, %301, %cst_196 {dimension_numbers = #tpu.dot_dimension_numbers<[1], [0], [0], [1], [0, 0, 1, 1], [], []>} : vector<8x4xbf16>, vector<4x4xbf16>, vector<8x4xf32> -> vector<8x4xf32>
    %c32_197 = arith.constant 32 : index
    %c0_198 = arith.constant 0 : index
    %303 = vector.load %arg12[%c32_197, %c0_198] : memref<160x4xf32, #tpu.memory_space<vmem>>, vector<8x4xf32>
    tpu.vector_store %arg12[%c32_197, %c0_198], %302 {strides = array<i32>} : memref<160x4xf32, #tpu.memory_space<vmem>>, vector<8x4xf32>,
    %c0_199 = arith.constant 0 : index
    %c5_200 = arith.constant 5 : index
    %c0_201 = arith.constant 0 : index
    %c0_202 = arith.constant 0 : index
    %304 = vector.load %arg5[%c0_199, %c5_200, %c0_201, %c0_202] : memref<1x20x4x4xbf16, #tpu.memory_space<vmem>>, vector<1x1x4x4xbf16>
    %305 = vector.shape_cast %304 : vector<1x1x4x4xbf16> to vector<4x4xbf16>
    %cst_203 = arith.constant dense<0.000000e+00> : vector<8x4xf32>
    %306 = tpu.matmul %283, %305, %cst_203 {dimension_numbers = #tpu.dot_dimension_numbers<[1], [0], [0], [1], [0, 0, 1, 1], [], []>} : vector<8x4xbf16>, vector<4x4xbf16>, vector<8x4xf32> -> vector<8x4xf32>
    %c40_204 = arith.constant 40 : index
    %c0_205 = arith.constant 0 : index
    %307 = vector.load %arg12[%c40_204, %c0_205] : memref<160x4xf32, #tpu.memory_space<vmem>>, vector<8x4xf32>
    tpu.vector_store %arg12[%c40_204, %c0_205], %306 {strides = array<i32>} : memref<160x4xf32, #tpu.memory_space<vmem>>, vector<8x4xf32>,
    %c0_206 = arith.constant 0 : index
    %c6_207 = arith.constant 6 : index
    %c0_208 = arith.constant 0 : index
    %c0_209 = arith.constant 0 : index
    %308 = vector.load %arg5[%c0_206, %c6_207, %c0_208, %c0_209] : memref<1x20x4x4xbf16, #tpu.memory_space<vmem>>, vector<1x1x4x4xbf16>
    %309 = vector.shape_cast %308 : vector<1x1x4x4xbf16> to vector<4x4xbf16>
    %cst_210 = arith.constant dense<0.000000e+00> : vector<8x4xf32>
    %310 = tpu.matmul %283, %309, %cst_210 {dimension_numbers = #tpu.dot_dimension_numbers<[1], [0], [0], [1], [0, 0, 1, 1], [], []>} : vector<8x4xbf16>, vector<4x4xbf16>, vector<8x4xf32> -> vector<8x4xf32>
    %c48_211 = arith.constant 48 : index
    %c0_212 = arith.constant 0 : index
    %311 = vector.load %arg12[%c48_211, %c0_212] : memref<160x4xf32, #tpu.memory_space<vmem>>, vector<8x4xf32>
    tpu.vector_store %arg12[%c48_211, %c0_212], %310 {strides = array<i32>} : memref<160x4xf32, #tpu.memory_space<vmem>>, vector<8x4xf32>,
    %c0_213 = arith.constant 0 : index
    %c7_214 = arith.constant 7 : index
    %c0_215 = arith.constant 0 : index
    %c0_216 = arith.constant 0 : index
    %312 = vector.load %arg5[%c0_213, %c7_214, %c0_215, %c0_216] : memref<1x20x4x4xbf16, #tpu.memory_space<vmem>>, vector<1x1x4x4xbf16>
    %313 = vector.shape_cast %312 : vector<1x1x4x4xbf16> to vector<4x4xbf16>
    %cst_217 = arith.constant dense<0.000000e+00> : vector<8x4xf32>
    %314 = tpu.matmul %283, %313, %cst_217 {dimension_numbers = #tpu.dot_dimension_numbers<[1], [0], [0], [1], [0, 0, 1, 1], [], []>} : vector<8x4xbf16>, vector<4x4xbf16>, vector<8x4xf32> -> vector<8x4xf32>
    %c56_218 = arith.constant 56 : index
    %c0_219 = arith.constant 0 : index
    %315 = vector.load %arg12[%c56_218, %c0_219] : memref<160x4xf32, #tpu.memory_space<vmem>>, vector<8x4xf32>
    tpu.vector_store %arg12[%c56_218, %c0_219], %314 {strides = array<i32>} : memref<160x4xf32, #tpu.memory_space<vmem>>, vector<8x4xf32>,
    %c0_220 = arith.constant 0 : index
    %c8_221 = arith.constant 8 : index
    %c0_222 = arith.constant 0 : index
    %c0_223 = arith.constant 0 : index
    %316 = vector.load %arg5[%c0_220, %c8_221, %c0_222, %c0_223] : memref<1x20x4x4xbf16, #tpu.memory_space<vmem>>, vector<1x1x4x4xbf16>
    %317 = vector.shape_cast %316 : vector<1x1x4x4xbf16> to vector<4x4xbf16>
    %cst_224 = arith.constant dense<0.000000e+00> : vector<8x4xf32>
    %318 = tpu.matmul %283, %317, %cst_224 {dimension_numbers = #tpu.dot_dimension_numbers<[1], [0], [0], [1], [0, 0, 1, 1], [], []>} : vector<8x4xbf16>, vector<4x4xbf16>, vector<8x4xf32> -> vector<8x4xf32>
    %c64_225 = arith.constant 64 : index
    %c0_226 = arith.constant 0 : index
    %319 = vector.load %arg12[%c64_225, %c0_226] : memref<160x4xf32, #tpu.memory_space<vmem>>, vector<8x4xf32>
    tpu.vector_store %arg12[%c64_225, %c0_226], %318 {strides = array<i32>} : memref<160x4xf32, #tpu.memory_space<vmem>>, vector<8x4xf32>,
    %c0_227 = arith.constant 0 : index
    %c9_228 = arith.constant 9 : index
    %c0_229 = arith.constant 0 : index
    %c0_230 = arith.constant 0 : index
    %320 = vector.load %arg5[%c0_227, %c9_228, %c0_229, %c0_230] : memref<1x20x4x4xbf16, #tpu.memory_space<vmem>>, vector<1x1x4x4xbf16>
    %321 = vector.shape_cast %320 : vector<1x1x4x4xbf16> to vector<4x4xbf16>
    %cst_231 = arith.constant dense<0.000000e+00> : vector<8x4xf32>
    %322 = tpu.matmul %283, %321, %cst_231 {dimension_numbers = #tpu.dot_dimension_numbers<[1], [0], [0], [1], [0, 0, 1, 1], [], []>} : vector<8x4xbf16>, vector<4x4xbf16>, vector<8x4xf32> -> vector<8x4xf32>
    %c72_232 = arith.constant 72 : index
    %c0_233 = arith.constant 0 : index
    %323 = vector.load %arg12[%c72_232, %c0_233] : memref<160x4xf32, #tpu.memory_space<vmem>>, vector<8x4xf32>
    tpu.vector_store %arg12[%c72_232, %c0_233], %322 {strides = array<i32>} : memref<160x4xf32, #tpu.memory_space<vmem>>, vector<8x4xf32>,
    %c0_234 = arith.constant 0 : index
    %c10_235 = arith.constant 10 : index
    %c0_236 = arith.constant 0 : index
    %c0_237 = arith.constant 0 : index
    %324 = vector.load %arg5[%c0_234, %c10_235, %c0_236, %c0_237] : memref<1x20x4x4xbf16, #tpu.memory_space<vmem>>, vector<1x1x4x4xbf16>
    %325 = vector.shape_cast %324 : vector<1x1x4x4xbf16> to vector<4x4xbf16>
    %cst_238 = arith.constant dense<0.000000e+00> : vector<8x4xf32>
    %326 = tpu.matmul %283, %325, %cst_238 {dimension_numbers = #tpu.dot_dimension_numbers<[1], [0], [0], [1], [0, 0, 1, 1], [], []>} : vector<8x4xbf16>, vector<4x4xbf16>, vector<8x4xf32> -> vector<8x4xf32>
    %c80_239 = arith.constant 80 : index
    %c0_240 = arith.constant 0 : index
    %327 = vector.load %arg12[%c80_239, %c0_240] : memref<160x4xf32, #tpu.memory_space<vmem>>, vector<8x4xf32>
    tpu.vector_store %arg12[%c80_239, %c0_240], %326 {strides = array<i32>} : memref<160x4xf32, #tpu.memory_space<vmem>>, vector<8x4xf32>,
    %c0_241 = arith.constant 0 : index
    %c11_242 = arith.constant 11 : index
    %c0_243 = arith.constant 0 : index
    %c0_244 = arith.constant 0 : index
    %328 = vector.load %arg5[%c0_241, %c11_242, %c0_243, %c0_244] : memref<1x20x4x4xbf16, #tpu.memory_space<vmem>>, vector<1x1x4x4xbf16>
    %329 = vector.shape_cast %328 : vector<1x1x4x4xbf16> to vector<4x4xbf16>
    %cst_245 = arith.constant dense<0.000000e+00> : vector<8x4xf32>
    %330 = tpu.matmul %283, %329, %cst_245 {dimension_numbers = #tpu.dot_dimension_numbers<[1], [0], [0], [1], [0, 0, 1, 1], [], []>} : vector<8x4xbf16>, vector<4x4xbf16>, vector<8x4xf32> -> vector<8x4xf32>
    %c88_246 = arith.constant 88 : index
    %c0_247 = arith.constant 0 : index
    %331 = vector.load %arg12[%c88_246, %c0_247] : memref<160x4xf32, #tpu.memory_space<vmem>>, vector<8x4xf32>
    tpu.vector_store %arg12[%c88_246, %c0_247], %330 {strides = array<i32>} : memref<160x4xf32, #tpu.memory_space<vmem>>, vector<8x4xf32>,
    %c0_248 = arith.constant 0 : index
    %c12_249 = arith.constant 12 : index
    %c0_250 = arith.constant 0 : index
    %c0_251 = arith.constant 0 : index
    %332 = vector.load %arg5[%c0_248, %c12_249, %c0_250, %c0_251] : memref<1x20x4x4xbf16, #tpu.memory_space<vmem>>, vector<1x1x4x4xbf16>
    %333 = vector.shape_cast %332 : vector<1x1x4x4xbf16> to vector<4x4xbf16>
    %cst_252 = arith.constant dense<0.000000e+00> : vector<8x4xf32>
    %334 = tpu.matmul %283, %333, %cst_252 {dimension_numbers = #tpu.dot_dimension_numbers<[1], [0], [0], [1], [0, 0, 1, 1], [], []>} : vector<8x4xbf16>, vector<4x4xbf16>, vector<8x4xf32> -> vector<8x4xf32>
    %c96_253 = arith.constant 96 : index
    %c0_254 = arith.constant 0 : index
    %335 = vector.load %arg12[%c96_253, %c0_254] : memref<160x4xf32, #tpu.memory_space<vmem>>, vector<8x4xf32>
    tpu.vector_store %arg12[%c96_253, %c0_254], %334 {strides = array<i32>} : memref<160x4xf32, #tpu.memory_space<vmem>>, vector<8x4xf32>,
    %c0_255 = arith.constant 0 : index
    %c13_256 = arith.constant 13 : index
    %c0_257 = arith.constant 0 : index
    %c0_258 = arith.constant 0 : index
    %336 = vector.load %arg5[%c0_255, %c13_256, %c0_257, %c0_258] : memref<1x20x4x4xbf16, #tpu.memory_space<vmem>>, vector<1x1x4x4xbf16>
    %337 = vector.shape_cast %336 : vector<1x1x4x4xbf16> to vector<4x4xbf16>
    %cst_259 = arith.constant dense<0.000000e+00> : vector<8x4xf32>
    %338 = tpu.matmul %283, %337, %cst_259 {dimension_numbers = #tpu.dot_dimension_numbers<[1], [0], [0], [1], [0, 0, 1, 1], [], []>} : vector<8x4xbf16>, vector<4x4xbf16>, vector<8x4xf32> -> vector<8x4xf32>
    %c104_260 = arith.constant 104 : index
    %c0_261 = arith.constant 0 : index
    %339 = vector.load %arg12[%c104_260, %c0_261] : memref<160x4xf32, #tpu.memory_space<vmem>>, vector<8x4xf32>
    tpu.vector_store %arg12[%c104_260, %c0_261], %338 {strides = array<i32>} : memref<160x4xf32, #tpu.memory_space<vmem>>, vector<8x4xf32>,
    %c0_262 = arith.constant 0 : index
    %c14_263 = arith.constant 14 : index
    %c0_264 = arith.constant 0 : index
    %c0_265 = arith.constant 0 : index
    %340 = vector.load %arg5[%c0_262, %c14_263, %c0_264, %c0_265] : memref<1x20x4x4xbf16, #tpu.memory_space<vmem>>, vector<1x1x4x4xbf16>
    %341 = vector.shape_cast %340 : vector<1x1x4x4xbf16> to vector<4x4xbf16>
    %cst_266 = arith.constant dense<0.000000e+00> : vector<8x4xf32>
    %342 = tpu.matmul %283, %341, %cst_266 {dimension_numbers = #tpu.dot_dimension_numbers<[1], [0], [0], [1], [0, 0, 1, 1], [], []>} : vector<8x4xbf16>, vector<4x4xbf16>, vector<8x4xf32> -> vector<8x4xf32>
    %c112_267 = arith.constant 112 : index
    %c0_268 = arith.constant 0 : index
    %343 = vector.load %arg12[%c112_267, %c0_268] : memref<160x4xf32, #tpu.memory_space<vmem>>, vector<8x4xf32>
    tpu.vector_store %arg12[%c112_267, %c0_268], %342 {strides = array<i32>} : memref<160x4xf32, #tpu.memory_space<vmem>>, vector<8x4xf32>,
    %c0_269 = arith.constant 0 : index
    %c15_270 = arith.constant 15 : index
    %c0_271 = arith.constant 0 : index
    %c0_272 = arith.constant 0 : index
    %344 = vector.load %arg5[%c0_269, %c15_270, %c0_271, %c0_272] : memref<1x20x4x4xbf16, #tpu.memory_space<vmem>>, vector<1x1x4x4xbf16>
    %345 = vector.shape_cast %344 : vector<1x1x4x4xbf16> to vector<4x4xbf16>
    %cst_273 = arith.constant dense<0.000000e+00> : vector<8x4xf32>
    %346 = tpu.matmul %283, %345, %cst_273 {dimension_numbers = #tpu.dot_dimension_numbers<[1], [0], [0], [1], [0, 0, 1, 1], [], []>} : vector<8x4xbf16>, vector<4x4xbf16>, vector<8x4xf32> -> vector<8x4xf32>
    %c120_274 = arith.constant 120 : index
    %c0_275 = arith.constant 0 : index
    %347 = vector.load %arg12[%c120_274, %c0_275] : memref<160x4xf32, #tpu.memory_space<vmem>>, vector<8x4xf32>
    tpu.vector_store %arg12[%c120_274, %c0_275], %346 {strides = array<i32>} : memref<160x4xf32, #tpu.memory_space<vmem>>, vector<8x4xf32>,
    %c0_276 = arith.constant 0 : index
    %c16_277 = arith.constant 16 : index
    %c0_278 = arith.constant 0 : index
    %c0_279 = arith.constant 0 : index
    %348 = vector.load %arg5[%c0_276, %c16_277, %c0_278, %c0_279] : memref<1x20x4x4xbf16, #tpu.memory_space<vmem>>, vector<1x1x4x4xbf16>
    %349 = vector.shape_cast %348 : vector<1x1x4x4xbf16> to vector<4x4xbf16>
    %cst_280 = arith.constant dense<0.000000e+00> : vector<8x4xf32>
    %350 = tpu.matmul %283, %349, %cst_280 {dimension_numbers = #tpu.dot_dimension_numbers<[1], [0], [0], [1], [0, 0, 1, 1], [], []>} : vector<8x4xbf16>, vector<4x4xbf16>, vector<8x4xf32> -> vector<8x4xf32>
    %c128_281 = arith.constant 128 : index
    %c0_282 = arith.constant 0 : index
    %351 = vector.load %arg12[%c128_281, %c0_282] : memref<160x4xf32, #tpu.memory_space<vmem>>, vector<8x4xf32>
    tpu.vector_store %arg12[%c128_281, %c0_282], %350 {strides = array<i32>} : memref<160x4xf32, #tpu.memory_space<vmem>>, vector<8x4xf32>,
    %c0_283 = arith.constant 0 : index
    %c17_284 = arith.constant 17 : index
    %c0_285 = arith.constant 0 : index
    %c0_286 = arith.constant 0 : index
    %352 = vector.load %arg5[%c0_283, %c17_284, %c0_285, %c0_286] : memref<1x20x4x4xbf16, #tpu.memory_space<vmem>>, vector<1x1x4x4xbf16>
    %353 = vector.shape_cast %352 : vector<1x1x4x4xbf16> to vector<4x4xbf16>
    %cst_287 = arith.constant dense<0.000000e+00> : vector<8x4xf32>
    %354 = tpu.matmul %283, %353, %cst_287 {dimension_numbers = #tpu.dot_dimension_numbers<[1], [0], [0], [1], [0, 0, 1, 1], [], []>} : vector<8x4xbf16>, vector<4x4xbf16>, vector<8x4xf32> -> vector<8x4xf32>
    %c136_288 = arith.constant 136 : index
    %c0_289 = arith.constant 0 : index
    %355 = vector.load %arg12[%c136_288, %c0_289] : memref<160x4xf32, #tpu.memory_space<vmem>>, vector<8x4xf32>
    tpu.vector_store %arg12[%c136_288, %c0_289], %354 {strides = array<i32>} : memref<160x4xf32, #tpu.memory_space<vmem>>, vector<8x4xf32>,
    %c0_290 = arith.constant 0 : index
    %c18_291 = arith.constant 18 : index
    %c0_292 = arith.constant 0 : index
    %c0_293 = arith.constant 0 : index
    %356 = vector.load %arg5[%c0_290, %c18_291, %c0_292, %c0_293] : memref<1x20x4x4xbf16, #tpu.memory_space<vmem>>, vector<1x1x4x4xbf16>
    %357 = vector.shape_cast %356 : vector<1x1x4x4xbf16> to vector<4x4xbf16>
    %cst_294 = arith.constant dense<0.000000e+00> : vector<8x4xf32>
    %358 = tpu.matmul %283, %357, %cst_294 {dimension_numbers = #tpu.dot_dimension_numbers<[1], [0], [0], [1], [0, 0, 1, 1], [], []>} : vector<8x4xbf16>, vector<4x4xbf16>, vector<8x4xf32> -> vector<8x4xf32>
    %c144_295 = arith.constant 144 : index
    %c0_296 = arith.constant 0 : index
    %359 = vector.load %arg12[%c144_295, %c0_296] : memref<160x4xf32, #tpu.memory_space<vmem>>, vector<8x4xf32>
    tpu.vector_store %arg12[%c144_295, %c0_296], %358 {strides = array<i32>} : memref<160x4xf32, #tpu.memory_space<vmem>>, vector<8x4xf32>,
    %c0_297 = arith.constant 0 : index
    %c19_298 = arith.constant 19 : index
    %c0_299 = arith.constant 0 : index
    %c0_300 = arith.constant 0 : index
    %360 = vector.load %arg5[%c0_297, %c19_298, %c0_299, %c0_300] : memref<1x20x4x4xbf16, #tpu.memory_space<vmem>>, vector<1x1x4x4xbf16>
    %361 = vector.shape_cast %360 : vector<1x1x4x4xbf16> to vector<4x4xbf16>
    %cst_301 = arith.constant dense<0.000000e+00> : vector<8x4xf32>
    %362 = tpu.matmul %283, %361, %cst_301 {dimension_numbers = #tpu.dot_dimension_numbers<[1], [0], [0], [1], [0, 0, 1, 1], [], []>} : vector<8x4xbf16>, vector<4x4xbf16>, vector<8x4xf32> -> vector<8x4xf32>
    %c152_302 = arith.constant 152 : index
    %c0_303 = arith.constant 0 : index
    %363 = vector.load %arg12[%c152_302, %c0_303] : memref<160x4xf32, #tpu.memory_space<vmem>>, vector<8x4xf32>
    tpu.vector_store %arg12[%c152_302, %c0_303], %362 {strides = array<i32>} : memref<160x4xf32, #tpu.memory_space<vmem>>, vector<8x4xf32>,
    %c0_304 = arith.constant 0 : index
    %c0_305 = arith.constant 0 : index
    %364 = vector.load %arg12[%c0_304, %c0_305] : memref<160x4xf32, #tpu.memory_space<vmem>>, vector<160x4xf32>
    %365 = arith.truncf %364 : vector<160x4xf32> to vector<160x4xbf16>
    %c0_306 = arith.constant 0 : index
    %c0_307 = arith.constant 0 : index
    %366 = vector.load %arg7[%c0_306, %c0_307] : memref<4x16xbf16, #tpu.memory_space<vmem>>, vector<4x16xbf16>
    %cst_308 = arith.constant dense<0.000000e+00> : vector<160x16xf32>
    %367 = tpu.matmul %365, %366, %cst_308 {dimension_numbers = #tpu.dot_dimension_numbers<[1], [0], [0], [1], [0, 0, 1, 1], [], []>} : vector<160x4xbf16>, vector<4x16xbf16>, vector<160x16xf32> -> vector<160x16xf32>
    %c0_309 = arith.constant 0 : index
    %c0_310 = arith.constant 0 : index
    %368 = vector.load %arg13[%c0_309, %c0_310] : memref<160x16xf32, #tpu.memory_space<vmem>>, vector<160x16xf32>
    tpu.vector_store %arg13[%c0_309, %c0_310], %367 {strides = array<i32>} : memref<160x16xf32, #tpu.memory_space<vmem>>, vector<160x16xf32>,
    %369 = vector.extract_strided_slice %367 {offsets = [0, 0], sizes = [8, 16], strides = [1, 1]} : vector<160x16xf32> to vector<8x16xf32>
    %370 = vector.extract_strided_slice %367 {offsets = [8, 0], sizes = [8, 16], strides = [1, 1]} : vector<160x16xf32> to vector<8x16xf32>
    %371 = arith.maximumf %369, %370 : vector<8x16xf32>
    %372 = vector.extract_strided_slice %367 {offsets = [16, 0], sizes = [8, 16], strides = [1, 1]} : vector<160x16xf32> to vector<8x16xf32>
    %373 = arith.maximumf %371, %372 : vector<8x16xf32>
    %374 = vector.extract_strided_slice %367 {offsets = [24, 0], sizes = [8, 16], strides = [1, 1]} : vector<160x16xf32> to vector<8x16xf32>
    %375 = arith.maximumf %373, %374 : vector<8x16xf32>
    %376 = vector.extract_strided_slice %367 {offsets = [32, 0], sizes = [8, 16], strides = [1, 1]} : vector<160x16xf32> to vector<8x16xf32>
    %377 = arith.maximumf %375, %376 : vector<8x16xf32>
    %378 = vector.extract_strided_slice %367 {offsets = [40, 0], sizes = [8, 16], strides = [1, 1]} : vector<160x16xf32> to vector<8x16xf32>
    %379 = arith.maximumf %377, %378 : vector<8x16xf32>
    %380 = vector.extract_strided_slice %367 {offsets = [48, 0], sizes = [8, 16], strides = [1, 1]} : vector<160x16xf32> to vector<8x16xf32>
    %381 = arith.maximumf %379, %380 : vector<8x16xf32>
    %382 = vector.extract_strided_slice %367 {offsets = [56, 0], sizes = [8, 16], strides = [1, 1]} : vector<160x16xf32> to vector<8x16xf32>
    %383 = arith.maximumf %381, %382 : vector<8x16xf32>
    %384 = vector.extract_strided_slice %367 {offsets = [64, 0], sizes = [8, 16], strides = [1, 1]} : vector<160x16xf32> to vector<8x16xf32>
    %385 = arith.maximumf %383, %384 : vector<8x16xf32>
    %386 = vector.extract_strided_slice %367 {offsets = [72, 0], sizes = [8, 16], strides = [1, 1]} : vector<160x16xf32> to vector<8x16xf32>
    %387 = arith.maximumf %385, %386 : vector<8x16xf32>
    %388 = vector.extract_strided_slice %367 {offsets = [80, 0], sizes = [8, 16], strides = [1, 1]} : vector<160x16xf32> to vector<8x16xf32>
    %389 = arith.maximumf %387, %388 : vector<8x16xf32>
    %390 = vector.extract_strided_slice %367 {offsets = [88, 0], sizes = [8, 16], strides = [1, 1]} : vector<160x16xf32> to vector<8x16xf32>
    %391 = arith.maximumf %389, %390 : vector<8x16xf32>
    %392 = vector.extract_strided_slice %367 {offsets = [96, 0], sizes = [8, 16], strides = [1, 1]} : vector<160x16xf32> to vector<8x16xf32>
    %393 = arith.maximumf %391, %392 : vector<8x16xf32>
    %394 = vector.extract_strided_slice %367 {offsets = [104, 0], sizes = [8, 16], strides = [1, 1]} : vector<160x16xf32> to vector<8x16xf32>
    %395 = arith.maximumf %393, %394 : vector<8x16xf32>
    %396 = vector.extract_strided_slice %367 {offsets = [112, 0], sizes = [8, 16], strides = [1, 1]} : vector<160x16xf32> to vector<8x16xf32>
    %397 = arith.maximumf %395, %396 : vector<8x16xf32>
    %398 = vector.extract_strided_slice %367 {offsets = [120, 0], sizes = [8, 16], strides = [1, 1]} : vector<160x16xf32> to vector<8x16xf32>
    %399 = arith.maximumf %397, %398 : vector<8x16xf32>
    %400 = vector.extract_strided_slice %367 {offsets = [128, 0], sizes = [8, 16], strides = [1, 1]} : vector<160x16xf32> to vector<8x16xf32>
    %401 = arith.maximumf %399, %400 : vector<8x16xf32>
    %402 = vector.extract_strided_slice %367 {offsets = [136, 0], sizes = [8, 16], strides = [1, 1]} : vector<160x16xf32> to vector<8x16xf32>
    %403 = arith.maximumf %401, %402 : vector<8x16xf32>
    %404 = vector.extract_strided_slice %367 {offsets = [144, 0], sizes = [8, 16], strides = [1, 1]} : vector<160x16xf32> to vector<8x16xf32>
    %405 = arith.maximumf %403, %404 : vector<8x16xf32>
    %406 = vector.extract_strided_slice %367 {offsets = [152, 0], sizes = [8, 16], strides = [1, 1]} : vector<160x16xf32> to vector<8x16xf32>
    %407 = arith.maximumf %405, %406 : vector<8x16xf32>
    %cst_311 = arith.constant 0.000000e+00 : f32
    %408 = vector.broadcast %cst_311 : f32 to vector<8x16xf32>
    %cst_312 = arith.constant 0.000000e+00 : f32
    %409 = vector.broadcast %cst_312 : f32 to vector<8x16xf32>
    %c0_313 = arith.constant 0 : index
    %c0_314 = arith.constant 0 : index
    %410 = vector.load %arg13[%c0_313, %c0_314] : memref<160x16xf32, #tpu.memory_space<vmem>>, vector<8x16xf32>
    %411 = arith.subf %410, %407 : vector<8x16xf32>
    %412 = math.exp %411 : vector<8x16xf32>
    %413 = arith.addf %408, %412 : vector<8x16xf32>
    %c0_i32_315 = arith.constant 0 : i32
    %414 = vector.broadcast %c0_i32_315 : i32 to vector<8x16xi32>
    %415 = arith.cmpi eq, %4, %414 : vector<8x16xi32>
    %416 = arith.select %415, %410, %409 : vector<8x16xi1>, vector<8x16xf32>
    %c8_316 = arith.constant 8 : index
    %c0_317 = arith.constant 0 : index
    %417 = vector.load %arg13[%c8_316, %c0_317] : memref<160x16xf32, #tpu.memory_space<vmem>>, vector<8x16xf32>
    %418 = arith.subf %417, %407 : vector<8x16xf32>
    %419 = math.exp %418 : vector<8x16xf32>
    %420 = arith.addf %413, %419 : vector<8x16xf32>
    %c1_i32_318 = arith.constant 1 : i32
    %421 = vector.broadcast %c1_i32_318 : i32 to vector<8x16xi32>
    %422 = arith.cmpi eq, %4, %421 : vector<8x16xi32>
    %423 = arith.select %422, %417, %416 : vector<8x16xi1>, vector<8x16xf32>
    %c16_319 = arith.constant 16 : index
    %c0_320 = arith.constant 0 : index
    %424 = vector.load %arg13[%c16_319, %c0_320] : memref<160x16xf32, #tpu.memory_space<vmem>>, vector<8x16xf32>
    %425 = arith.subf %424, %407 : vector<8x16xf32>
    %426 = math.exp %425 : vector<8x16xf32>
    %427 = arith.addf %420, %426 : vector<8x16xf32>
    %c2_i32_321 = arith.constant 2 : i32
    %428 = vector.broadcast %c2_i32_321 : i32 to vector<8x16xi32>
    %429 = arith.cmpi eq, %4, %428 : vector<8x16xi32>
    %430 = arith.select %429, %424, %423 : vector<8x16xi1>, vector<8x16xf32>
    %c24_322 = arith.constant 24 : index
    %c0_323 = arith.constant 0 : index
    %431 = vector.load %arg13[%c24_322, %c0_323] : memref<160x16xf32, #tpu.memory_space<vmem>>, vector<8x16xf32>
    %432 = arith.subf %431, %407 : vector<8x16xf32>
    %433 = math.exp %432 : vector<8x16xf32>
    %434 = arith.addf %427, %433 : vector<8x16xf32>
    %c3_i32_324 = arith.constant 3 : i32
    %435 = vector.broadcast %c3_i32_324 : i32 to vector<8x16xi32>
    %436 = arith.cmpi eq, %4, %435 : vector<8x16xi32>
    %437 = arith.select %436, %431, %430 : vector<8x16xi1>, vector<8x16xf32>
    %c32_325 = arith.constant 32 : index
    %c0_326 = arith.constant 0 : index
    %438 = vector.load %arg13[%c32_325, %c0_326] : memref<160x16xf32, #tpu.memory_space<vmem>>, vector<8x16xf32>
    %439 = arith.subf %438, %407 : vector<8x16xf32>
    %440 = math.exp %439 : vector<8x16xf32>
    %441 = arith.addf %434, %440 : vector<8x16xf32>
    %c4_i32_327 = arith.constant 4 : i32
    %442 = vector.broadcast %c4_i32_327 : i32 to vector<8x16xi32>
    %443 = arith.cmpi eq, %4, %442 : vector<8x16xi32>
    %444 = arith.select %443, %438, %437 : vector<8x16xi1>, vector<8x16xf32>
    %c40_328 = arith.constant 40 : index
    %c0_329 = arith.constant 0 : index
    %445 = vector.load %arg13[%c40_328, %c0_329] : memref<160x16xf32, #tpu.memory_space<vmem>>, vector<8x16xf32>
    %446 = arith.subf %445, %407 : vector<8x16xf32>
    %447 = math.exp %446 : vector<8x16xf32>
    %448 = arith.addf %441, %447 : vector<8x16xf32>
    %c5_i32_330 = arith.constant 5 : i32
    %449 = vector.broadcast %c5_i32_330 : i32 to vector<8x16xi32>
    %450 = arith.cmpi eq, %4, %449 : vector<8x16xi32>
    %451 = arith.select %450, %445, %444 : vector<8x16xi1>, vector<8x16xf32>
    %c48_331 = arith.constant 48 : index
    %c0_332 = arith.constant 0 : index
    %452 = vector.load %arg13[%c48_331, %c0_332] : memref<160x16xf32, #tpu.memory_space<vmem>>, vector<8x16xf32>
    %453 = arith.subf %452, %407 : vector<8x16xf32>
    %454 = math.exp %453 : vector<8x16xf32>
    %455 = arith.addf %448, %454 : vector<8x16xf32>
    %c6_i32_333 = arith.constant 6 : i32
    %456 = vector.broadcast %c6_i32_333 : i32 to vector<8x16xi32>
    %457 = arith.cmpi eq, %4, %456 : vector<8x16xi32>
    %458 = arith.select %457, %452, %451 : vector<8x16xi1>, vector<8x16xf32>
    %c56_334 = arith.constant 56 : index
    %c0_335 = arith.constant 0 : index
    %459 = vector.load %arg13[%c56_334, %c0_335] : memref<160x16xf32, #tpu.memory_space<vmem>>, vector<8x16xf32>
    %460 = arith.subf %459, %407 : vector<8x16xf32>
    %461 = math.exp %460 : vector<8x16xf32>
    %462 = arith.addf %455, %461 : vector<8x16xf32>
    %c7_i32_336 = arith.constant 7 : i32
    %463 = vector.broadcast %c7_i32_336 : i32 to vector<8x16xi32>
    %464 = arith.cmpi eq, %4, %463 : vector<8x16xi32>
    %465 = arith.select %464, %459, %458 : vector<8x16xi1>, vector<8x16xf32>
    %c64_337 = arith.constant 64 : index
    %c0_338 = arith.constant 0 : index
    %466 = vector.load %arg13[%c64_337, %c0_338] : memref<160x16xf32, #tpu.memory_space<vmem>>, vector<8x16xf32>
    %467 = arith.subf %466, %407 : vector<8x16xf32>
    %468 = math.exp %467 : vector<8x16xf32>
    %469 = arith.addf %462, %468 : vector<8x16xf32>
    %c8_i32_339 = arith.constant 8 : i32
    %470 = vector.broadcast %c8_i32_339 : i32 to vector<8x16xi32>
    %471 = arith.cmpi eq, %4, %470 : vector<8x16xi32>
    %472 = arith.select %471, %466, %465 : vector<8x16xi1>, vector<8x16xf32>
    %c72_340 = arith.constant 72 : index
    %c0_341 = arith.constant 0 : index
    %473 = vector.load %arg13[%c72_340, %c0_341] : memref<160x16xf32, #tpu.memory_space<vmem>>, vector<8x16xf32>
    %474 = arith.subf %473, %407 : vector<8x16xf32>
    %475 = math.exp %474 : vector<8x16xf32>
    %476 = arith.addf %469, %475 : vector<8x16xf32>
    %c9_i32_342 = arith.constant 9 : i32
    %477 = vector.broadcast %c9_i32_342 : i32 to vector<8x16xi32>
    %478 = arith.cmpi eq, %4, %477 : vector<8x16xi32>
    %479 = arith.select %478, %473, %472 : vector<8x16xi1>, vector<8x16xf32>
    %c80_343 = arith.constant 80 : index
    %c0_344 = arith.constant 0 : index
    %480 = vector.load %arg13[%c80_343, %c0_344] : memref<160x16xf32, #tpu.memory_space<vmem>>, vector<8x16xf32>
    %481 = arith.subf %480, %407 : vector<8x16xf32>
    %482 = math.exp %481 : vector<8x16xf32>
    %483 = arith.addf %476, %482 : vector<8x16xf32>
    %c10_i32_345 = arith.constant 10 : i32
    %484 = vector.broadcast %c10_i32_345 : i32 to vector<8x16xi32>
    %485 = arith.cmpi eq, %4, %484 : vector<8x16xi32>
    %486 = arith.select %485, %480, %479 : vector<8x16xi1>, vector<8x16xf32>
    %c88_346 = arith.constant 88 : index
    %c0_347 = arith.constant 0 : index
    %487 = vector.load %arg13[%c88_346, %c0_347] : memref<160x16xf32, #tpu.memory_space<vmem>>, vector<8x16xf32>
    %488 = arith.subf %487, %407 : vector<8x16xf32>
    %489 = math.exp %488 : vector<8x16xf32>
    %490 = arith.addf %483, %489 : vector<8x16xf32>
    %c11_i32_348 = arith.constant 11 : i32
    %491 = vector.broadcast %c11_i32_348 : i32 to vector<8x16xi32>
    %492 = arith.cmpi eq, %4, %491 : vector<8x16xi32>
    %493 = arith.select %492, %487, %486 : vector<8x16xi1>, vector<8x16xf32>
    %c96_349 = arith.constant 96 : index
    %c0_350 = arith.constant 0 : index
    %494 = vector.load %arg13[%c96_349, %c0_350] : memref<160x16xf32, #tpu.memory_space<vmem>>, vector<8x16xf32>
    %495 = arith.subf %494, %407 : vector<8x16xf32>
    %496 = math.exp %495 : vector<8x16xf32>
    %497 = arith.addf %490, %496 : vector<8x16xf32>
    %c12_i32_351 = arith.constant 12 : i32
    %498 = vector.broadcast %c12_i32_351 : i32 to vector<8x16xi32>
    %499 = arith.cmpi eq, %4, %498 : vector<8x16xi32>
    %500 = arith.select %499, %494, %493 : vector<8x16xi1>, vector<8x16xf32>
    %c104_352 = arith.constant 104 : index
    %c0_353 = arith.constant 0 : index
    %501 = vector.load %arg13[%c104_352, %c0_353] : memref<160x16xf32, #tpu.memory_space<vmem>>, vector<8x16xf32>
    %502 = arith.subf %501, %407 : vector<8x16xf32>
    %503 = math.exp %502 : vector<8x16xf32>
    %504 = arith.addf %497, %503 : vector<8x16xf32>
    %c13_i32_354 = arith.constant 13 : i32
    %505 = vector.broadcast %c13_i32_354 : i32 to vector<8x16xi32>
    %506 = arith.cmpi eq, %4, %505 : vector<8x16xi32>
    %507 = arith.select %506, %501, %500 : vector<8x16xi1>, vector<8x16xf32>
    %c112_355 = arith.constant 112 : index
    %c0_356 = arith.constant 0 : index
    %508 = vector.load %arg13[%c112_355, %c0_356] : memref<160x16xf32, #tpu.memory_space<vmem>>, vector<8x16xf32>
    %509 = arith.subf %508, %407 : vector<8x16xf32>
    %510 = math.exp %509 : vector<8x16xf32>
    %511 = arith.addf %504, %510 : vector<8x16xf32>
    %c14_i32_357 = arith.constant 14 : i32
    %512 = vector.broadcast %c14_i32_357 : i32 to vector<8x16xi32>
    %513 = arith.cmpi eq, %4, %512 : vector<8x16xi32>
    %514 = arith.select %513, %508, %507 : vector<8x16xi1>, vector<8x16xf32>
    %c120_358 = arith.constant 120 : index
    %c0_359 = arith.constant 0 : index
    %515 = vector.load %arg13[%c120_358, %c0_359] : memref<160x16xf32, #tpu.memory_space<vmem>>, vector<8x16xf32>
    %516 = arith.subf %515, %407 : vector<8x16xf32>
    %517 = math.exp %516 : vector<8x16xf32>
    %518 = arith.addf %511, %517 : vector<8x16xf32>
    %c15_i32_360 = arith.constant 15 : i32
    %519 = vector.broadcast %c15_i32_360 : i32 to vector<8x16xi32>
    %520 = arith.cmpi eq, %4, %519 : vector<8x16xi32>
    %521 = arith.select %520, %515, %514 : vector<8x16xi1>, vector<8x16xf32>
    %c128_361 = arith.constant 128 : index
    %c0_362 = arith.constant 0 : index
    %522 = vector.load %arg13[%c128_361, %c0_362] : memref<160x16xf32, #tpu.memory_space<vmem>>, vector<8x16xf32>
    %523 = arith.subf %522, %407 : vector<8x16xf32>
    %524 = math.exp %523 : vector<8x16xf32>
    %525 = arith.addf %518, %524 : vector<8x16xf32>
    %c16_i32_363 = arith.constant 16 : i32
    %526 = vector.broadcast %c16_i32_363 : i32 to vector<8x16xi32>
    %527 = arith.cmpi eq, %4, %526 : vector<8x16xi32>
    %528 = arith.select %527, %522, %521 : vector<8x16xi1>, vector<8x16xf32>
    %c136_364 = arith.constant 136 : index
    %c0_365 = arith.constant 0 : index
    %529 = vector.load %arg13[%c136_364, %c0_365] : memref<160x16xf32, #tpu.memory_space<vmem>>, vector<8x16xf32>
    %530 = arith.subf %529, %407 : vector<8x16xf32>
    %531 = math.exp %530 : vector<8x16xf32>
    %532 = arith.addf %525, %531 : vector<8x16xf32>
    %c17_i32_366 = arith.constant 17 : i32
    %533 = vector.broadcast %c17_i32_366 : i32 to vector<8x16xi32>
    %534 = arith.cmpi eq, %4, %533 : vector<8x16xi32>
    %535 = arith.select %534, %529, %528 : vector<8x16xi1>, vector<8x16xf32>
    %c144_367 = arith.constant 144 : index
    %c0_368 = arith.constant 0 : index
    %536 = vector.load %arg13[%c144_367, %c0_368] : memref<160x16xf32, #tpu.memory_space<vmem>>, vector<8x16xf32>
    %537 = arith.subf %536, %407 : vector<8x16xf32>
    %538 = math.exp %537 : vector<8x16xf32>
    %539 = arith.addf %532, %538 : vector<8x16xf32>
    %c18_i32_369 = arith.constant 18 : i32
    %540 = vector.broadcast %c18_i32_369 : i32 to vector<8x16xi32>
    %541 = arith.cmpi eq, %4, %540 : vector<8x16xi32>
    %542 = arith.select %541, %536, %535 : vector<8x16xi1>, vector<8x16xf32>
    %c152_370 = arith.constant 152 : index
    %c0_371 = arith.constant 0 : index
    %543 = vector.load %arg13[%c152_370, %c0_371] : memref<160x16xf32, #tpu.memory_space<vmem>>, vector<8x16xf32>
    %544 = arith.subf %543, %407 : vector<8x16xf32>
    %545 = math.exp %544 : vector<8x16xf32>
    %546 = arith.addf %539, %545 : vector<8x16xf32>
    %c19_i32_372 = arith.constant 19 : i32
    %547 = vector.broadcast %c19_i32_372 : i32 to vector<8x16xi32>
    %548 = arith.cmpi eq, %4, %547 : vector<8x16xi32>
    %549 = arith.select %548, %543, %542 : vector<8x16xi1>, vector<8x16xf32>
    %550 = math.log %546 : vector<8x16xf32>
    %551 = arith.addf %407, %550 : vector<8x16xf32>
    %552 = arith.subf %551, %549 : vector<8x16xf32>
    %c0_373 = arith.constant 0 : index
    %c0_374 = arith.constant 0 : index
    %553 = vector.load %arg14[%c0_373, %c0_374] : memref<8x16xf32, #tpu.memory_space<vmem>>, vector<8x16xf32>
    %cst_375 = arith.constant 4.000000e-01 : f32
    %554 = vector.broadcast %cst_375 : f32 to vector<8x16xf32>
    %555 = arith.mulf %554, %8 : vector<8x16xf32>
    %556 = arith.mulf %555, %552 : vector<8x16xf32>
    %557 = arith.addf %553, %556 : vector<8x16xf32>
    %c0_376 = arith.constant 0 : index
    %c0_377 = arith.constant 0 : index
    %558 = vector.load %arg14[%c0_376, %c0_377] : memref<8x16xf32, #tpu.memory_space<vmem>>, vector<8x16xf32>
    tpu.vector_store %arg14[%c0_376, %c0_377], %557 {strides = array<i32>} : memref<8x16xf32, #tpu.memory_space<vmem>>, vector<8x16xf32>,
    %c0_378 = arith.constant 0 : index
    %c0_379 = arith.constant 0 : index
    %559 = vector.load %arg15[%c0_378, %c0_379] : memref<8x16xf32, #tpu.memory_space<vmem>>, vector<8x16xf32>
    %560 = arith.addf %559, %8 : vector<8x16xf32>
    %c0_380 = arith.constant 0 : index
    %c0_381 = arith.constant 0 : index
    %561 = vector.load %arg15[%c0_380, %c0_381] : memref<8x16xf32, #tpu.memory_space<vmem>>, vector<8x16xf32>
    tpu.vector_store %arg15[%c0_380, %c0_381], %560 {strides = array<i32>} : memref<8x16xf32, #tpu.memory_space<vmem>>, vector<8x16xf32>,
    %c1_i32_382 = arith.constant 1 : i32
    %562 = arith.cmpi eq, %arg1, %c1_i32_382 : i32
    %563 = arith.extui %562 : i1 to i32
    %c0_i32_383 = arith.constant 0 : i32
    %564 = arith.cmpi ne, %563, %c0_i32_383 : i32
    scf.if %564 {
      %c0_384 = arith.constant 0 : index
      %c0_385 = arith.constant 0 : index
      %565 = vector.load %arg14[%c0_384, %c0_385] : memref<8x16xf32, #tpu.memory_space<vmem>>, vector<8x16xf32>
      %566 = vector.shape_cast %565 : vector<8x16xf32> to vector<1x8x16xf32>
      %cst_386 = arith.constant dense<0.000000e+00> : vector<1xf32>
      %567 = vector.multi_reduction <add>, %566, %cst_386 [1, 2] : vector<1x8x16xf32> to vector<1xf32>
      %568 = vector.shape_cast %567 : vector<1xf32> to vector<1x1x1xf32>
      %569 = vector.extract %568[0, 0, 0] : f32 from vector<1x1x1xf32>
      %570 = vector.broadcast %569 : f32 to vector<1x1x128xf32>
      %c0_387 = arith.constant 0 : index
      %c0_388 = arith.constant 0 : index
      %c0_389 = arith.constant 0 : index
      %571 = vector.load %arg9[%c0_387, %c0_388, %c0_389] : memref<1x1x128xf32, #tpu.memory_space<vmem>>, vector<1x1x128xf32>
      tpu.vector_store %arg9[%c0_387, %c0_388, %c0_389], %570 {strides = array<i32>} : memref<1x1x128xf32, #tpu.memory_space<vmem>>, vector<1x1x128xf32>,
      %c0_390 = arith.constant 0 : index
      %c0_391 = arith.constant 0 : index
      %572 = vector.load %arg15[%c0_390, %c0_391] : memref<8x16xf32, #tpu.memory_space<vmem>>, vector<8x16xf32>
      %573 = vector.shape_cast %572 : vector<8x16xf32> to vector<1x8x16xf32>
      %cst_392 = arith.constant dense<0.000000e+00> : vector<1xf32>
      %574 = vector.multi_reduction <add>, %573, %cst_392 [1, 2] : vector<1x8x16xf32> to vector<1xf32>
      %575 = vector.shape_cast %574 : vector<1xf32> to vector<1x1x1xf32>
      %576 = vector.extract %575[0, 0, 0] : f32 from vector<1x1x1xf32>
      %577 = vector.broadcast %576 : f32 to vector<1x1x128xf32>
      %c0_393 = arith.constant 0 : index
      %c0_394 = arith.constant 0 : index
      %c0_395 = arith.constant 0 : index
      %578 = vector.load %arg10[%c0_393, %c0_394, %c0_395] : memref<1x1x128xf32, #tpu.memory_space<vmem>>, vector<1x1x128xf32>
      tpu.vector_store %arg10[%c0_393, %c0_394, %c0_395], %577 {strides = array<i32>} : memref<1x1x128xf32, #tpu.memory_space<vmem>>, vector<1x1x128xf32>,
    } else {
    }
    return
  }
  func.func @transform_0(%arg0: i32, %arg1: i32) -> (i32, i32, i32, i32) {
    %c0_i32 = arith.constant 0 : i32
    %c0_i32_0 = arith.constant 0 : i32
    %c0_i32_1 = arith.constant 0 : i32
    %c0_i32_2 = arith.constant 0 : i32
    return %arg0, %c0_i32, %c0_i32_0, %c0_i32_1 : i32, i32, i32, i32
  }
  func.func @transform_1(%arg0: i32, %arg1: i32) -> (i32, i32) {
    %c0_i32 = arith.constant 0 : i32
    %c0_i32_0 = arith.constant 0 : i32
    return %arg1, %c0_i32 : i32, i32
  }
  func.func @transform_2(%arg0: i32, %arg1: i32) -> (i32, i32) {
    %c0_i32 = arith.constant 0 : i32
    %c0_i32_0 = arith.constant 0 : i32
    %c0_i32_1 = arith.constant 0 : i32
    return %c0_i32, %c0_i32_0 : i32, i32
  }
  func.func @transform_3(%arg0: i32, %arg1: i32) -> (i32, i32, i32, i32) {
    %c0_i32 = arith.constant 0 : i32
    %c0_i32_0 = arith.constant 0 : i32
    %c0_i32_1 = arith.constant 0 : i32
    %c0_i32_2 = arith.constant 0 : i32
    return %arg0, %c0_i32, %c0_i32_0, %c0_i32_1 : i32, i32, i32, i32
  }
  func.func @transform_4(%arg0: i32, %arg1: i32) -> (i32, i32) {
    %c0_i32 = arith.constant 0 : i32
    %c0_i32_0 = arith.constant 0 : i32
    return %arg1, %c0_i32 : i32, i32
  }
  func.func @transform_5(%arg0: i32, %arg1: i32) -> (i32, i32) {
    %c0_i32 = arith.constant 0 : i32
    %c0_i32_0 = arith.constant 0 : i32
    %c0_i32_1 = arith.constant 0 : i32
    return %c0_i32, %c0_i32_0 : i32, i32
  }
  func.func @transform_6(%arg0: i32, %arg1: i32) -> (i32, i32, i32) {
    %c0_i32 = arith.constant 0 : i32
    %c0_i32_0 = arith.constant 0 : i32
    return %arg0, %arg1, %c0_i32 : i32, i32, i32
  }
  func.func @transform_7(%arg0: i32, %arg1: i32) -> (i32, i32, i32) {
    %c0_i32 = arith.constant 0 : i32
    %c0_i32_0 = arith.constant 0 : i32
    %c0_i32_1 = arith.constant 0 : i32
    return %arg0, %c0_i32, %c0_i32_0 : i32, i32, i32
  }
  func.func @transform_8(%arg0: i32, %arg1: i32) -> (i32, i32, i32) {
    %c0_i32 = arith.constant 0 : i32
    %c0_i32_0 = arith.constant 0 : i32
    %c0_i32_1 = arith.constant 0 : i32
    return %arg0, %c0_i32, %c0_i32_0 : i32, i32, i32
  }
}

</mosaic_0001>

<bundles_post_ra>
// kernel: tpu_custom_call.1
= control target key start
LH: loop header
LB: loop body
LE: loop exit
PB: predicated region body
PF: predicated region fallthrough
CT: control target
= control target key end

     0   :  { %s4938_s0 = inlined_call_operand.vmem [shape: bf16[2,20,8,8], index: 0, kind: input, shape index: {}]   ;;  %s4939_s1 = inlined_call_operand.vmem [shape: bf16[16,8], index: 1, kind: input, shape index: {}]   ;;  %s4940_s2 = inlined_call_operand.vmem [shape: bf16[8,16], index: 2, kind: input, shape index: {}]   ;;  %s4941_s3 = inlined_call_operand.vmem [shape: bf16[2,20,4,4], index: 3, kind: input, shape index: {}]   ;;  %s4942_s4 = inlined_call_operand.vmem [shape: bf16[16,4], index: 4, kind: input, shape index: {}]   ;;  %s4943_s5 = inlined_call_operand.vmem [shape: bf16[4,16], index: 5, kind: input, shape index: {}]   ;;  %s4944_s6 = inlined_call_operand.vmem [shape: s32[2,16,16], index: 6, kind: input, shape index: {}]   ;;  %s4945_s7 = inlined_call_operand.hbm [shape: f32[2,1,128], index: 7, kind: output, shape index: {0}]   ;;  %s4946_s8 = inlined_call_operand.hbm [shape: f32[2,1,128], index: 8, kind: output, shape index: {1}]  }
   0x1   :  { %4964 = sst [smem:[#allocation23_spill]] %s4946_s8 }
   0x2   :  { %14 = vsyncpa [#allocation8], 0 }
   0x3   :  { %16 = vsyncpa [#allocation8 + $0x1], 0 }
   0x4   :  { %17 = vsyncpa [#allocation10], 0 }
   0x5   :  { %19 = vsyncpa [#allocation10 + $0x1], 0  ;;  %s4047_s27 = smov 0   ;;  %s4049_s28 = smov 0  }
   0x6   :  { %s4051_s29 = smov 0   ;;  %s4053_s30 = smov 0  }
   0x7   :  { %s4055_s9 = smov 0   ;;  %s4057_s10 = smov 0  }
   0x8   :  { %s4059_s11 = smov 0   ;;  %s4061_s12 = smov 0  }
   0x9 LB: > { %4965 = sst [smem:[#allocation13_spill]] %s3967_s27  ;;  %s3193_s13 = sadd.s32 4294967295, %s3995_s12   ;;  %s3995_s12 = sphi %s4061_s12, %s25_s12   ;;  %s3991_s11 = sphi %s4059_s11, %s4995_s11   ;;  %s3987_s10 = sphi %s4057_s10, %s4994_s10   ;;  %s3983_s9 = sphi %s4055_s9, %s4993_s9   ;;  %s3979_s30 = sphi %s4053_s30, %s4992_s30   ;;  %s3975_s29 = sphi %s4051_s29, %s4991_s29   ;;  %s3971_s28 = sphi %s4049_s28, %s4990_s28   ;;  %s3967_s27 = sphi %s4047_s27, %s4989_s27  }
   0xa   : > { %4966 = sst [smem:[#allocation14_spill]] %s3971_s28  ;;  %s3194_s14 = sadd.s32 4294967294, %s3995_s12  }
   0xb   : > { %4967 = sst [smem:[#allocation15_spill]] %s3975_s29  ;;  %s34_s15 = sadd.s32 1, %s3987_s10 }
   0xc   : > { %4968 = sst [smem:[#allocation16_spill]] %s3987_s10  ;;  %p35_p0 = scmp.ge.s32.totalorder %s34_s15, 2 }
   0xd   : > { %4969 = sst [smem:[#allocation17_spill]] %s3991_s11  ;;  %s37_s16 = sadd.s32 1, %s3991_s11 }
   0xe   : > { %4970 = sst [smem:[#allocation18_spill]] %s3995_s12  ;;  %p228_p1 = scmp.ne.s32.totalorder %s3975_s29, %s3971_s28 }
   0xf   : > { %p229_p2 = scmp.eq.s32.totalorder %s3193_s13, 3  ;;  %s4997_s15 = smov (%p35_p0, %s34_s15), 0 }
  0x10   : > { %4971 = sst [smem:[#allocation19_spill]] %s4997_s15  ;;  %s4999_s16 = smov (!%p35_p0, %s37_s16), %s3991_s11 }
  0x11   : > { %p4096_p3 = por %p229_p2, %p228_p1  ;;  %p234_p4 = scmp.ne.s32.totalorder %s3971_s28, %s3967_s27 }
  0x12   : > { %p39_p5 = scmp.ge.s32.totalorder %s4999_s16, 2  ;;  %p235_p6 = scmp.eq.s32.totalorder %s3194_s14, 3 }
  0x13   : > { %p3197_p7 = scmp.ge.s32.totalorder %s3995_s12, 1  ;;  %p326_p8 = scmp.lt.s32.totalorder %s3995_s12, 5 }
  0x14   : > { %s5001_s16 = smov (%p39_p5, %s4999_s16), 0  ;;  %p4106_p9 = por %p235_p6, %p234_p4 }
  0x15   : > { %4973 = sst [smem:[#allocation20_spill]] %s5001_s16  ;;  %p327_p10 = pnand %p3197_p7, %p326_p8 }
  0x16   : > { %s4974_s18 = scalar_select %p4106_p9, 1, 0 }
  0x17   : > { %s215_s19 = ssub.s32 %s3991_s11, %s5001_s16  ;;  %s218_s20 = sadd.s32 1, %s3975_s29 }
  0x18   : > { %4975 = sst [smem:[#allocation21_spill]] %s4974_s18  ;;  %p216_p11 = scmp.eq.s32.totalorder %s215_s19, 0 }
  0x19   : > { %330 = sbr.rel (%p327_p10) target bundleno = 1195 (0x4ab), region = 48  ;;  %s4117_s22 = sand.u32 (!%p327_p10), 1, %s3971_s28  }
  0x1a   : > { %s4114_s21 = scalar_select %p216_p11, %s3975_s29, %s218_s20  }
  0x1b   : > { %p384_p12 = scmp.lt.s32.totalorder (!%p327_p10), %s3983_s9, 1  ;;  %p389_p13 = scmp.lt.s32.totalorder (!%p327_p10), %s3979_s30, 1 }
  0x1c   : > { %4976 = sst [smem:[#allocation22_spill]] %s4114_s21  ;;  %p3204_p0 = scmp.ne.s32.totalorder (!%p327_p10), %s3979_s30, 0 }
  0x20   : > { %s385_s23 = scalar_select %p384_p12, %s3983_s9, 1 }
  0x21   : > { %s390_s26 = scalar_select %p389_p13, %s3979_s30, 1 }
  0x22   : > { %s3700_s24 = smul.u32 80, %s385_s23  ;;  %s3202_s25 = sshll.u32 %s385_s23, 1  ;;  %vm415_vm0 = vcmask (!%p3204_p0), 130048   ;;  %v3997_v0 = vmov (!%p3204_p0), 0.0  }
  0x23   : > { %s3701_s20 = smul.u32 40, %s385_s23  ;;  %s3199_s16 = sshll.u32 %s390_s26, 2  ;;  %416 = vst.msk [vmem:[#allocation5] sm:$0xff] (!%p3204_p0), %vm415_vm0, %v3997_v0  ;;  %417 = vst.msk [vmem:[#allocation6] sm:$0xff] (!%p3204_p0), %vm415_vm0, %v3997_v0 }
  0x24   : > { %s4126_s19 = scalar_lea.vmem %s4938_s0, %s3700_s24  ;;  %s407_s15 = sadd.s32 %s3202_s25, %s390_s26 }
  0x25   : > { %s392_s21 = scalar_lea.vmem %s4939_s1, %s3199_s16  ;;  %s4134_s18 = scalar_lea.vmem %s4941_s3, %s3701_s20 }
  0x26   : > { %s4139_s8 = scalar_lea.vmem %s4942_s4, %s3199_s16  ;;  %s3203_s13 = sshll.u32 %s407_s15, 3 }
  0x27   : > { %s4144_s23 = scalar_lea.vmem %s4944_s6, %s3203_s13  ;;  %s377_s25 = scalar_lea.vmem [#allocation7], %s4117_s22 }
  0x28   : > { %s383_s26 = scalar_lea.vmem [#allocation9], %s4117_s22  ;;  %414 = sbr.rel (%p3204_p0) target bundleno = 47 (0x2f), region = 52 }
  0x2f PF: > { %v423_v1 = vld [vmem:[%s4126_s19] sm:$0xf]  ;;  %vm428_vm1 = vcmask 1043456   ;;  %v3207_v2 = vld [vmem:[%s4126_s19 + $0x4] sm:$0xf]  ;;  %v3998_v3 = vmov 0.0  }
  0x30   : > { %3411 = vmatprep.subr.bf16.mxu0 %v3998_v3  ;;  %3417 = vmatprep.subr.bf16.mxu1 %v3998_v3  ;;  %v430_v4 = vsel %vm428_vm1, %v423_v1, 0  ;;  %v476_v5 = vsel %vm428_vm1, %v3207_v2, 0  ;;  %v4155_v6 = vld [vmem:[%s392_s21] sm:$0xf]  ;;  %vm424_vm2 = vcmask 64512   ;;  %vm3999_vm3 = vmmov 0  }
  0x31   : > { %3412 = vmatpush3.bf16.msra.mxu0 %v430_v4  ;;  %3418 = vmatpush3.bf16.msra.mxu1 %v476_v5  ;;  %v3209_v7 = vld [vmem:[%s4126_s19 + $0x8] sm:$0xf]  ;;  %v3211_v8 = vld [vmem:[%s4126_s19 + $0xc] sm:$0xf]  ;;  %v3213_v11 = vld [vmem:[%s4126_s19 + $0x10] sm:$0xf] }
  0x32   : > { %3413 = vmatprep.mubr.msk.bf16.mxu0 %vm3999_vm3, %v3998_v3  ;;  %3419 = vmatprep.mubr.msk.bf16.mxu1 %vm3999_vm3, %v3998_v3  ;;  %v522_v9 = vsel %vm428_vm1, %v3209_v7, 0  ;;  %v568_v10 = vsel %vm428_vm1, %v3211_v8, 0  ;;  %v3215_v12 = vld [vmem:[%s4126_s19 + $0x14] sm:$0xf]  ;;  %v614_v13 = vsel %vm428_vm1, %v3213_v11, 0  ;;  %vm1718_vm4 = vcmask 1041408  }
  0x33   : > { %3423 = vmatprep.subr.bf16.mxu0 %v3998_v3  ;;  %3429 = vmatprep.subr.bf16.mxu1 %v3998_v3  ;;  %v660_v14 = vsel %vm428_vm1, %v3215_v12, 0  ;;  %v3217_v15 = vld [vmem:[%s4126_s19 + $0x18] sm:$0xf]  ;;  %v3219_v16 = vld [vmem:[%s4126_s19 + $0x1c] sm:$0xf]  ;;  %vm1714_vm5 = vcmask 31744  }
  0x34   : > { %3414 = vmatmul.mubr.msk.bf16.vlgmr.msra.gmra.mrb[0].mxu0 %vm424_vm2, %v4155_v6  ;;  %3420 = vmatmul.mubr.msk.bf16.vlgmr.msra.gmra.mrb[0].mxu1 %vm424_vm2, %v4155_v6  ;;  %v706_v17 = vsel %vm428_vm1, %v3217_v15, 0  ;;  %v752_v18 = vsel %vm428_vm1, %v3219_v16, 0  ;;  %v3221_v19 = vld [vmem:[%s4126_s19 + $0x20] sm:$0xf]  ;;  %v3223_v20 = vld [vmem:[%s4126_s19 + $0x24] sm:$0xf] }
  0x35   : > { %3424 = vmatpush3.bf16.msra.mxu0 %v522_v9  ;;  %3430 = vmatpush3.bf16.msra.mxu1 %v568_v10  ;;  %v798_v21 = vsel %vm428_vm1, %v3221_v19, 0  ;;  %v844_v22 = vsel %vm428_vm1, %v3223_v20, 0  ;;  %v3225_v23 = vld [vmem:[%s4126_s19 + $0x28] sm:$0xf]  ;;  %v3227_v24 = vld [vmem:[%s4126_s19 + $0x2c] sm:$0xf] }
  0x36   : > { %3425 = vmatprep.mubr.msk.bf16.mxu0 %vm3999_vm3, %v3998_v3  ;;  %3431 = vmatprep.mubr.msk.bf16.mxu1 %vm3999_vm3, %v3998_v3  ;;  %v890_v25 = vsel %vm428_vm1, %v3225_v23, 0  ;;  %v936_v26 = vsel %vm428_vm1, %v3227_v24, 0  ;;  %v3229_v27 = vld [vmem:[%s4126_s19 + $0x30] sm:$0xf]  ;;  %v3231_v28 = vld [vmem:[%s4126_s19 + $0x34] sm:$0xf] }
  0x37   : > { %3435 = vmatprep.subr.bf16.mxu0 %v3998_v3  ;;  %3441 = vmatprep.subr.bf16.mxu1 %v3998_v3  ;;  %v982_v29 = vsel %vm428_vm1, %v3229_v27, 0  ;;  %v1028_v30 = vsel %vm428_vm1, %v3231_v28, 0  ;;  %v3233_v31 = vld [vmem:[%s4126_s19 + $0x38] sm:$0xf]  ;;  %v3235_v32 = vld [vmem:[%s4126_s19 + $0x3c] sm:$0xf] }
  0x38   : > { %v1074_v33 = vsel %vm428_vm1, %v3233_v31, 0  ;;  %v1120_v34 = vsel %vm428_vm1, %v3235_v32, 0  ;;  %v3237_v35 = vld [vmem:[%s4126_s19 + $0x40] sm:$0xf]  ;;  %v3239_v36 = vld [vmem:[%s4126_s19 + $0x44] sm:$0xf] }
  0x39   : > { %v1166_v37 = vsel %vm428_vm1, %v3237_v35, 0  ;;  %v1212_v38 = vsel %vm428_vm1, %v3239_v36, 0  ;;  %v3241_v39 = vld [vmem:[%s4126_s19 + $0x48] sm:$0xf]  ;;  %v3243_v40 = vld [vmem:[%s4126_s19 + $0x4c] sm:$0xf] }
  0x3a   : > { %v1258_v41 = vsel %vm428_vm1, %v3241_v39, 0  ;;  %v1304_v42 = vsel %vm428_vm1, %v3243_v40, 0  ;;  %v1377_v43 = vld [vmem:[%s4940_s2] sm:$0xf]  ;;  %v3258_v50 = vld [vmem:[%s4134_s18 + $0x4] sm:$0x3] }
  0x3b   : > { %v1409_v44 = vsel %vm428_vm1, %v1377_v43, 0  ;;  %v1713_v45 = vld [vmem:[%s4134_s18] sm:$0x3]  ;;  %v3256_v48 = vld [vmem:[%s4134_s18 + $0x2] sm:$0x3]  ;;  %v1812_v51 = vsel %vm1718_vm4, %v3258_v50, 0 }
  0x3c   : > { %3426 = vmatmul.mubr.msk.bf16.vlgmr.msra.gmra.mrb[4].mxu0 %vm424_vm2, %v4155_v6  ;;  %3432 = vmatmul.mubr.msk.bf16.vlgmr.msra.gmra.mrb[4].mxu1 %vm424_vm2, %v4155_v6  ;;  %v1720_v46 = vsel %vm1718_vm4, %v1713_v45, 0  ;;  %v4304_v47 = vld [vmem:[%s4139_s8] sm:$0xf]  ;;  %v1766_v49 = vsel %vm1718_vm4, %v3256_v48, 0  ;;  %v3260_v52 = vld [vmem:[%s4134_s18 + $0x6] sm:$0x3] }
  0x3d   : > { %3436 = vmatpush3.bf16.msra.mxu0 %v614_v13  ;;  %3442 = vmatpush3.bf16.msra.mxu1 %v660_v14  ;;  %v1858_v53 = vsel %vm1718_vm4, %v3260_v52, 0  ;;  %v3262_v54 = vld [vmem:[%s4134_s18 + $0x8] sm:$0x3]  ;;  %v3266_v56 = vld [vmem:[%s4134_s18 + $0xc] sm:$0x3]  ;;  %vm1524_vm6 = vcmask 130048  }
  0x3e   : > { %3437 = vmatprep.mubr.msk.bf16.mxu0 %vm3999_vm3, %v3998_v3  ;;  %3443 = vmatprep.mubr.msk.bf16.mxu1 %vm3999_vm3, %v3998_v3  ;;  %v1904_v55 = vsel %vm1718_vm4, %v3262_v54, 0  ;;  %v1996_v57 = vsel %vm1718_vm4, %v3266_v56, 0  ;;  %v3270_v58 = vld [vmem:[%s4134_s18 + $0x10] sm:$0x3]  ;;  %v3274_v60 = vld [vmem:[%s4134_s18 + $0x14] sm:$0x3] }
  0x3f   : > { %3447 = vmatprep.subr.bf16.mxu0 %v3998_v3  ;;  %3453 = vmatprep.subr.bf16.mxu1 %v3998_v3  ;;  %v2088_v59 = vsel %vm1718_vm4, %v3270_v58, 0  ;;  %v2180_v61 = vsel %vm1718_vm4, %v3274_v60, 0  ;;  %v3278_v62 = vld [vmem:[%s4134_s18 + $0x18] sm:$0x3]  ;;  %v3282_v0 = vld [vmem:[%s4134_s18 + $0x1c] sm:$0x3] }
  0x40   : > { %v2272_v63 = vsel %vm1718_vm4, %v3278_v62, 0  ;;  %v2364_v1 = vsel %vm1718_vm4, %v3282_v0, 0  ;;  %v3286_v11 = vld [vmem:[%s4134_s18 + $0x20] sm:$0x3]  ;;  %v3290_v24 = vld [vmem:[%s4134_s18 + $0x24] sm:$0x3] }
  0x41   : > { %v2456_v12 = vsel %vm1718_vm4, %v3286_v11, 0  ;;  %p3304_p1 = scmp.ne.s32.totalorder %s3979_s30, 1 }
  0x44   : > { %3438 = vmatmul.mubr.msk.bf16.vlgmr.msra.gmra.mrb[8].mxu0 %vm424_vm2, %v4155_v6  ;;  %3444 = vmatmul.mubr.msk.bf16.vlgmr.msra.gmra.mrb[8].mxu1 %vm424_vm2, %v4155_v6 }
  0x45   : > { %3448 = vmatpush3.bf16.msra.mxu0 %v706_v17  ;;  %3454 = vmatpush3.bf16.msra.mxu1 %v752_v18 }
  0x46   : > { %3449 = vmatprep.mubr.msk.bf16.mxu0 %vm3999_vm3, %v3998_v3  ;;  %3455 = vmatprep.mubr.msk.bf16.mxu1 %vm3999_vm3, %v3998_v3 }
  0x47   : > { %3459 = vmatprep.subr.bf16.mxu0 %v3998_v3  ;;  %3465 = vmatprep.subr.bf16.mxu1 %v3998_v3 }
  0x4c   : > { %3450 = vmatmul.mubr.msk.bf16.vlgmr.msra.gmra.mrb[12].mxu0 %vm424_vm2, %v4155_v6  ;;  %3456 = vmatmul.mubr.msk.bf16.vlgmr.msra.gmra.mrb[12].mxu1 %vm424_vm2, %v4155_v6 }
  0x4d   : > { %3460 = vmatpush3.bf16.msra.mxu0 %v798_v21  ;;  %3466 = vmatpush3.bf16.msra.mxu1 %v844_v22 }
  0x4e   : > { %3461 = vmatprep.mubr.msk.bf16.mxu0 %vm3999_vm3, %v3998_v3  ;;  %3467 = vmatprep.mubr.msk.bf16.mxu1 %vm3999_vm3, %v3998_v3 }
  0x4f   : > { %3471 = vmatprep.subr.bf16.mxu0 %v3998_v3  ;;  %3477 = vmatprep.subr.bf16.mxu1 %v3998_v3 }
  0x54   : > { %3462 = vmatmul.mubr.msk.bf16.vlgmr.msra.gmra.mrb[16].mxu0 %vm424_vm2, %v4155_v6  ;;  %3468 = vmatmul.mubr.msk.bf16.vlgmr.msra.gmra.mrb[16].mxu1 %vm424_vm2, %v4155_v6 }
  0x55   : > { %3472 = vmatpush3.bf16.msra.mxu0 %v890_v25  ;;  %3478 = vmatpush3.bf16.msra.mxu1 %v936_v26  ;;  %v2548_v25 = vsel %vm1718_vm4, %v3290_v24, 0  ;;  %v3264_v26 = vld [vmem:[%s4134_s18 + $0xa] sm:$0x3] }
  0x56   : > { %3473 = vmatprep.mubr.msk.bf16.mxu0 %vm3999_vm3, %v3998_v3  ;;  %3479 = vmatprep.mubr.msk.bf16.mxu1 %vm3999_vm3, %v3998_v3 }
  0x57   : > { %3483 = vmatprep.subr.bf16.mxu0 %v3998_v3  ;;  %3489 = vmatprep.subr.bf16.mxu1 %v3998_v3 }
  0x5c   : > { %3474 = vmatmul.mubr.msk.bf16.vlgmr.msra.gmra.mrb[20].mxu0 %vm424_vm2, %v4155_v6  ;;  %3480 = vmatmul.mubr.msk.bf16.vlgmr.msra.gmra.mrb[20].mxu1 %vm424_vm2, %v4155_v6 }
  0x5d   : > { %3484 = vmatpush3.bf16.msra.mxu0 %v982_v29  ;;  %3490 = vmatpush3.bf16.msra.mxu1 %v1028_v30 }
  0x5e   : > { %3485 = vmatprep.mubr.msk.bf16.mxu0 %vm3999_vm3, %v3998_v3  ;;  %3491 = vmatprep.mubr.msk.bf16.mxu1 %vm3999_vm3, %v3998_v3 }
  0x5f   : > { %3495 = vmatprep.subr.bf16.mxu0 %v3998_v3  ;;  %3501 = vmatprep.subr.bf16.mxu1 %v3998_v3 }
  0x64   : > { %3486 = vmatmul.mubr.msk.bf16.vlgmr.msra.gmra.mrb[24].mxu0 %vm424_vm2, %v4155_v6  ;;  %3492 = vmatmul.mubr.msk.bf16.vlgmr.msra.gmra.mrb[24].mxu1 %vm424_vm2, %v4155_v6 }
  0x65   : > { %3496 = vmatpush3.bf16.msra.mxu0 %v1074_v33  ;;  %3502 = vmatpush3.bf16.msra.mxu1 %v1120_v34  ;;  %v1950_v34 = vsel %vm1718_vm4, %v3264_v26, 0 }
  0x66   : > { %3497 = vmatprep.mubr.msk.bf16.mxu0 %vm3999_vm3, %v3998_v3  ;;  %3503 = vmatprep.mubr.msk.bf16.mxu1 %vm3999_vm3, %v3998_v3 }
  0x67   : > { %3507 = vmatprep.subr.bf16.mxu0 %v3998_v3  ;;  %3513 = vmatprep.subr.bf16.mxu1 %v3998_v3 }
  0x6c   : > { %3498 = vmatmul.mubr.msk.bf16.vlgmr.msra.gmra.mrb[28].mxu0 %vm424_vm2, %v4155_v6  ;;  %3504 = vmatmul.mubr.msk.bf16.vlgmr.msra.gmra.mrb[28].mxu1 %vm424_vm2, %v4155_v6 }
  0x6d   : > { %3508 = vmatpush3.bf16.msra.mxu0 %v1166_v37  ;;  %3514 = vmatpush3.bf16.msra.mxu1 %v1212_v38 }
  0x6e   : > { %3509 = vmatprep.mubr.msk.bf16.mxu0 %vm3999_vm3, %v3998_v3  ;;  %3515 = vmatprep.mubr.msk.bf16.mxu1 %vm3999_vm3, %v3998_v3 }
  0x6f   : > { %3519 = vmatprep.subr.bf16.mxu0 %v3998_v3  ;;  %3525 = vmatprep.subr.bf16.mxu1 %v3998_v3 }
  0x74   : > { %3510 = vmatmul.mubr.msk.bf16.vlgmr.msra.gmra.mrb[32].mxu0 %vm424_vm2, %v4155_v6  ;;  %3516 = vmatmul.mubr.msk.bf16.vlgmr.msra.gmra.mrb[32].mxu1 %vm424_vm2, %v4155_v6 }
  0x75   : > { %3520 = vmatpush3.bf16.msra.mxu0 %v1258_v41  ;;  %3526 = vmatpush3.bf16.msra.mxu1 %v1304_v42 }
  0x76   : > { %3521 = vmatprep.mubr.msk.bf16.mxu0 %vm3999_vm3, %v3998_v3  ;;  %3527 = vmatprep.mubr.msk.bf16.mxu1 %vm3999_vm3, %v3998_v3 }
  0x77   : > { %3553 = vmatprep.subr.bf16.mxu1 %v3998_v3  ;;  %3697 = vmatprep.subr.msk.bf16.mxu0 %vm428_vm1, %v1377_v43 }
  0x7c   : > { %3522 = vmatmul.mubr.msk.bf16.vlgmr.msra.gmra.mrb[36].mxu0 %vm424_vm2, %v4155_v6  ;;  %3528 = vmatmul.mubr.msk.bf16.vlgmr.msra.gmra.mrb[36].mxu1 %vm424_vm2, %v4155_v6 }
  0x7d   : > { %3555 = vmatprep.mubr.msk.bf16.mxu1 %vm3999_vm3, %v3998_v3  ;;  %3532 = vmatpush3.bf16.msra.mxu0 %v1409_v44 }
  0x7e   : > { %3583 = vmatprep.subr.bf16.mxu0 %v3998_v3  ;;  %3554 = vmatpush3.bf16.msra.mxu1 %v1720_v46 }
  0x7f   : > { %3559 = vmatprep.subr.bf16.mxu1 %v3998_v3 }
  0x84   : > { %3556 = vmatmul.mubr.msk.bf16.vlgmr.msra.gmra.mrb[40].mxu1 %vm1714_vm5, %v4304_v47 }
  0x85   : > { %3561 = vmatprep.mubr.msk.bf16.mxu1 %vm3999_vm3, %v3998_v3  ;;  %3560 = vmatpush3.bf16.msra.mxu1 %v1766_v49 }
  0x86   : > { %3565 = vmatprep.subr.bf16.mxu1 %v3998_v3 }
  0x8c   : > { %3562 = vmatmul.mubr.msk.bf16.vlgmr.msra.gmra.mrb[44].mxu1 %vm1714_vm5, %v4304_v47 }
  0x8d   : > { %3567 = vmatprep.mubr.msk.bf16.mxu1 %vm3999_vm3, %v3998_v3  ;;  %3566 = vmatpush3.bf16.msra.mxu1 %v1812_v51 }
  0x8e   : > { %3571 = vmatprep.subr.bf16.mxu1 %v3998_v3 }
  0x94   : > { %3568 = vmatmul.mubr.msk.bf16.vlgmr.msra.gmra.mrb[48].mxu1 %vm1714_vm5, %v4304_v47 }
  0x95   : > { %3573 = vmatprep.mubr.msk.bf16.mxu1 %vm3999_vm3, %v3998_v3  ;;  %3572 = vmatpush3.bf16.msra.mxu1 %v1858_v53 }
  0x96   : > { %3577 = vmatprep.subr.bf16.mxu1 %v3998_v3 }
  0x9c   : > { %3574 = vmatmul.mubr.msk.bf16.vlgmr.msra.gmra.mrb[52].mxu1 %vm1714_vm5, %v4304_v47 }
  0x9d   : > { %3579 = vmatprep.mubr.msk.bf16.mxu1 %vm3999_vm3, %v3998_v3  ;;  %3578 = vmatpush3.bf16.msra.mxu1 %v1904_v55 }
  0x9e   : > { %3589 = vmatprep.subr.bf16.mxu1 %v3998_v3 }
  0xa4   : > { %3580 = vmatmul.mubr.msk.bf16.vlgmr.msra.gmra.mrb[56].mxu1 %vm1714_vm5, %v4304_v47 }
  0xa5   : > { %3591 = vmatprep.mubr.msk.bf16.mxu1 %vm3999_vm3, %v3998_v3  ;;  %3590 = vmatpush3.bf16.msra.mxu1 %v1996_v57 }
  0xa6   : > { %3601 = vmatprep.subr.bf16.mxu1 %v3998_v3 }
  0xac   : > { %3592 = vmatmul.mubr.msk.bf16.vlgmr.msra.gmra.mrb[60].mxu1 %vm1714_vm5, %v4304_v47 }
  0xad   : > { %3603 = vmatprep.mubr.msk.bf16.mxu1 %vm3999_vm3, %v3998_v3  ;;  %3602 = vmatpush3.bf16.msra.mxu1 %v2088_v59 }
  0xae   : > { %3613 = vmatprep.subr.bf16.mxu1 %v3998_v3 }
  0xb4   : > { %3604 = vmatmul.mubr.msk.bf16.vlgmr.msra.gmra.mrb[64].mxu1 %vm1714_vm5, %v4304_v47 }
  0xb5   : > { %3615 = vmatprep.mubr.msk.bf16.mxu1 %vm3999_vm3, %v3998_v3  ;;  %3614 = vmatpush3.bf16.msra.mxu1 %v2180_v61 }
  0xb6   : > { %3625 = vmatprep.subr.bf16.mxu1 %v3998_v3 }
  0xbc   : > { %3616 = vmatmul.mubr.msk.bf16.vlgmr.msra.gmra.mrb[68].mxu1 %vm1714_vm5, %v4304_v47 }
  0xbd   : > { %3627 = vmatprep.mubr.msk.bf16.mxu1 %vm3999_vm3, %v3998_v3  ;;  %3626 = vmatpush3.bf16.msra.mxu1 %v2272_v63 }
  0xbe   : > { %3637 = vmatprep.subr.bf16.mxu1 %v3998_v3 }
  0xc4   : > { %3628 = vmatmul.mubr.msk.bf16.vlgmr.msra.gmra.mrb[72].mxu1 %vm1714_vm5, %v4304_v47 }
  0xc5   : > { %3639 = vmatprep.mubr.msk.bf16.mxu1 %vm3999_vm3, %v3998_v3  ;;  %3638 = vmatpush3.bf16.msra.mxu1 %v2364_v1 }
  0xc6   : > { %3649 = vmatprep.subr.bf16.mxu1 %v3998_v3 }
  0xcc   : > { %3640 = vmatmul.mubr.msk.bf16.vlgmr.msra.gmra.mrb[76].mxu1 %vm1714_vm5, %v4304_v47 }
  0xcd   : > { %3651 = vmatprep.mubr.msk.bf16.mxu1 %vm3999_vm3, %v3998_v3  ;;  %3650 = vmatpush3.bf16.msra.mxu1 %v2456_v12 }
  0xce   : > { %3661 = vmatprep.subr.bf16.mxu1 %v3998_v3 }
  0xd4   : > { %3652 = vmatmul.mubr.msk.bf16.vlgmr.msra.gmra.mrb[80].mxu1 %vm1714_vm5, %v4304_v47 }
  0xd5   : > { %3663 = vmatprep.mubr.msk.bf16.mxu1 %vm3999_vm3, %v3998_v3  ;;  %3662 = vmatpush3.bf16.msra.mxu1 %v2548_v25 }
  0xdc   : > { %3664 = vmatmul.mubr.msk.bf16.vlgmr.msra.gmra.mrb[84].mxu1 %vm1714_vm5, %v4304_v47 }
 0x107   : > { %v466_v2 = vpop.f32.mrb[0].mxu0  ;;  %v512_v4 = vpop.f32.mrb[0].mxu1 }
 0x108   : > { %472 = vst.msk [vmem:[#allocation2] sm:$0xff] %vm424_vm2, %v466_v2  ;;  %518 = vst.msk [vmem:[#allocation2 + $0x8] sm:$0xff] %vm424_vm2, %v512_v4  ;;  %v3415_v5 = vpop.f32.mrb[1].mxu0  ;;  %v3421_v6 = vpop.f32.mrb[1].mxu1 }
 0x109   : > { %v469_v7 = vpop.f32.mrb[2].mxu0  ;;  %v515_v8 = vpop.f32.mrb[2].mxu1 }
 0x10a   : > { %v3416_v9 = vpop.f32.mrb[3].mxu0  ;;  %v3422_v10 = vpop.f32.mrb[3].mxu1 }
 0x10f   : > { %v558_v13 = vpop.f32.mrb[4].mxu0  ;;  %v604_v14 = vpop.f32.mrb[4].mxu1  ;;  %v1347_v15 = vld [vmem:[#allocation2] sm:$0xff]  ;;  %v1348_v16 = vld [vmem:[#allocation2 + $0x8] sm:$0xff] }
 0x110   : > { %564 = vst.msk [vmem:[#allocation2 + $0x10] sm:$0xff] %vm424_vm2, %v558_v13  ;;  %610 = vst.msk [vmem:[#allocation2 + $0x18] sm:$0xff] %vm424_vm2, %v604_v14  ;;  %v3427_v17 = vpop.f32.mrb[5].mxu0  ;;  %v3433_v18 = vpop.f32.mrb[5].mxu1  ;;  %v1367_v19 = vpack.c.bf16 %v1348_v16, %v1347_v15 }
 0x111   : > { %v561_v20 = vpop.f32.mrb[6].mxu0  ;;  %v607_v21 = vpop.f32.mrb[6].mxu1 }
 0x112   : > { %v3428_v22 = vpop.f32.mrb[7].mxu0  ;;  %v3434_v23 = vpop.f32.mrb[7].mxu1  ;;  %3533 = vmatprep.mubr.msk.bf16.mxu0 %vm424_vm2, %v1367_v19 }
 0x117   : > { %v650_v27 = vpop.f32.mrb[8].mxu0  ;;  %v696_v28 = vpop.f32.mrb[8].mxu1  ;;  %v1349_v29 = vld [vmem:[#allocation2 + $0x10] sm:$0xff]  ;;  %v1350_v30 = vld [vmem:[#allocation2 + $0x18] sm:$0xff] }
 0x118   : > { %656 = vst.msk [vmem:[#allocation2 + $0x20] sm:$0xff] %vm424_vm2, %v650_v27  ;;  %702 = vst.msk [vmem:[#allocation2 + $0x28] sm:$0xff] %vm424_vm2, %v696_v28  ;;  %v3439_v31 = vpop.f32.mrb[9].mxu0  ;;  %v3445_v32 = vpop.f32.mrb[9].mxu1  ;;  %v1368_v33 = vpack.c.bf16 %v1350_v30, %v1349_v29 }
 0x119   : > { %v653_v35 = vpop.f32.mrb[10].mxu0  ;;  %v699_v36 = vpop.f32.mrb[10].mxu1 }
 0x11a   : > { %v3440_v37 = vpop.f32.mrb[11].mxu0  ;;  %v3446_v38 = vpop.f32.mrb[11].mxu1  ;;  %3534 = vmatmul.mubr.msk.bf16.vlgmr.msra.gmra.mrb[40].mxu0 %vm424_vm2, %v1368_v33 }
 0x11b   : > { %3584 = vmatpush3.bf16.msra.mxu0 %v1950_v34 }
 0x11c   : > { %3595 = vmatprep.subr.bf16.mxu0 %v3998_v3 }
 0x11f   : > { %v742_v39 = vpop.f32.mrb[12].mxu0  ;;  %v788_v40 = vpop.f32.mrb[12].mxu1  ;;  %v1351_v41 = vld [vmem:[#allocation2 + $0x20] sm:$0xff]  ;;  %v1352_v42 = vld [vmem:[#allocation2 + $0x28] sm:$0xff] }
 0x120   : > { %748 = vst.msk [vmem:[#allocation2 + $0x30] sm:$0xff] %vm424_vm2, %v742_v39  ;;  %794 = vst.msk [vmem:[#allocation2 + $0x38] sm:$0xff] %vm424_vm2, %v788_v40  ;;  %v3451_v43 = vpop.f32.mrb[13].mxu0  ;;  %v3457_v44 = vpop.f32.mrb[13].mxu1  ;;  %v1369_v45 = vpack.c.bf16 %v1352_v42, %v1351_v41 }
 0x121   : > { %v745_v46 = vpop.f32.mrb[14].mxu0  ;;  %v791_v48 = vpop.f32.mrb[14].mxu1 }
 0x122   : > { %v3452_v49 = vpop.f32.mrb[15].mxu0  ;;  %v3458_v50 = vpop.f32.mrb[15].mxu1  ;;  %3537 = vmatprep.mubr.msk.bf16.mxu0 %vm424_vm2, %v1369_v45 }
 0x127   : > { %v834_v51 = vpop.f32.mrb[16].mxu0  ;;  %v880_v52 = vpop.f32.mrb[16].mxu1  ;;  %v1353_v53 = vld [vmem:[#allocation2 + $0x30] sm:$0xff]  ;;  %v1354_v54 = vld [vmem:[#allocation2 + $0x38] sm:$0xff] }
 0x128   : > { %840 = vst.msk [vmem:[#allocation2 + $0x40] sm:$0xff] %vm424_vm2, %v834_v51  ;;  %886 = vst.msk [vmem:[#allocation2 + $0x48] sm:$0xff] %vm424_vm2, %v880_v52  ;;  %v3463_v55 = vpop.f32.mrb[17].mxu0  ;;  %v3469_v56 = vpop.f32.mrb[17].mxu1  ;;  %v1370_v57 = vpack.c.bf16 %v1354_v54, %v1353_v53 }
 0x129   : > { %v837_v58 = vpop.f32.mrb[18].mxu0  ;;  %v883_v59 = vpop.f32.mrb[18].mxu1 }
 0x12a   : > { %v3464_v60 = vpop.f32.mrb[19].mxu0  ;;  %v3470_v61 = vpop.f32.mrb[19].mxu1  ;;  %3538 = vmatmul.mubr.msk.bf16.gmra.mrb[44].mxu0 %vm424_vm2, %v1370_v57  ;;  %v3268_v58 = vld [vmem:[%s4134_s18 + $0xe] sm:$0x3] }
 0x12b   : > { %v2042_v59 = vsel %vm1718_vm4, %v3268_v58, 0  ;;  %v3272_v60 = vld [vmem:[%s4134_s18 + $0x12] sm:$0x3] }
 0x12c   : > { %v2134_v61 = vsel %vm1718_vm4, %v3272_v60, 0 }
 0x12f   : > { %v926_v62 = vpop.f32.mrb[20].mxu0  ;;  %v972_v63 = vpop.f32.mrb[20].mxu1  ;;  %v1355_v0 = vld [vmem:[#allocation2 + $0x40] sm:$0xff]  ;;  %v1356_v1 = vld [vmem:[#allocation2 + $0x48] sm:$0xff] }
 0x130   : > { %932 = vst.msk [vmem:[#allocation2 + $0x50] sm:$0xff] %vm424_vm2, %v926_v62  ;;  %978 = vst.msk [vmem:[#allocation2 + $0x58] sm:$0xff] %vm424_vm2, %v972_v63  ;;  %v3475_v2 = vpop.f32.mrb[21].mxu0  ;;  %v3481_v4 = vpop.f32.mrb[21].mxu1  ;;  %v1371_v5 = vpack.c.bf16 %v1356_v1, %v1355_v0  ;;  %v3276_v62 = vld [vmem:[%s4134_s18 + $0x16] sm:$0x3] }
 0x131   : > { %v929_v6 = vpop.f32.mrb[22].mxu0  ;;  %v975_v7 = vpop.f32.mrb[22].mxu1  ;;  %v2226_v63 = vsel %vm1718_vm4, %v3276_v62, 0  ;;  %v3280_v0 = vld [vmem:[%s4134_s18 + $0x1a] sm:$0x3] }
 0x132   : > { %v3476_v8 = vpop.f32.mrb[23].mxu0  ;;  %v3482_v9 = vpop.f32.mrb[23].mxu1  ;;  %3541 = vmatprep.mubr.msk.bf16.mxu0 %vm424_vm2, %v1371_v5  ;;  %v2318_v1 = vsel %vm1718_vm4, %v3280_v0, 0  ;;  %v3284_v2 = vld [vmem:[%s4134_s18 + $0x1e] sm:$0x3] }
 0x133   : > { %v2410_v4 = vsel %vm1718_vm4, %v3284_v2, 0  ;;  %v3288_v5 = vld [vmem:[%s4134_s18 + $0x22] sm:$0x3]  ;;  %v3292_v7 = vld [vmem:[%s4134_s18 + $0x26] sm:$0x3] }
 0x134   : > { %v2502_v6 = vsel %vm1718_vm4, %v3288_v5, 0  ;;  %v2594_v8 = vsel %vm1718_vm4, %v3292_v7, 0 }
 0x137   : > { %v1018_v10 = vpop.f32.mrb[24].mxu0  ;;  %v1064_v11 = vpop.f32.mrb[24].mxu1  ;;  %v1357_v12 = vld [vmem:[#allocation2 + $0x50] sm:$0xff]  ;;  %v1358_v13 = vld [vmem:[#allocation2 + $0x58] sm:$0xff] }
 0x138   : > { %1024 = vst.msk [vmem:[#allocation2 + $0x60] sm:$0xff] %vm424_vm2, %v1018_v10  ;;  %1070 = vst.msk [vmem:[#allocation2 + $0x68] sm:$0xff] %vm424_vm2, %v1064_v11  ;;  %v3487_v14 = vpop.f32.mrb[25].mxu0  ;;  %v3493_v15 = vpop.f32.mrb[25].mxu1  ;;  %v1372_v16 = vpack.c.bf16 %v1358_v13, %v1357_v12 }
 0x139   : > { %v1021_v17 = vpop.f32.mrb[26].mxu0  ;;  %v1067_v18 = vpop.f32.mrb[26].mxu1 }
 0x13a   : > { %v3488_v19 = vpop.f32.mrb[27].mxu0  ;;  %v3494_v20 = vpop.f32.mrb[27].mxu1  ;;  %3542 = vmatmul.mubr.msk.bf16.gmra.mrb[48].mxu0 %vm424_vm2, %v1372_v16 }
 0x13f   : > { %v1110_v21 = vpop.f32.mrb[28].mxu0  ;;  %v1156_v22 = vpop.f32.mrb[28].mxu1  ;;  %v1359_v23 = vld [vmem:[#allocation2 + $0x60] sm:$0xff]  ;;  %v1360_v24 = vld [vmem:[#allocation2 + $0x68] sm:$0xff] }
 0x140   : > { %1116 = vst.msk [vmem:[#allocation2 + $0x70] sm:$0xff] %vm424_vm2, %v1110_v21  ;;  %1162 = vst.msk [vmem:[#allocation2 + $0x78] sm:$0xff] %vm424_vm2, %v1156_v22  ;;  %v3499_v25 = vpop.f32.mrb[29].mxu0  ;;  %v3505_v26 = vpop.f32.mrb[29].mxu1  ;;  %v1373_v27 = vpack.c.bf16 %v1360_v24, %v1359_v23 }
 0x141   : > { %v1113_v28 = vpop.f32.mrb[30].mxu0  ;;  %v1159_v29 = vpop.f32.mrb[30].mxu1 }
 0x142   : > { %v3500_v30 = vpop.f32.mrb[31].mxu0  ;;  %v3506_v31 = vpop.f32.mrb[31].mxu1  ;;  %3545 = vmatprep.mubr.msk.bf16.mxu0 %vm424_vm2, %v1373_v27 }
 0x147   : > { %v1202_v32 = vpop.f32.mrb[32].mxu0  ;;  %v1248_v33 = vpop.f32.mrb[32].mxu1  ;;  %v1361_v34 = vld [vmem:[#allocation2 + $0x70] sm:$0xff]  ;;  %v1362_v35 = vld [vmem:[#allocation2 + $0x78] sm:$0xff] }
 0x148   : > { %1208 = vst.msk [vmem:[#allocation2 + $0x80] sm:$0xff] %vm424_vm2, %v1202_v32  ;;  %1254 = vst.msk [vmem:[#allocation2 + $0x88] sm:$0xff] %vm424_vm2, %v1248_v33  ;;  %v3511_v36 = vpop.f32.mrb[33].mxu0  ;;  %v3517_v37 = vpop.f32.mrb[33].mxu1  ;;  %v1374_v38 = vpack.c.bf16 %v1362_v35, %v1361_v34 }
 0x149   : > { %v1205_v39 = vpop.f32.mrb[34].mxu0  ;;  %v1251_v40 = vpop.f32.mrb[34].mxu1 }
 0x14a   : > { %v3512_v41 = vpop.f32.mrb[35].mxu0  ;;  %v3518_v42 = vpop.f32.mrb[35].mxu1  ;;  %3546 = vmatmul.mubr.msk.bf16.gmra.mrb[52].mxu0 %vm424_vm2, %v1374_v38 }
 0x14f   : > { %v1294_v43 = vpop.f32.mrb[36].mxu0  ;;  %v1340_v44 = vpop.f32.mrb[36].mxu1  ;;  %v1363_v45 = vld [vmem:[#allocation2 + $0x80] sm:$0xff]  ;;  %v1364_v46 = vld [vmem:[#allocation2 + $0x88] sm:$0xff] }
 0x150   : > { %1300 = vst.msk [vmem:[#allocation2 + $0x90] sm:$0xff] %vm424_vm2, %v1294_v43  ;;  %1346 = vst.msk [vmem:[#allocation2 + $0x98] sm:$0xff] %vm424_vm2, %v1340_v44  ;;  %v3523_v48 = vpop.f32.mrb[37].mxu0  ;;  %v3529_v49 = vpop.f32.mrb[37].mxu1  ;;  %v1375_v50 = vpack.c.bf16 %v1364_v46, %v1363_v45 }
 0x151   : > { %v1297_v51 = vpop.f32.mrb[38].mxu0  ;;  %v1343_v52 = vpop.f32.mrb[38].mxu1 }
 0x152   : > { %v3524_v53 = vpop.f32.mrb[39].mxu0  ;;  %v3530_v54 = vpop.f32.mrb[39].mxu1  ;;  %3549 = vmatprep.mubr.msk.bf16.mxu0 %vm424_vm2, %v1375_v50 }
 0x157   : > { %v1365_v55 = vld [vmem:[#allocation2 + $0x90] sm:$0xff]  ;;  %v1366_v56 = vld [vmem:[#allocation2 + $0x98] sm:$0xff]  ;;  %v1756_v9 = vpop.f32.mrb[40].mxu1 }
 0x158   : > { %v1376_v57 = vpack.c.bf16 %v1366_v56, %v1365_v55  ;;  %1762 = vst.msk [vmem:[#allocation3] sm:$0xff] %vm1714_vm5, %v1756_v9  ;;  %v3557_v10 = vpop.f32.mrb[41].mxu1 }
 0x159   : > { %v1759_v11 = vpop.f32.mrb[42].mxu1 }
 0x15a   : > { %3550 = vmatmul.mubr.msk.bf16.gmra.mrb[56].mxu0 %vm424_vm2, %v1376_v57  ;;  %v3558_v12 = vpop.f32.mrb[43].mxu1 }
 0x15b   : > { %3585 = vmatprep.mubr.msk.bf16.mxu0 %vm3999_vm3, %v3998_v3 }
 0x15f   : > { %v1802_v13 = vpop.f32.mrb[44].mxu1  ;;  %v2637_v21 = vld [vmem:[#allocation3] sm:$0xff] }
 0x160   : > { %1808 = vst.msk [vmem:[#allocation3 + $0x8] sm:$0xff] %vm1714_vm5, %v1802_v13  ;;  %v3563_v14 = vpop.f32.mrb[45].mxu1 }
 0x161   : > { %v1805_v15 = vpop.f32.mrb[46].mxu1 }
 0x162   : > { %3586 = vmatmul.mubr.msk.bf16.vlgmr.msra.gmra.mrb[60].mxu0 %vm1714_vm5, %v4304_v47  ;;  %v3564_v16 = vpop.f32.mrb[47].mxu1 }
 0x163   : > { %3596 = vmatpush3.bf16.msra.mxu0 %v2042_v59  ;;  %3597 = vmatprep.mubr.msk.bf16.mxu0 %vm3999_vm3, %v3998_v3 }
 0x164   : > { %3607 = vmatprep.subr.bf16.mxu0 %v3998_v3 }
 0x167   : > { %v1848_v17 = vpop.f32.mrb[48].mxu1  ;;  %v2638_v22 = vld [vmem:[#allocation3 + $0x8] sm:$0xff] }
 0x168   : > { %1854 = vst.msk [vmem:[#allocation3 + $0x10] sm:$0xff] %vm1714_vm5, %v1848_v17  ;;  %v3569_v18 = vpop.f32.mrb[49].mxu1  ;;  %v2657_v24 = vpack.c.bf16 %v2638_v22, %v2637_v21 }
 0x169   : > { %v1851_v19 = vpop.f32.mrb[50].mxu1 }
 0x16a   : > { %3598 = vmatmul.mubr.msk.bf16.vlgmr.msra.gmra.mrb[64].mxu0 %vm1714_vm5, %v4304_v47  ;;  %v3570_v20 = vpop.f32.mrb[51].mxu1 }
 0x16b   : > { %3608 = vmatpush3.bf16.msra.mxu0 %v2134_v61  ;;  %3609 = vmatprep.mubr.msk.bf16.mxu0 %vm3999_vm3, %v3998_v3 }
 0x16c   : > { %3619 = vmatprep.subr.bf16.mxu0 %v3998_v3 }
 0x16f   : > { %v1894_v23 = vpop.f32.mrb[52].mxu1  ;;  %v2639_v29 = vld [vmem:[#allocation3 + $0x10] sm:$0xff] }
 0x170   : > { %1900 = vst.msk [vmem:[#allocation3 + $0x18] sm:$0xff] %vm1714_vm5, %v1894_v23  ;;  %v3575_v25 = vpop.f32.mrb[53].mxu1 }
 0x171   : > { %v1897_v26 = vpop.f32.mrb[54].mxu1 }
 0x172   : > { %3610 = vmatmul.mubr.msk.bf16.vlgmr.msra.gmra.mrb[68].mxu0 %vm1714_vm5, %v4304_v47  ;;  %v3576_v27 = vpop.f32.mrb[55].mxu1 }
 0x173   : > { %3620 = vmatpush3.bf16.msra.mxu0 %v2226_v63  ;;  %3621 = vmatprep.mubr.msk.bf16.mxu0 %vm3999_vm3, %v3998_v3 }
 0x174   : > { %3631 = vmatprep.subr.bf16.mxu0 %v3998_v3 }
 0x177   : > { %v2640_v30 = vld [vmem:[#allocation3 + $0x18] sm:$0xff]  ;;  %v1940_v32 = vpop.f32.mrb[56].mxu1 }
 0x178   : > { %v2658_v31 = vpack.c.bf16 %v2640_v30, %v2639_v29  ;;  %1946 = vst.msk [vmem:[#allocation3 + $0x20] sm:$0xff] %vm1714_vm5, %v1940_v32  ;;  %v3581_v33 = vpop.f32.mrb[57].mxu1 }
 0x179   : > { %v1943_v34 = vpop.f32.mrb[58].mxu1 }
 0x17a   : > { %3622 = vmatmul.mubr.msk.bf16.vlgmr.msra.gmra.mrb[72].mxu0 %vm1714_vm5, %v4304_v47  ;;  %v3582_v35 = vpop.f32.mrb[59].mxu1 }
 0x17b   : > { %3632 = vmatpush3.bf16.msra.mxu0 %v2318_v1  ;;  %3633 = vmatprep.mubr.msk.bf16.mxu0 %vm3999_vm3, %v3998_v3 }
 0x17c   : > { %3643 = vmatprep.subr.bf16.mxu0 %v3998_v3 }
 0x17f   : > { %v2032_v36 = vpop.f32.mrb[60].mxu1 }
 0x180   : > { %2038 = vst.msk [vmem:[#allocation3 + $0x30] sm:$0xff] %vm1714_vm5, %v2032_v36  ;;  %v3593_v37 = vpop.f32.mrb[61].mxu1 }
 0x181   : > { %v2035_v38 = vpop.f32.mrb[62].mxu1 }
 0x182   : > { %3634 = vmatmul.mubr.msk.bf16.vlgmr.msra.gmra.mrb[76].mxu0 %vm1714_vm5, %v4304_v47  ;;  %v3594_v39 = vpop.f32.mrb[63].mxu1 }
 0x183   : > { %3644 = vmatpush3.bf16.msra.mxu0 %v2410_v4  ;;  %3645 = vmatprep.mubr.msk.bf16.mxu0 %vm3999_vm3, %v3998_v3 }
 0x184   : > { %3655 = vmatprep.subr.bf16.mxu0 %v3998_v3 }
 0x187   : > { %v2124_v40 = vpop.f32.mrb[64].mxu1 }
 0x188   : > { %2130 = vst.msk [vmem:[#allocation3 + $0x40] sm:$0xff] %vm1714_vm5, %v2124_v40  ;;  %v3605_v41 = vpop.f32.mrb[65].mxu1 }
 0x189   : > { %v2127_v42 = vpop.f32.mrb[66].mxu1 }
 0x18a   : > { %3646 = vmatmul.mubr.msk.bf16.vlgmr.msra.gmra.mrb[80].mxu0 %vm1714_vm5, %v4304_v47  ;;  %v3606_v43 = vpop.f32.mrb[67].mxu1 }
 0x18b   : > { %3656 = vmatpush3.bf16.msra.mxu0 %v2502_v6  ;;  %3657 = vmatprep.mubr.msk.bf16.mxu0 %vm3999_vm3, %v3998_v3 }
 0x18c   : > { %3667 = vmatprep.subr.bf16.mxu0 %v3998_v3 }
 0x18f   : > { %v2216_v44 = vpop.f32.mrb[68].mxu1 }
 0x190   : > { %2222 = vst.msk [vmem:[#allocation3 + $0x50] sm:$0xff] %vm1714_vm5, %v2216_v44  ;;  %v3617_v45 = vpop.f32.mrb[69].mxu1 }
 0x191   : > { %v2219_v46 = vpop.f32.mrb[70].mxu1 }
 0x192   : > { %3658 = vmatmul.mubr.msk.bf16.vlgmr.msra.gmra.mrb[84].mxu0 %vm1714_vm5, %v4304_v47  ;;  %v3618_v48 = vpop.f32.mrb[71].mxu1 }
 0x193   : > { %3668 = vmatpush3.bf16.msra.mxu0 %v2594_v8  ;;  %3669 = vmatprep.mubr.msk.bf16.mxu0 %vm3999_vm3, %v3998_v3 }
 0x197   : > { %v2308_v49 = vpop.f32.mrb[72].mxu1 }
 0x198   : > { %2314 = vst.msk [vmem:[#allocation3 + $0x60] sm:$0xff] %vm1714_vm5, %v2308_v49  ;;  %v3629_v50 = vpop.f32.mrb[73].mxu1 }
 0x199   : > { %v2311_v51 = vpop.f32.mrb[74].mxu1 }
 0x19a   : > { %3670 = vmatmul.mubr.msk.bf16.vlgmr.msra.gmra.mrb[88].mxu0 %vm1714_vm5, %v4304_v47  ;;  %v2667_v47 = vld [vmem:[%s4943_s5] sm:$0x3]  ;;  %v3630_v52 = vpop.f32.mrb[75].mxu1 }
 0x19b   : > { %3675 = vmatprep.mubr.msk.bf16.mxu0 %vm1714_vm5, %v2657_v24  ;;  %3698 = vmatprep.subr.msk.bf16.mxu0 %vm1718_vm4, %v2667_v47  ;;  %v2699_v28 = vsel %vm1718_vm4, %v2667_v47, 0 }
 0x19c   : > { %3699 = vmatprep.subr.msk.bf16.mxu1 %vm1718_vm4, %v2667_v47  ;;  %3674 = vmatpush3.bf16.msra.mxu0 %v2699_v28 }
 0x19d   : > { %3696 = vmatpush3.bf16.msra.mxu1 %v2699_v28 }
 0x19f   : > { %v2400_v53 = vpop.f32.mrb[76].mxu1 }
 0x1a0   : > { %2406 = vst.msk [vmem:[#allocation3 + $0x70] sm:$0xff] %vm1714_vm5, %v2400_v53  ;;  %v3641_v54 = vpop.f32.mrb[77].mxu1 }
 0x1a1   : > { %v2403_v55 = vpop.f32.mrb[78].mxu1 }
 0x1a2   : > { %3676 = vmatmul.mubr.msk.bf16.vlgmr.msra.gmra.mrb[92].mxu0 %vm1714_vm5, %v2658_v31  ;;  %v3642_v56 = vpop.f32.mrb[79].mxu1  ;;  %v2641_v55 = vld [vmem:[#allocation3 + $0x20] sm:$0xff] }
 0x1a7   : > { %v2492_v57 = vpop.f32.mrb[80].mxu1 }
 0x1a8   : > { %2498 = vst.msk [vmem:[#allocation3 + $0x80] sm:$0xff] %vm1714_vm5, %v2492_v57  ;;  %v3653_v58 = vpop.f32.mrb[81].mxu1 }
 0x1a9   : > { %v2495_v59 = vpop.f32.mrb[82].mxu1 }
 0x1aa   : > { %v3654_v60 = vpop.f32.mrb[83].mxu1 }
 0x1af   : > { %v2584_v61 = vpop.f32.mrb[84].mxu1 }
 0x1b0   : > { %2590 = vst.msk [vmem:[#allocation3 + $0x90] sm:$0xff] %vm1714_vm5, %v2584_v61  ;;  %v3665_v62 = vpop.f32.mrb[85].mxu1 }
 0x1b1   : > { %v2587_v63 = vpop.f32.mrb[86].mxu1 }
 0x1b2   : > { %v3666_v1 = vpop.f32.mrb[87].mxu1 }
 0x1ed   : > { %v3535_v0 = vpop.f32.mrb[40].mxu0 }
 0x1ee   : > { %1527 = vst.msk [vmem:[#allocation4 + $0x10] sm:$0xff] %vm1524_vm6, %v3535_v0  ;;  %v1445_v2 = vpop.f32.mrb[41].mxu0 }
 0x1ef   : > { %1525 = vst.msk [vmem:[#allocation4] sm:$0xff] %vm1524_vm6, %v1445_v2  ;;  %v3536_v4 = vpop.f32.mrb[42].mxu0 }
 0x1f0   : > { %1528 = vst.msk [vmem:[#allocation4 + $0x18] sm:$0xff] %vm1524_vm6, %v3536_v4  ;;  %v1448_v5 = vpop.f32.mrb[43].mxu0 }
 0x1f1   : > { %1526 = vst.msk [vmem:[#allocation4 + $0x8] sm:$0xff] %vm1524_vm6, %v1448_v5  ;;  %v1545_v6 = vmax.f32 %v1445_v2, %v1448_v5 }
 0x1f3   : > { %v1546_v7 = vmax.f32 %v1545_v6, %v3535_v0 }
 0x1f5   : > { %v1547_v8 = vmax.f32 %v1546_v7, %v3536_v4  ;;  %v4516_v45 = vld [vmem:[#allocation4 + $0x10] sm:$0xff] }
 0x1f6   : > { %v4512_v42 = vld [vmem:[#allocation4] sm:$0xff] }
 0x1f7   : > { %v4524_v52 = vld [vmem:[#allocation4 + $0x18] sm:$0xff] }
 0x1f8   : > { %v4514_v43 = vld [vmem:[#allocation4 + $0x8] sm:$0xff] }
 0x1fd   : > { %v3539_v9 = vpop.f32.mrb[44].mxu0 }
 0x1fe   : > { %1531 = vst.msk [vmem:[#allocation4 + $0x30] sm:$0xff] %vm1524_vm6, %v3539_v9  ;;  %v1461_v10 = vpop.f32.mrb[45].mxu0 }
 0x1ff   : > { %1529 = vst.msk [vmem:[#allocation4 + $0x20] sm:$0xff] %vm1524_vm6, %v1461_v10  ;;  %v1548_v11 = vmax.f32 %v1547_v8, %v1461_v10  ;;  %v3540_v12 = vpop.f32.mrb[46].mxu0 }
 0x200   : > { %1532 = vst.msk [vmem:[#allocation4 + $0x38] sm:$0xff] %vm1524_vm6, %v3540_v12  ;;  %v1464_v13 = vpop.f32.mrb[47].mxu0 }
 0x201   : > { %1530 = vst.msk [vmem:[#allocation4 + $0x28] sm:$0xff] %vm1524_vm6, %v1464_v13  ;;  %v1549_v14 = vmax.f32 %v1548_v11, %v1464_v13  ;;  %v2643_v11 = vld [vmem:[#allocation3 + $0x30] sm:$0xff]  ;;  %v4549_v13 = vld [vmem:[%s4144_s23] sm:$0xff] }
 0x202   : > { %vm1569_vm7 = vcmp.eq.s32.totalorder %v4549_v13, 0  ;;  %vm1576_vm8 = vcmp.eq.s32.totalorder %v4549_v13, 1  ;;  %vm1583_vm9 = vcmp.eq.s32.totalorder %v4549_v13, 2  ;;  %vm1590_vm10 = vcmp.eq.s32.totalorder %v4549_v13, 3 }
 0x203   : > { %v1550_v15 = vmax.f32 %v1549_v14, %v3539_v9  ;;  %vm1597_vm11 = vcmp.eq.s32.totalorder %v4549_v13, 4  ;;  %vm1604_vm12 = vcmp.eq.s32.totalorder %v4549_v13, 5  ;;  %vm1611_vm13 = vcmp.eq.s32.totalorder %v4549_v13, 6 }
 0x204   : > { %vm1618_vm14 = vcmp.eq.s32.totalorder %v4549_v13, 7  ;;  %vm1625_vm15 = vcmp.eq.s32.totalorder %v4549_v13, 8  ;;  %vm4962_vm0 = vcmp.eq.s32.totalorder %v4549_v13, 9  ;;  %vm4957_vm1 = vcmp.eq.s32.totalorder %v4549_v13, 10 }
 0x205   : > { %v1551_v16 = vmax.f32 %v1550_v15, %v3540_v12  ;;  %v4537_v4 = vld [vmem:[#allocation4 + $0x30] sm:$0xff]  ;;  %vm4960_vm2 = vcmp.eq.s32.totalorder %v4549_v13, 11  ;;  %vm4958_vm3 = vcmp.eq.s32.totalorder %v4549_v13, 12  ;;  %vm4959_vm4 = vcmp.eq.s32.totalorder %v4549_v13, 13 }
 0x206   : > { %v4528_v56 = vld [vmem:[#allocation4 + $0x20] sm:$0xff] }
 0x207   : > { %v4542_v8 = vld [vmem:[#allocation4 + $0x38] sm:$0xff] }
 0x208   : > { %v4532_v61 = vld [vmem:[#allocation4 + $0x28] sm:$0xff] }
 0x20d   : > { %v3543_v17 = vpop.f32.mrb[48].mxu0 }
 0x20e   : > { %1535 = vst.msk [vmem:[#allocation4 + $0x50] sm:$0xff] %vm1524_vm6, %v3543_v17  ;;  %v1477_v18 = vpop.f32.mrb[49].mxu0 }
 0x20f   : > { %1533 = vst.msk [vmem:[#allocation4 + $0x40] sm:$0xff] %vm1524_vm6, %v1477_v18  ;;  %v1552_v19 = vmax.f32 %v1551_v16, %v1477_v18  ;;  %v3544_v20 = vpop.f32.mrb[50].mxu0 }
 0x210   : > { %1536 = vst.msk [vmem:[#allocation4 + $0x58] sm:$0xff] %vm1524_vm6, %v3544_v20  ;;  %v1480_v21 = vpop.f32.mrb[51].mxu0 }
 0x211   : > { %1534 = vst.msk [vmem:[#allocation4 + $0x48] sm:$0xff] %vm1524_vm6, %v1480_v21  ;;  %v1553_v22 = vmax.f32 %v1552_v19, %v1480_v21 }
 0x213   : > { %v1554_v23 = vmax.f32 %v1553_v22, %v3543_v17 }
 0x215   : > { %v1555_v24 = vmax.f32 %v1554_v23, %v3544_v20 }
 0x216   : > { %v4546_v12 = vld [vmem:[#allocation4 + $0x40] sm:$0xff] }
 0x218   : > { %v4553_v18 = vld [vmem:[#allocation4 + $0x48] sm:$0xff] }
 0x21d   : > { %v3547_v25 = vpop.f32.mrb[52].mxu0 }
 0x21e   : > { %1539 = vst.msk [vmem:[#allocation4 + $0x70] sm:$0xff] %vm1524_vm6, %v3547_v25  ;;  %v1493_v26 = vpop.f32.mrb[53].mxu0 }
 0x21f   : > { %1537 = vst.msk [vmem:[#allocation4 + $0x60] sm:$0xff] %vm1524_vm6, %v1493_v26  ;;  %v1556_v27 = vmax.f32 %v1555_v24, %v1493_v26  ;;  %v3548_v47 = vpop.f32.mrb[54].mxu0 }
 0x220   : > { %1540 = vst.msk [vmem:[#allocation4 + $0x78] sm:$0xff] %vm1524_vm6, %v3548_v47  ;;  %v1496_v28 = vpop.f32.mrb[55].mxu0 }
 0x221   : > { %1538 = vst.msk [vmem:[#allocation4 + $0x68] sm:$0xff] %vm1524_vm6, %v1496_v28  ;;  %v1557_v29 = vmax.f32 %v1556_v27, %v1496_v28 }
 0x223   : > { %v1558_v30 = vmax.f32 %v1557_v29, %v3547_v25  ;;  %v4559_v25 = vld [vmem:[#allocation4 + $0x50] sm:$0xff] }
 0x225   : > { %v1559_v31 = vmax.f32 %v1558_v30, %v3548_v47  ;;  %v4565_v30 = vld [vmem:[#allocation4 + $0x58] sm:$0xff] }
 0x22d   : > { %v3551_v32 = vpop.f32.mrb[56].mxu0 }
 0x22e   : > { %1543 = vst.msk [vmem:[#allocation4 + $0x90] sm:$0xff] %vm1524_vm6, %v3551_v32  ;;  %v1509_v33 = vpop.f32.mrb[57].mxu0 }
 0x22f   : > { %1541 = vst.msk [vmem:[#allocation4 + $0x80] sm:$0xff] %vm1524_vm6, %v1509_v33  ;;  %v1560_v34 = vmax.f32 %v1559_v31, %v1509_v33  ;;  %v3552_v35 = vpop.f32.mrb[58].mxu0 }
 0x230   : > { %1544 = vst.msk [vmem:[#allocation4 + $0x98] sm:$0xff] %vm1524_vm6, %v3552_v35  ;;  %v1512_v36 = vpop.f32.mrb[59].mxu0 }
 0x231   : > { %1542 = vst.msk [vmem:[#allocation4 + $0x88] sm:$0xff] %vm1524_vm6, %v1512_v36  ;;  %v1561_v37 = vmax.f32 %v1560_v34, %v1512_v36 }
 0x233   : > { %v1562_v38 = vmax.f32 %v1561_v37, %v3551_v32  ;;  %v1570_v32 = vsel %vm1569_vm7, %v4512_v42, 0.0  ;;  %v4572_v37 = vld [vmem:[#allocation4 + $0x60] sm:$0xff] }
 0x235   : > { %v4509_v39 = vmax.f32 %v1562_v38, %v3552_v35  ;;  %v1986_v40 = vpop.f32.mrb[60].mxu0  ;;  %v2645_v35 = vld [vmem:[#allocation3 + $0x40] sm:$0xff] }
 0x236   : > { %1992 = vst.msk [vmem:[#allocation3 + $0x28] sm:$0xff] %vm1714_vm5, %v1986_v40  ;;  %v3587_v41 = vpop.f32.mrb[61].mxu0 }
 0x237   : > { %v1989_v44 = vpop.f32.mrb[62].mxu0  ;;  %v1565_v46 = vsub.f32 %v4512_v42, %v4509_v39  ;;  %v1572_v48 = vsub.f32 %v4514_v43, %v4509_v39  ;;  %v1579_v50 = vsub.f32 %v4516_v45, %v4509_v39  ;;  %v1586_v53 = vsub.f32 %v4524_v52, %v4509_v39 }
 0x238   : > { %v3588_v49 = vpop.f32.mrb[63].mxu0  ;;  %v1593_v58 = vsub.f32 %v4528_v56, %v4509_v39  ;;  %v1600_v1 = vsub.f32 %v4532_v61, %v4509_v39  ;;  %v1607_v6 = vsub.f32 %v4537_v4, %v4509_v39  ;;  %v1614_v9 = vsub.f32 %v4542_v8, %v4509_v39 }
 0x239   : > { %v1566_v51 = vmul.f32 1.442695, %v1565_v46  ;;  %v1573_v54 = vmul.f32 1.442695, %v1572_v48  ;;  %v1580_v57 = vmul.f32 1.442695, %v1579_v50  ;;  %v1621_v15 = vsub.f32 %v4546_v12, %v4509_v39 }
 0x23a   : > { %v1587_v0 = vmul.f32 1.442695, %v1586_v53  ;;  %v1594_v7 = vmul.f32 1.442695, %v1593_v58  ;;  %v1601_v10 = vmul.f32 1.442695, %v1600_v1  ;;  %v1628_v23 = vsub.f32 %v4553_v18, %v4509_v39 }
 0x23b   : > { %3785 = vpow2.f32 %v1566_v51  ;;  %v1608_v14 = vmul.f32 1.442695, %v1607_v6  ;;  %v1615_v22 = vmul.f32 1.442695, %v1614_v9  ;;  %v1635_v47 = vsub.f32 %v4559_v25, %v4509_v39  ;;  %v4580_v49 = vld [vmem:[#allocation4 + $0x68] sm:$0xff] }
 0x23c   : > { %3787 = vpow2.f32 %v1573_v54  ;;  %v1622_v28 = vmul.f32 1.442695, %v1621_v15  ;;  %v1642_v33 = vsub.f32 %v4565_v30, %v4509_v39  ;;  %v1629_v34 = vmul.f32 1.442695, %v1628_v23  ;;  %v4612_v23 = vld [vmem:[#allocation4 + $0x90] sm:$0xff] }
 0x23d   : > { %v2078_v59 = vpop.f32.mrb[64].mxu0  ;;  %v2642_v60 = vld [vmem:[#allocation3 + $0x28] sm:$0xff]  ;;  %3789 = vpow2.f32 %v1580_v57  ;;  %v1636_v40 = vmul.f32 1.442695, %v1635_v47  ;;  %v1649_v41 = vsub.f32 %v4572_v37, %v4509_v39  ;;  %v1577_v42 = vsel %vm1576_vm8, %v4514_v43, %v1570_v32 }
 0x23e   : > { %2084 = vst.msk [vmem:[#allocation3 + $0x38] sm:$0xff] %vm1714_vm5, %v2078_v59  ;;  %v3599_v62 = vpop.f32.mrb[65].mxu0  ;;  %v2659_v63 = vpack.c.bf16 %v2642_v60, %v2641_v55  ;;  %3791 = vpow2.f32 %v1587_v0  ;;  %v1643_v54 = vmul.f32 1.442695, %v1642_v33  ;;  %v1656_v55 = vsub.f32 %v4580_v49, %v4509_v39  ;;  %v4585_v59 = vld [vmem:[#allocation4 + $0x70] sm:$0xff] }
 0x23f   : > { %v2081_v2 = vpop.f32.mrb[66].mxu0  ;;  %3793 = vpow2.f32 %v1594_v7  ;;  %v1663_v62 = vsub.f32 %v4585_v59, %v4509_v39  ;;  %v1584_v0 = vsel %vm1583_vm9, %v4516_v45, %v1577_v42  ;;  %v1691_v33 = vsub.f32 %v4612_v23, %v4509_v39 }
 0x240   : > { %v3600_v5 = vpop.f32.mrb[67].mxu0  ;;  %3679 = vmatprep.mubr.msk.bf16.mxu0 %vm1714_vm5, %v2659_v63  ;;  %3795 = vpow2.f32 %v1601_v10  ;;  %v1650_v63 = vmul.f32 1.442695, %v1649_v41  ;;  %v4594_v2 = vld [vmem:[#allocation4 + $0x78] sm:$0xff]  ;;  %v1657_v9 = vmul.f32 1.442695, %v1656_v55  ;;  %v1591_v15 = vsel %vm1590_vm10, %v4524_v52, %v1584_v0 }
 0x241   : > { %3797 = vpow2.f32 %v1608_v14  ;;  %v4596_v5 = vld [vmem:[#allocation4 + $0x80] sm:$0xff]  ;;  %v1670_v7 = vsub.f32 %v4594_v2, %v4509_v39  ;;  %v2647_v10 = vld [vmem:[#allocation3 + $0x50] sm:$0xff]  ;;  %v4601_v14 = vld [vmem:[#allocation4 + $0x88] sm:$0xff] }
 0x242   : > { %3799 = vpow2.f32 %v1615_v22  ;;  %v1684_v47 = vsub.f32 %v4601_v14, %v4509_v39 }
 0x243   : > { %3801 = vpow2.f32 %v1622_v28 }
 0x244   : > { %3803 = vpow2.f32 %v1629_v34  ;;  %v1685_v41 = vmul.f32 1.442695, %v1684_v47 }
 0x245   : > { %v2170_v16 = vpop.f32.mrb[68].mxu0  ;;  %v2644_v17 = vld [vmem:[#allocation3 + $0x38] sm:$0xff]  ;;  %v3786_v19 = vpop.eup %3785  ;;  %3805 = vpow2.f32 %v1636_v40 }
 0x246   : > { %2176 = vst.msk [vmem:[#allocation3 + $0x48] sm:$0xff] %vm1714_vm5, %v2170_v16  ;;  %v3611_v20 = vpop.f32.mrb[69].mxu0  ;;  %v2660_v21 = vpack.c.bf16 %v2644_v17, %v2643_v11  ;;  %v3788_v26 = vpop.eup %3787  ;;  %3807 = vpow2.f32 %v1643_v54  ;;  %v1664_v16 = vmul.f32 1.442695, %v1663_v62  ;;  %v1677_v17 = vsub.f32 %v4596_v5, %v4509_v39 }
 0x247   : > { %v2173_v24 = vpop.f32.mrb[70].mxu0  ;;  %v1575_v29 = vadd.f32 %v3788_v26, %v3786_v19  ;;  %v3790_v31 = vpop.eup %3789  ;;  %3809 = vpow2.f32 %v1650_v63 }
 0x248   : > { %v3612_v27 = vpop.f32.mrb[71].mxu0  ;;  %3680 = vmatmul.mubr.msk.bf16.gmra.mrb[96].mxu0 %vm1714_vm5, %v2660_v21  ;;  %v3792_v38 = vpop.eup %3791  ;;  %v1598_v21 = vsel %vm1597_vm11, %v4528_v56, %v1591_v15  ;;  %3811 = vpow2.f32 %v1657_v9  ;;  %v1678_v34 = vmul.f32 1.442695, %v1677_v17 }
 0x249   : > { %v1582_v36 = vadd.f32 %v3790_v31, %v1575_v29  ;;  %v3794_v50 = vpop.eup %3793  ;;  %v1671_v27 = vmul.f32 1.442695, %v1670_v7  ;;  %v4617_v31 = vld [vmem:[#allocation4 + $0x98] sm:$0xff]  ;;  %3813 = vpow2.f32 %v1664_v16  ;;  %v2651_v7 = vld [vmem:[#allocation3 + $0x70] sm:$0xff] }
 0x24a   : > { %v3796_v43 = vpop.eup %3795  ;;  %v1698_v40 = vsub.f32 %v4617_v31, %v4509_v39 }
 0x24b   : > { %v1589_v48 = vadd.f32 %v3792_v38, %v1582_v36  ;;  %v3798_v6 = vpop.eup %3797  ;;  %3815 = vpow2.f32 %v1671_v27  ;;  %v2653_v27 = vld [vmem:[#allocation3 + $0x80] sm:$0xff] }
 0x24c   : > { %v3800_v45 = vpop.eup %3799  ;;  %3817 = vpow2.f32 %v1678_v34 }
 0x24d   : > { %v2262_v44 = vpop.f32.mrb[72].mxu0  ;;  %v2646_v46 = vld [vmem:[#allocation3 + $0x48] sm:$0xff]  ;;  %v1596_v58 = vadd.f32 %v3794_v50, %v1589_v48  ;;  %v3802_v24 = vpop.eup %3801  ;;  %v1692_v50 = vmul.f32 1.442695, %v1691_v33  ;;  %3819 = vpow2.f32 %v1685_v41 }
 0x24e   : > { %2268 = vst.msk [vmem:[#allocation3 + $0x58] sm:$0xff] %vm1714_vm5, %v2262_v44  ;;  %v3623_v51 = vpop.f32.mrb[73].mxu0  ;;  %v2661_v53 = vpack.c.bf16 %v2646_v46, %v2645_v35  ;;  %v3804_v56 = vpop.eup %3803  ;;  %v1605_v35 = vsel %vm1604_vm12, %v4532_v61, %v1598_v21  ;;  %v2649_v44 = vld [vmem:[#allocation3 + $0x60] sm:$0xff] }
 0x24f   : > { %v2265_v57 = vpop.f32.mrb[74].mxu0  ;;  %v1603_v1 = vadd.f32 %v3796_v43, %v1596_v58  ;;  %v3806_v38 = vpop.eup %3805  ;;  %v1612_v48 = vsel %vm1611_vm13, %v4537_v4, %v1605_v35  ;;  %v1699_v58 = vmul.f32 1.442695, %v1698_v40  ;;  %3821 = vpow2.f32 %v1692_v50 }
 0x250   : > { %v3624_v60 = vpop.f32.mrb[75].mxu0  ;;  %3683 = vmatprep.mubr.msk.bf16.mxu1 %vm1714_vm5, %v2661_v53  ;;  %v3808_v42 = vpop.eup %3807  ;;  %v1619_v4 = vsel %vm1618_vm14, %v4542_v8, %v1612_v48 }
 0x251   : > { %v1610_v11 = vadd.f32 %v3798_v6, %v1603_v1  ;;  %v3810_v54 = vpop.eup %3809  ;;  %v1626_v0 = vsel %vm1625_vm15, %v4546_v12, %v1619_v4  ;;  %3823 = vpow2.f32 %v1699_v58 }
 0x252   : > { %v3812_v62 = vpop.eup %3811  ;;  %v1633_v8 = vsel %vm4962_vm0, %v4553_v18, %v1626_v0  ;;  %vm419_vm0 = vcmp.ne.s32.totalorder %v4549_v13, 255  ;;  %v2982_v0 = vld [vmem:[#allocation6] sm:$0xff] }
 0x253   : > { %v1617_v22 = vadd.f32 %v3800_v45, %v1610_v11  ;;  %v3814_v6 = vpop.eup %3813  ;;  %v4691_v50 = vsel %vm419_vm0, 1.0, %v3998_v3 }
 0x255   : > { %v2354_v19 = vpop.f32.mrb[76].mxu0  ;;  %v2648_v20 = vld [vmem:[#allocation3 + $0x58] sm:$0xff]  ;;  %v1624_v29 = vadd.f32 %v3802_v24, %v1617_v22 }
 0x256   : > { %2360 = vst.msk [vmem:[#allocation3 + $0x68] sm:$0xff] %vm1714_vm5, %v2354_v19  ;;  %v3635_v52 = vpop.f32.mrb[77].mxu0  ;;  %v2662_v26 = vpack.c.bf16 %v2648_v20, %v2647_v10  ;;  %v3816_v10 = vpop.eup %3815  ;;  %v1640_v19 = vsel %vm4957_vm1, %v4559_v25, %v1633_v8  ;;  %vm4961_vm1 = vcmp.eq.s32.totalorder %v4549_v13, 14 }
 0x257   : > { %v2357_v28 = vpop.f32.mrb[78].mxu0  ;;  %v1631_v36 = vadd.f32 %v3804_v56, %v1624_v29  ;;  %v3818_v16 = vpop.eup %3817  ;;  %v1647_v24 = vsel %vm4960_vm2, %v4565_v30, %v1640_v19  ;;  %vm1688_vm2 = vcmp.eq.s32.totalorder %v4549_v13, 17 }
 0x258   : > { %v3636_v32 = vpop.f32.mrb[79].mxu0  ;;  %3684 = vmatmul.mubr.msk.bf16.vlgmr.msra.gmra.mrb[88].mxu1 %vm1714_vm5, %v2662_v26  ;;  %v3820_v21 = vpop.eup %3819  ;;  %v1654_v25 = vsel %vm4958_vm3, %v4572_v37, %v1647_v24  ;;  %vm1674_vm3 = vcmp.eq.s32.totalorder %v4549_v13, 15 }
 0x259   : > { %v1638_v46 = vadd.f32 %v3806_v38, %v1631_v36  ;;  %v3822_v26 = vpop.eup %3821  ;;  %v1661_v32 = vsel %vm4959_vm4, %v4580_v49, %v1654_v25  ;;  %vm4963_vm4 = vcmp.eq.s32.totalorder %v4549_v13, 16  ;;  %v2655_v49 = vld [vmem:[#allocation3 + $0x90] sm:$0xff] }
 0x25a   : > { %v1668_v36 = vsel %vm4961_vm1, %v4585_v59, %v1661_v32  ;;  %vm1695_vm1 = vcmp.eq.s32.totalorder %v4549_v13, 18 }
 0x25b   : > { %v1645_v53 = vadd.f32 %v3808_v42, %v1638_v46  ;;  %v3824_v28 = vpop.eup %3823  ;;  %v1675_v38 = vsel %vm1674_vm3, %v4594_v2, %v1668_v36 }
 0x25c   : > { %v1682_v40 = vsel %vm4963_vm4, %v4596_v5, %v1675_v38  ;;  %vm1702_vm4 = vcmp.eq.s32.totalorder %v4549_v13, 19 }
 0x25d   : > { %v2446_v61 = vpop.f32.mrb[80].mxu0  ;;  %v2650_v51 = vld [vmem:[#allocation3 + $0x68] sm:$0xff]  ;;  %v1652_v60 = vadd.f32 %v3810_v54, %v1645_v53  ;;  %v1689_v59 = vsel %vm1688_vm2, %v4601_v14, %v1682_v40  ;;  %v1708_v54 = vld [vmem:[#allocation5] sm:$0xff] }
 0x25e   : > { %2452 = vst.msk [vmem:[#allocation3 + $0x78] sm:$0xff] %vm1714_vm5, %v2446_v61  ;;  %v3647_v55 = vpop.f32.mrb[81].mxu0  ;;  %v2663_v57 = vpack.c.bf16 %v2650_v51, %v2649_v44  ;;  %v1696_v2 = vsel %vm1695_vm1, %v4612_v23, %v1689_v59 }
 0x25f   : > { %v2449_v43 = vpop.f32.mrb[82].mxu0  ;;  %v1659_v1 = vadd.f32 %v3812_v62, %v1652_v60  ;;  %v1703_v61 = vsel %vm1702_vm4, %v4617_v31, %v1696_v2 }
 0x260   : > { %v3648_v63 = vpop.f32.mrb[83].mxu0  ;;  %3687 = vmatprep.mubr.msk.bf16.mxu1 %vm1714_vm5, %v2663_v57 }
 0x261   : > { %v1666_v9 = vadd.f32 %v3814_v6, %v1659_v1  ;;  %v2983_v6 = vadd.f32 %v4691_v50, %v2982_v0 }
 0x263   : > { %v1673_v15 = vadd.f32 %v3816_v10, %v1666_v9  ;;  %2984 = vst.msk [vmem:[#allocation6] sm:$0xff] %vm1524_vm6, %v2983_v6 }
 0x265   : > { %v2538_v11 = vpop.f32.mrb[84].mxu0  ;;  %v2652_v45 = vld [vmem:[#allocation3 + $0x78] sm:$0xff]  ;;  %v1680_v18 = vadd.f32 %v3818_v16, %v1673_v15 }
 0x266   : > { %2544 = vst.msk [vmem:[#allocation3 + $0x88] sm:$0xff] %vm1714_vm5, %v2538_v11  ;;  %v3659_v12 = vpop.f32.mrb[85].mxu0  ;;  %v2664_v17 = vpack.c.bf16 %v2652_v45, %v2651_v7 }
 0x267   : > { %v2541_v20 = vpop.f32.mrb[86].mxu0  ;;  %v1687_v52 = vadd.f32 %v3820_v21, %v1680_v18 }
 0x268   : > { %v3660_v22 = vpop.f32.mrb[87].mxu0  ;;  %3688 = vmatmul.mubr.msk.bf16.gmra.mrb[92].mxu1 %vm1714_vm5, %v2664_v17 }
 0x269   : > { %v1694_v47 = vadd.f32 %v3822_v26, %v1687_v52 }
 0x26b   : > { %v1701_v30 = vadd.f32 %v3824_v28, %v1694_v47 }
 0x26d   : > { %v2630_v29 = vpop.f32.mrb[88].mxu0  ;;  %v2654_v56 = vld [vmem:[#allocation3 + $0x88] sm:$0xff]  ;;  %3825 = vlog2.f32 %v1701_v30 }
 0x26e   : > { %2636 = vst.msk [vmem:[#allocation3 + $0x98] sm:$0xff] %vm1714_vm5, %v2630_v29  ;;  %v3671_v33 = vpop.f32.mrb[89].mxu0  ;;  %v2665_v34 = vpack.c.bf16 %v2654_v56, %v2653_v27 }
 0x26f   : > { %v2633_v35 = vpop.f32.mrb[90].mxu0 }
 0x270   : > { %v3672_v37 = vpop.f32.mrb[91].mxu0  ;;  %3691 = vmatprep.mubr.msk.bf16.mxu1 %vm1714_vm5, %v2665_v34 }
 0x275   : > { %v2656_v41 = vld [vmem:[#allocation3 + $0x98] sm:$0xff]  ;;  %v3677_v42 = vpop.f32.mrb[92].mxu0 }
 0x276   : > { %v2666_v44 = vpack.c.bf16 %v2656_v41, %v2655_v49  ;;  %2816 = vst.msk [vmem:[#allocation4 + $0x10] sm:$0xff] %vm1524_vm6, %v3677_v42  ;;  %v2735_v14 = vpop.f32.mrb[93].mxu0 }
 0x277   : > { %v3826_v46 = vpop.eup %3825  ;;  %2814 = vst.msk [vmem:[#allocation4] sm:$0xff] %vm1524_vm6, %v2735_v14  ;;  %v3678_v51 = vpop.f32.mrb[94].mxu0 }
 0x278   : > { %3692 = vmatmul.mubr.msk.bf16.gmra.mrb[96].mxu1 %vm1714_vm5, %v2666_v44  ;;  %v1705_v5 = vmul.f32 0.6931472, %v3826_v46  ;;  %2817 = vst.msk [vmem:[#allocation4 + $0x18] sm:$0xff] %vm1524_vm6, %v3678_v51  ;;  %v2738_v53 = vpop.f32.mrb[95].mxu0  ;;  %vm4977_vm5 = vcmp.eq.s32.totalorder %v4549_v13, 9 }
 0x279   : > { %2815 = vst.msk [vmem:[#allocation4 + $0x8] sm:$0xff] %vm1524_vm6, %v2738_v53 }
 0x27a   : > { %v1706_v48 = vadd.f32 %v1705_v5, %v4509_v39  ;;  %v2834_v39 = vmax.f32 %v2735_v14, %v2738_v53 }
 0x27c   : > { %v1707_v23 = vsub.f32 %v1706_v48, %v1703_v61  ;;  %v2835_v57 = vmax.f32 %v2834_v39, %v3677_v42 }
 0x27d   : > { %v4721_v34 = vld [vmem:[#allocation4 + $0x10] sm:$0xff] }
 0x27e   : > { %v1709_v55 = vmul.f32 %v4691_v50, %v1707_v23  ;;  %v2836_v58 = vmax.f32 %v2835_v57, %v3678_v51  ;;  %v2853_v30 = vld [vmem:[#allocation4] sm:$0xff] }
 0x27f   : > { %v4723_v35 = vld [vmem:[#allocation4 + $0x18] sm:$0xff] }
 0x280   : > { %v1710_v3 = vadd.f32 %v1709_v55, %v1708_v54  ;;  %v2859_v33 = vld [vmem:[#allocation4 + $0x8] sm:$0xff] }
 0x282   : > { %1711 = vst.msk [vmem:[#allocation5] sm:$0xff] %vm1524_vm6, %v1710_v3 }
 0x31b   : > { %v3681_v43 = vpop.f32.mrb[96].mxu0 }
 0x31c   : > { %2820 = vst.msk [vmem:[#allocation4 + $0x30] sm:$0xff] %vm1524_vm6, %v3681_v43  ;;  %v2751_v31 = vpop.f32.mrb[97].mxu0 }
 0x31d   : > { %2818 = vst.msk [vmem:[#allocation4 + $0x20] sm:$0xff] %vm1524_vm6, %v2751_v31  ;;  %v2837_v4 = vmax.f32 %v2836_v58, %v2751_v31  ;;  %v3682_v60 = vpop.f32.mrb[98].mxu0 }
 0x31e   : > { %2821 = vst.msk [vmem:[#allocation4 + $0x38] sm:$0xff] %vm1524_vm6, %v3682_v60  ;;  %v2754_v62 = vpop.f32.mrb[99].mxu0 }
 0x31f   : > { %2819 = vst.msk [vmem:[#allocation4 + $0x28] sm:$0xff] %vm1524_vm6, %v2754_v62  ;;  %v2838_v63 = vmax.f32 %v2837_v4, %v2754_v62 }
 0x321   : > { %v2839_v1 = vmax.f32 %v2838_v63, %v3681_v43 }
 0x323   : > { %v2840_v7 = vmax.f32 %v2839_v1, %v3682_v60  ;;  %v4739_v48 = vld [vmem:[#allocation4 + $0x30] sm:$0xff] }
 0x324   : > { %v4731_v40 = vld [vmem:[#allocation4 + $0x20] sm:$0xff] }
 0x325   : > { %v4743_v51 = vld [vmem:[#allocation4 + $0x38] sm:$0xff] }
 0x326   : > { %v4735_v2 = vld [vmem:[#allocation4 + $0x28] sm:$0xff] }
 0x32b   : > { %v3685_v8 = vpop.f32.mrb[88].mxu1 }
 0x32c   : > { %2824 = vst.msk [vmem:[#allocation4 + $0x50] sm:$0xff] %vm1524_vm6, %v3685_v8  ;;  %v2767_v9 = vpop.f32.mrb[89].mxu1 }
 0x32d   : > { %2822 = vst.msk [vmem:[#allocation4 + $0x40] sm:$0xff] %vm1524_vm6, %v2767_v9  ;;  %v2841_v10 = vmax.f32 %v2840_v7, %v2767_v9  ;;  %v3686_v11 = vpop.f32.mrb[90].mxu1 }
 0x32e   : > { %2825 = vst.msk [vmem:[#allocation4 + $0x58] sm:$0xff] %vm1524_vm6, %v3686_v11  ;;  %v2770_v45 = vpop.f32.mrb[91].mxu1 }
 0x32f   : > { %2823 = vst.msk [vmem:[#allocation4 + $0x48] sm:$0xff] %vm1524_vm6, %v2770_v45  ;;  %v2842_v15 = vmax.f32 %v2841_v10, %v2770_v45 }
 0x331   : > { %v2843_v16 = vmax.f32 %v2842_v15, %v3685_v8 }
 0x333   : > { %v2844_v12 = vmax.f32 %v2843_v16, %v3686_v11  ;;  %v4755_v31 = vld [vmem:[#allocation4 + $0x50] sm:$0xff]  ;;  %v2858_v11 = vsel %vm1569_vm7, %v2853_v30, 0.0  ;;  %vm4978_vm7 = vcmp.eq.s32.totalorder %v4549_v13, 10 }
 0x334   : > { %v4747_v54 = vld [vmem:[#allocation4 + $0x40] sm:$0xff] }
 0x335   : > { %v4759_v63 = vld [vmem:[#allocation4 + $0x58] sm:$0xff] }
 0x336   : > { %v4751_v57 = vld [vmem:[#allocation4 + $0x48] sm:$0xff] }
 0x33b   : > { %v3689_v17 = vpop.f32.mrb[92].mxu1 }
 0x33c   : > { %2828 = vst.msk [vmem:[#allocation4 + $0x70] sm:$0xff] %vm1524_vm6, %v3689_v17  ;;  %v2783_v19 = vpop.f32.mrb[93].mxu1 }
 0x33d   : > { %2826 = vst.msk [vmem:[#allocation4 + $0x60] sm:$0xff] %vm1524_vm6, %v2783_v19  ;;  %v2845_v20 = vmax.f32 %v2844_v12, %v2783_v19  ;;  %v3690_v18 = vpop.f32.mrb[94].mxu1 }
 0x33e   : > { %2829 = vst.msk [vmem:[#allocation4 + $0x78] sm:$0xff] %vm1524_vm6, %v3690_v18  ;;  %v2786_v21 = vpop.f32.mrb[95].mxu1 }
 0x33f   : > { %2827 = vst.msk [vmem:[#allocation4 + $0x68] sm:$0xff] %vm1524_vm6, %v2786_v21  ;;  %v2846_v22 = vmax.f32 %v2845_v20, %v2786_v21 }
 0x341   : > { %v2847_v24 = vmax.f32 %v2846_v22, %v3689_v17 }
 0x343   : > { %v2848_v52 = vmax.f32 %v2847_v24, %v3690_v18  ;;  %v2864_v18 = vsel %vm1576_vm8, %v2859_v33, %v2858_v11  ;;  %v4775_v21 = vld [vmem:[#allocation4 + $0x70] sm:$0xff]  ;;  %vm4979_vm8 = vcmp.eq.s32.totalorder %v4549_v13, 11 }
 0x344   : > { %v4763_v8 = vld [vmem:[#allocation4 + $0x60] sm:$0xff] }
 0x346   : > { %v4769_v16 = vld [vmem:[#allocation4 + $0x68] sm:$0xff] }
 0x34b   : > { %v3693_v26 = vpop.f32.mrb[96].mxu1 }
 0x34c   : > { %2832 = vst.msk [vmem:[#allocation4 + $0x90] sm:$0xff] %vm1524_vm6, %v3693_v26  ;;  %v2799_v25 = vpop.f32.mrb[97].mxu1 }
 0x34d   : > { %2830 = vst.msk [vmem:[#allocation4 + $0x80] sm:$0xff] %vm1524_vm6, %v2799_v25  ;;  %v2849_v27 = vmax.f32 %v2848_v52, %v2799_v25  ;;  %v3694_v47 = vpop.f32.mrb[98].mxu1  ;;  %v4779_v25 = vld [vmem:[#allocation4 + $0x78] sm:$0xff] }
 0x34e   : > { %2833 = vst.msk [vmem:[#allocation4 + $0x98] sm:$0xff] %vm1524_vm6, %v3694_v47  ;;  %v2802_v28 = vpop.f32.mrb[99].mxu1 }
 0x34f   : > { %2831 = vst.msk [vmem:[#allocation4 + $0x88] sm:$0xff] %vm1524_vm6, %v2802_v28  ;;  %v2850_v29 = vmax.f32 %v2849_v27, %v2802_v28 }
 0x351   : > { %v2851_v56 = vmax.f32 %v2850_v29, %v3693_v26  ;;  %v2870_v29 = vsel %vm1583_vm9, %v4721_v34, %v2864_v18  ;;  %vm4980_vm9 = vcmp.eq.s32.totalorder %v4549_v13, 12 }
 0x353   : > { %v4719_v32 = vmax.f32 %v2851_v56, %v3694_v47 }
 0x354   : > { %v4781_v27 = vld [vmem:[#allocation4 + $0x80] sm:$0xff] }
 0x355   : > { %v2854_v37 = vsub.f32 %v2853_v30, %v4719_v32  ;;  %v2860_v36 = vsub.f32 %v2859_v33, %v4719_v32  ;;  %v2866_v49 = vsub.f32 %v4721_v34, %v4719_v32  ;;  %v2872_v38 = vsub.f32 %v4723_v35, %v4719_v32  ;;  %v2961_v34 = vld [vmem:[#allocation4 + $0x90] sm:$0xff] }
 0x356   : > { %v2878_v46 = vsub.f32 %v4731_v40, %v4719_v32  ;;  %v2884_v42 = vsub.f32 %v4735_v2, %v4719_v32  ;;  %v2890_v61 = vsub.f32 %v4739_v48, %v4719_v32  ;;  %v2896_v53 = vsub.f32 %v4743_v51, %v4719_v32 }
 0x357   : > { %v2855_v41 = vmul.f32 1.442695, %v2854_v37  ;;  %v2861_v44 = vmul.f32 1.442695, %v2860_v36  ;;  %v2867_v59 = vmul.f32 1.442695, %v2866_v49  ;;  %v2902_v55 = vsub.f32 %v4747_v54, %v4719_v32 }
 0x358   : > { %v2873_v5 = vmul.f32 1.442695, %v2872_v38  ;;  %v2879_v14 = vmul.f32 1.442695, %v2878_v46  ;;  %v2885_v23 = vmul.f32 1.442695, %v2884_v42  ;;  %v2908_v58 = vsub.f32 %v4751_v57, %v4719_v32 }
 0x359   : > { %3827 = vpow2.f32 %v2855_v41  ;;  %v2891_v39 = vmul.f32 1.442695, %v2890_v61  ;;  %v2897_v3 = vmul.f32 1.442695, %v2896_v53  ;;  %v2903_v60 = vmul.f32 1.442695, %v2902_v55 }
 0x35a   : > { %3829 = vpow2.f32 %v2861_v44  ;;  %v2914_v62 = vsub.f32 %v4755_v31, %v4719_v32  ;;  %v2909_v6 = vmul.f32 1.442695, %v2908_v58  ;;  %v2920_v7 = vsub.f32 %v4759_v63, %v4719_v32  ;;  %v4788_v37 = vld [vmem:[#allocation4 + $0x88] sm:$0xff]  ;;  %v2967_v61 = vld [vmem:[#allocation4 + $0x98] sm:$0xff] }
 0x35b   : > { %3831 = vpow2.f32 %v2867_v59  ;;  %v2926_v15 = vsub.f32 %v4763_v8, %v4719_v32  ;;  %v2932_v20 = vsub.f32 %v4769_v16, %v4719_v32  ;;  %v2938_v26 = vsub.f32 %v4775_v21, %v4719_v32 }
 0x35c   : > { %3833 = vpow2.f32 %v2873_v5  ;;  %v2915_v45 = vmul.f32 1.442695, %v2914_v62  ;;  %v2921_v19 = vmul.f32 1.442695, %v2920_v7  ;;  %v2944_v30 = vsub.f32 %v4779_v25, %v4719_v32 }
 0x35d   : > { %3835 = vpow2.f32 %v2879_v14  ;;  %v2927_v52 = vmul.f32 1.442695, %v2926_v15  ;;  %v2933_v56 = vmul.f32 1.442695, %v2932_v20  ;;  %v2939_v49 = vmul.f32 1.442695, %v2938_v26 }
 0x35e   : > { %3837 = vpow2.f32 %v2885_v23  ;;  %v2950_v38 = vsub.f32 %v4781_v27, %v4719_v32  ;;  %v2876_v41 = vsel %vm1590_vm10, %v4723_v35, %v2870_v29  ;;  %v2945_v5 = vmul.f32 1.442695, %v2944_v30 }
 0x35f   : > { %3839 = vpow2.f32 %v2891_v39  ;;  %v2882_v46 = vsel %vm1597_vm11, %v4731_v40, %v2876_v41  ;;  %v2956_v42 = vsub.f32 %v4788_v37, %v4719_v32  ;;  %v2962_v39 = vsub.f32 %v2961_v34, %v4719_v32  ;;  %v3002_v41 = vld [vmem:[#allocation6] sm:$0xff] (!%p3304_p1) }
 0x360   : > { %3841 = vpow2.f32 %v2897_v3  ;;  %v2951_v53 = vmul.f32 1.442695, %v2950_v38  ;;  %v2888_v35 = vsel %vm1604_vm12, %v4735_v2, %v2882_v46  ;;  %v2968_v58 = vsub.f32 %v2967_v61, %v4719_v32  ;;  %v2977_v38 = vld [vmem:[#allocation5] sm:$0xff] }
 0x361   : > { %3843 = vpow2.f32 %v2903_v60  ;;  %v2957_v40 = vmul.f32 1.442695, %v2956_v42  ;;  %v2894_v60 = vsel %vm1611_vm13, %v4739_v48, %v2888_v35  ;;  %v2963_v62 = vmul.f32 1.442695, %v2962_v39 }
 0x362   : > { %3845 = vpow2.f32 %v2909_v6  ;;  %v2969_v6 = vmul.f32 1.442695, %v2968_v58  ;;  %v2900_v2 = vsel %vm1618_vm14, %v4743_v51, %v2894_v60  ;;  %vm4981_vm10 = vcmp.eq.s32.totalorder %v4549_v13, 13 }
 0x363   : > { %v3828_v43 = vpop.eup %3827  ;;  %3847 = vpow2.f32 %v2915_v45  ;;  %vm4982_vm11 = vcmp.eq.s32.totalorder %v4549_v13, 14  ;;  %vm4983_vm12 = vcmp.eq.s32.totalorder %v4549_v13, 16 }
 0x364   : > { %v3830_v4 = vpop.eup %3829  ;;  %3849 = vpow2.f32 %v2921_v19 }
 0x365   : > { %v2863_v0 = vadd.f32 %v3830_v4, %v3828_v43  ;;  %v3832_v1 = vpop.eup %3831  ;;  %3851 = vpow2.f32 %v2927_v52 }
 0x366   : > { %v3834_v10 = vpop.eup %3833  ;;  %3853 = vpow2.f32 %v2933_v56 }
 0x367   : > { %v2869_v9 = vadd.f32 %v3832_v1, %v2863_v0  ;;  %v3836_v17 = vpop.eup %3835  ;;  %3855 = vpow2.f32 %v2939_v49 }
 0x368   : > { %v3838_v24 = vpop.eup %3837  ;;  %3857 = vpow2.f32 %v2945_v5 }
 0x369   : > { %v2875_v12 = vadd.f32 %v3834_v10, %v2869_v9  ;;  %v3840_v28 = vpop.eup %3839  ;;  %3859 = vpow2.f32 %v2951_v53  ;;  %v2906_v10 = vsel %vm1625_vm15, %v4747_v54, %v2900_v2 }
 0x36a   : > { %v3842_v36 = vpop.eup %3841  ;;  %3861 = vpow2.f32 %v2957_v40  ;;  %v2912_v48 = vsel %vm4977_vm5, %v4751_v57, %v2906_v10 }
 0x36b   : > { %v2881_v22 = vadd.f32 %v3836_v17, %v2875_v12  ;;  %v3844_v59 = vpop.eup %3843  ;;  %3863 = vpow2.f32 %v2963_v62  ;;  %v2918_v51 = vsel %vm4978_vm7, %v4755_v31, %v2912_v48 }
 0x36c   : > { %v3846_v23 = vpop.eup %3845  ;;  %3865 = vpow2.f32 %v2969_v6  ;;  %v2924_v54 = vsel %vm4979_vm8, %v4759_v63, %v2918_v51 }
 0x36d   : > { %v2887_v47 = vadd.f32 %v3838_v24, %v2881_v22  ;;  %v3848_v3 = vpop.eup %3847  ;;  %v2930_v57 = vsel %vm4980_vm9, %v4763_v8, %v2924_v54 }
 0x36e   : > { %v3850_v4 = vpop.eup %3849 }
 0x36f   : > { %v2893_v33 = vadd.f32 %v3840_v28, %v2887_v47  ;;  %v3852_v1 = vpop.eup %3851  ;;  %v2936_v47 = vsel %vm4981_vm10, %v4769_v16, %v2930_v57 }
 0x370   : > { %v3854_v9 = vpop.eup %3853  ;;  %v2942_v31 = vsel %vm4982_vm11, %v4775_v21, %v2936_v47  ;;  %v2978_v21 = vmul.f32 0.4, %v4691_v50 }
 0x371   : > { %v2899_v44 = vadd.f32 %v3842_v36, %v2893_v33  ;;  %v3856_v45 = vpop.eup %3855  ;;  %v2948_v63 = vsel %vm1674_vm3, %v4779_v25, %v2942_v31 }
 0x372   : > { %v3858_v12 = vpop.eup %3857  ;;  %v2954_v8 = vsel %vm4983_vm12, %v4781_v27, %v2948_v63 }
 0x373   : > { %v2905_v14 = vadd.f32 %v3844_v59, %v2899_v44  ;;  %v3860_v19 = vpop.eup %3859  ;;  %v2960_v29 = vsel %vm1688_vm2, %v4788_v37, %v2954_v8 }
 0x374   : > { %v3862_v18 = vpop.eup %3861  ;;  %v2966_v16 = vsel %vm1695_vm1, %v2961_v34, %v2960_v29 }
 0x375   : > { %v2911_v55 = vadd.f32 %v3846_v23, %v2905_v14  ;;  %v3864_v24 = vpop.eup %3863  ;;  %v2972_v25 = vsel %vm1702_vm4, %v2967_v61, %v2966_v16 }
 0x376   : > { %v3866_v26 = vpop.eup %3865 }
 0x377   : > { %v2917_v43 = vadd.f32 %v3848_v3, %v2911_v55 }
 0x379   : > { %v2923_v0 = vadd.f32 %v3850_v4, %v2917_v43 }
 0x37b   : > { %v2929_v7 = vadd.f32 %v3852_v1, %v2923_v0 }
 0x37d   : > { %v2935_v11 = vadd.f32 %v3854_v9, %v2929_v7 }
 0x37f   : > { %v2941_v15 = vadd.f32 %v3856_v45, %v2935_v11 }
 0x381   : > { %v2947_v17 = vadd.f32 %v3858_v12, %v2941_v15 }
 0x383   : > { %v2953_v20 = vadd.f32 %v3860_v19, %v2947_v17 }
 0x385   : > { %v2959_v22 = vadd.f32 %v3862_v18, %v2953_v20 }
 0x387   : > { %v2965_v52 = vadd.f32 %v3864_v24, %v2959_v22 }
 0x389   : > { %v2971_v28 = vadd.f32 %v3866_v26, %v2965_v52 }
 0x38b   : > { %3867 = vlog2.f32 %v2971_v28 }
 0x395   : > { %v3868_v56 = vpop.eup %3867 }
 0x396   : > { %v2974_v30 = vmul.f32 0.6931472, %v3868_v56 }
 0x398   : > { %v2975_v33 = vadd.f32 %v2974_v30, %v4719_v32  ;;  %v3003_v32 = vsel (!%p3304_p1), %vm1524_vm6, %v3002_v41, 0.0 }
 0x39a   : > { %v2976_v36 = vsub.f32 %v2975_v33, %v2972_v25  ;;  %2988 = sbr.rel (%p3304_p1) target bundleno = 1147 (0x47b), region = 56 }
 0x39c   : > { %v2979_v49 = vmul.f32 %v2978_v21, %v2976_v36 }
 0x39e   : > { %v2980_v27 = vadd.f32 %v2979_v49, %v2977_v38 }
 0x3a0   : > { %2981 = vst.msk [vmem:[#allocation5] sm:$0xff] %vm1524_vm6, %v2980_v27 }
 0x3a7   : > { %v2989_v37 = vld [vmem:[#allocation5] sm:$0xff] }
 0x3a8   : > { %v2990_v44 = vsel %vm1524_vm6, %v2989_v37, 0.0 }
 0x3a9   : > { %2991 = vadd.xlane.f32.xlu0 %v2990_v44 }
 0x3ad   : > { %3004 = vadd.xlane.f32.xlu0 %v3003_v32 }
 0x436   : > { %v2992_v50 = vpop.xlane.xlu0 %2991 }
 0x437   : > { %v2993_v13 = vrot.slane %v2992_v50, 4 }
 0x439   : > { %v2994_v34 = vadd.f32 %v2993_v13, %v2992_v50 }
 0x43a   : > { %v3005_v59 = vpop.xlane.xlu0 %3004 }
 0x43b   : > { %v2995_v46 = vrot.slane %v2994_v34, 2  ;;  %v3006_v5 = vrot.slane %v3005_v59, 4 }
 0x43d   : > { %v3007_v42 = vadd.f32 %v3006_v5, %v3005_v59  ;;  %v2996_v14 = vadd.f32 %v2995_v46, %v2994_v34 }
 0x43f   : > { %v3008_v61 = vrot.slane %v3007_v42, 2  ;;  %v2997_v23 = vrot.slane %v2996_v14, 1 }
 0x441   : > { %v3009_v53 = vadd.f32 %v3008_v61, %v3007_v42  ;;  %v2998_v39 = vadd.f32 %v2997_v23, %v2996_v14 }
 0x443   : > { %3702 = vpush %v2998_v39  ;;  %v3010_v35 = vrot.slane %v3009_v53, 1 }
 0x445   : > { %v3011_v55 = vadd.f32 %v3010_v35, %v3009_v53 }
 0x447   : > { %3704 = vpush %v3011_v55 }
 0x474   : > { %s3703_s30 = spop %3702 }
 0x475   : > { %v3000_v3 = vstv %s3703_s30 }
 0x476   : > { %3001 = vst [vmem:[%s377_s25] sm:$0x1] %v3000_v3 }
 0x478   : > { %s3705_s10 = spop %3704 }
 0x479   : > { %v3013_v40 = vstv %s3705_s10 }
 0x47a   : > { %3014 = vst [vmem:[%s383_s26] sm:$0x1] %v3013_v40 }
 0x47b PF: > { %s3305_s11 = sshll.u32 %s3983_s9, 4  ;;  %s3032_s18 = sshll.u32 %s377_s25, 4  ;;  %s3033_s18 = int_to_ptr.vmem [resolvable:$true] %s3032_s18 }
 0x47c   : > { %s4861_s16 = scalar_lea.hbm %s4945_s7, %s3305_s11  ;;  %s3016_s21 = scalar_lea.sflag [#allocation8], %s4117_s22 }
 0x47d   : > { %s3869_s19 = scalar_lea.vmem %s3033_s18, 16  ;;  %s4000_s20 = smov [#allocation7]  }
 0x47e   : > { %p3870_p2 = scmp.ne.s32.totalorder %s3033_s18, %s3869_s19  ;;  %s3873_s13 = sshll.u32 %s4000_s20, 4  ;;  %s3874_s13 = int_to_ptr.vmem [resolvable:$false] %s3873_s13 }
 0x47f   : > { %s3875_s24 = scalar_lea.vmem %s3874_s13, 32  ;;  %p3876_p6 = scmp.lt.s32.totalorder %s3033_s18, %s3874_s13 }
 0x480   : > { %p3871_p4 = pnand %p3870_p2, %p4096_p3  ;;  %p3877_p7 = scmp.lt.s32.totalorder %s3875_s24, %s3869_s19 }
 0x482   : > { %p3872_p5 = pneg %p3871_p4  ;;  %p3878_p8 = por %p3877_p7, %p3876_p6 }
 0x484   : > { %p3879_p10 = pnand %p3878_p8, %p3872_p5 }
 0x486   : > { %3882 = shalt.err (!%p3879_p10)
}
 0x487   : > { %s3883_s14 = scalar_lea.hbm %s4861_s16, 16  ;;  %s3887_s27 = scalar_lea.hbm %s4945_s7, 32 }
 0x488   : > { %p3884_p11 = scmp.ne.s32.totalorder %s4861_s16, %s3883_s14  ;;  %p3888_p0 = scmp.lt.u32.totalorder %s4861_s16, %s4945_s7 }
 0x489   : > { %p3889_p1 = scmp.lt.u32.totalorder %s3887_s27, %s3883_s14  ;;  %p3891_p4 = scmp.lt.u32.totalorder %s3883_s14, %s4861_s16 }
 0x48a   : > { %p3885_p12 = pnand %p3884_p11, %p4096_p3 }
 0x48b   : > { %p3890_p2 = por %p3889_p1, %p3888_p0 }
 0x48c   : > { %p3886_p13 = pneg %p3885_p12 }
 0x48d   : > { %p3892_p5 = por %p3891_p4, %p3890_p2 }
 0x48f   : > { %p3893_p6 = pnand %p3892_p5, %p3886_p13 }
 0x491   : > { %3896 = shalt.err (!%p3893_p6)
}
 0x492   : > { %3706 = dma.vmem_to_hbm [thread:$0]  (%p4096_p3), %s3033_s18, 16, %s4861_s16, %s3016_s21  }
 0x493   : > { %s4984_s10 = sld [smem:[#allocation23_spill]]  ;;  %s3045_s19 = sshll.u32 %s383_s26, 4  ;;  %s3046_s19 = int_to_ptr.vmem [resolvable:$true] %s3045_s19 }
 0x494   : > { %s3020_s20 = scalar_lea.sflag [#allocation10], %s4117_s22  ;;  %s3897_s13 = scalar_lea.vmem %s3046_s19, 16 }
 0x495   : > { %p3898_p7 = scmp.ne.s32.totalorder %s3046_s19, %s3897_s13  ;;  %s4001_s24 = smov [#allocation9]  }
 0x496   : > { %s3901_s14 = sshll.u32 %s4001_s24, 4  ;;  %s3902_s14 = int_to_ptr.vmem [resolvable:$false] %s3901_s14 }
 0x497   : > { %p3899_p8 = pnand %p3898_p7, %p4096_p3  ;;  %s3903_s23 = scalar_lea.vmem %s3902_s14, 32 }
 0x498   : > { %p3904_p11 = scmp.lt.s32.totalorder %s3046_s19, %s3902_s14  ;;  %p3905_p12 = scmp.lt.s32.totalorder %s3903_s23, %s3897_s13 }
 0x499   : > { %s4985_s15 = smov %s4984_s10  ;;  %s4888_s12 = scalar_lea.hbm %s4984_s10, %s3305_s11 }
 0x49a   : > { %p3900_p10 = pneg %p3899_p8  ;;  %p3906_p13 = por %p3905_p12, %p3904_p11 }
 0x49c   : > { %p3907_p0 = pnand %p3906_p13, %p3900_p10 }
 0x49e   : > { %3910 = shalt.err (!%p3907_p0)
}
 0x49f   : > { %s3911_s9 = scalar_lea.hbm %s4888_s12, 16  ;;  %s3915_s11 = scalar_lea.hbm %s4985_s15, 32 }
 0x4a0   : > { %p3912_p1 = scmp.ne.s32.totalorder %s4888_s12, %s3911_s9  ;;  %p3916_p5 = scmp.lt.u32.totalorder %s4888_s12, %s4985_s15 }
 0x4a1   : > { %p3917_p6 = scmp.lt.u32.totalorder %s3915_s11, %s3911_s9  ;;  %p3919_p8 = scmp.lt.u32.totalorder %s3911_s9, %s4888_s12 }
 0x4a2   : > { %p3913_p2 = pnand %p3912_p1, %p4096_p3 }
 0x4a3   : > { %p3918_p7 = por %p3917_p6, %p3916_p5 }
 0x4a4   : > { %p3914_p4 = pneg %p3913_p2 }
 0x4a5   : > { %p3920_p10 = por %p3919_p8, %p3918_p7 }
 0x4a7   : > { %p3921_p11 = pnand %p3920_p10, %p3914_p4 }
 0x4a9   : > { %3924 = shalt.err (!%p3921_p11)
}
 0x4aa   : > { %3707 = dma.vmem_to_hbm [thread:$0]  (%p4096_p3), %s3046_s19, 16, %s4888_s12, %s3020_s20  }
 0x4ab PF: > { %s4986_s21 = sld [smem:[#allocation18_spill]]  ;;  %s4987_s25 = sld [smem:[#allocation13_spill]] }
 0x4b1   : > { %p3717_p12 = scmp.ge.s32.totalorder %s4986_s21, 2  ;;  %s3057_s28 = sand.u32 1, %s4987_s25  }
 0x4b2   : > { %s3058_s8 = scalar_lea.sflag [#allocation8], %s3057_s28 }
 0x4b3   : > { %p3711_p13 = pnand %p3717_p12, %p4106_p9 }
 0x4b5   : > { %3958 = dma.done.wait (!%p3711_p13), %s3058_s8, 16  }
 0x4b6   : > { %3960 = vsyncadd (!%p3711_p13), %s3058_s8, 4294967280  ;;  %s3066_s29 = scalar_lea.sflag [#allocation10], %s3057_s28 }
 0x4b7   : > { %3962 = dma.done.wait (!%p3711_p13), %s3066_s29, 16  }
 0x4b8   : > { %3964 = vsyncadd (!%p3711_p13), %s3066_s29, 4294967280  ;;  %s25_s12 = sadd.s32 1, %s4986_s21   ;;  %s4989_s27 = sld [smem:[#allocation14_spill]] }
 0x4b9   : > { %p22_p0 = scmp.ge.s32.totalorder %s25_s12, 6   ;;  %s4990_s28 = sld [smem:[#allocation15_spill]] }
 0x4ba   : > { %s4991_s29 = sld [smem:[#allocation22_spill]]  ;;  %s4992_s30 = sld [smem:[#allocation16_spill]] }
 0x4bb   : > { %s4993_s9 = sld [smem:[#allocation17_spill]]  ;;  %s4994_s10 = sld [smem:[#allocation19_spill]] }
 0x4bc   : > { %s4995_s11 = sld [smem:[#allocation20_spill]]  ;;  %24 = sbr.rel (!%p22_p0) target bundleno = 9 (0x9), region = 158 }
 0x4c3   :  { %3070 = vsyncpa [#allocation8], 1 }
 0x4c4   :  { %3072 = vsyncpa [#allocation8 + $0x1], 1 }
 0x4c5   :  { %3073 = vsyncpa [#allocation10], 1 }
 0x4c6   :  { %3075 = vsyncpa [#allocation10 + $0x1], 1 }

</bundles_post_ra>
